<compile_context>
chip_gen: v7x
topology: tpu7x:2x2x1
jax: 0.10.0
libtpu: 0.0.40
codegen_flags: <defaults>
</compile_context>

<pallas_src>
import jax
import jax.numpy as jnp
import numpy as np
from jax import lax
from jax.experimental import pallas as pl
from jax.experimental.pallas import tpu as pltpu


def _round_up(x, m):
    return ((x + m - 1) // m) * m


def _leaky_relu(x, slope):
    return jnp.where(x > 0, x, slope * x)


def make_cnn_v_kernel(*, B_real, B_pad, TB, L, D, Co, kernel_sizes, E, d_al,
                      leaky_slope=0.01, bn_eps=1e-5):
    kernel_sizes = tuple(kernel_sizes)
    nK = len(kernel_sizes)
    maxK = max(kernel_sizes)
    CW = nK * Co                 # concatenated conv-output width (branch-major)
    WP = maxK * CW               # packed conv-weight width (tap-major)
    E_PAD = _round_up(E, 128)    # lane-dense FC / output width

    def kernel(x_ref, w_ref, vec_ref, out_ref, yst_ref):
        b = pl.program_id(0)
        nb = pl.num_programs(0)

        # ---- zero-cost static ref views (no full-buffer materialization) ----
        w_conv = w_ref[0:D, 0:WP]                       # (D, WP)     bf16
        w_fc = w_ref[d_al:d_al + CW, 0:E_PAD]           # (CW, E_PAD) bf16
        b_conv = vec_ref[0:1, 0:CW]                     # (1, CW)     f32
        b_fc = vec_ref[1:2, 0:E_PAD]                    # (1, E_PAD)  f32
        mask_a = vec_ref[8:8 + L, 0:CW]                 # (L, CW) additive mask

        # ---- ONE fused conv matmul: every tap of every branch at once ----
        y = jnp.dot(x_ref[...], w_conv,
                    preferred_element_type=jnp.float32)  # (TB*L, WP) f32
        y3 = y.reshape(TB, L, WP)

        # shifted tap accumulation: slice-before-roll (XLU sublane rotate on
        # the CW-wide tap block only); wrapped rows only ever land on
        # positions that the additive tail mask kills below.
        acc = y3[:, :, 0:CW] + b_conv[None]
        for k in range(1, maxK):                         # static unroll
            acc = acc + pltpu.roll(y3[:, :, k * CW:(k + 1) * CW],
                                   shift=(L - k) % L, axis=1)

        # F.leaky_relu + static tail mask (host-precomputed) + max_pool1d
        act = _leaky_relu(acc, leaky_slope) + mask_a[None]
        pooled = jnp.max(act, axis=1)                    # (TB, CW) == cat(x, 1)
        cat = _leaky_relu(pooled, leaky_slope)

        # u_fc (bf16 operands, f32 accumulate); stage this block's rows in the
        # persistent VMEM scratch (lane-dense E_PAD columns).
        yfc = jnp.dot(cat.astype(jnp.bfloat16), w_fc,
                      preferred_element_type=jnp.float32) + b_fc
        i0 = pl.multiple_of(b * TB, TB)
        yst_ref[pl.ds(i0, TB), :] = yfc

        # ---- train-mode BatchNorm1d over the FULL batch, last step only ----
        @pl.when(b == nb - 1)
        def _():
            y_all = yst_ref[...]                         # (B_pad, E_PAD) f32
            if B_pad == B_real:                          # trace-time branch
                mean = jnp.mean(y_all, axis=0, keepdims=True)
                d = y_all - mean
                var = jnp.mean(d * d, axis=0, keepdims=True)
            else:                                        # exclude padded rows
                row = lax.broadcasted_iota(jnp.int32, (B_pad, 1), 0)
                valid = row < B_real
                inv_b = jnp.float32(1.0 / B_real)
                mean = jnp.sum(jnp.where(valid, y_all, 0.0),
                               axis=0, keepdims=True) * inv_b
                d = jnp.where(valid, y_all - mean, 0.0)
                var = jnp.sum(d * d, axis=0, keepdims=True) * inv_b
            gamma = vec_ref[2:3, 0:E_PAD]
            beta = vec_ref[3:4, 0:E_PAD]
            out_ref[...] = ((y_all - mean) * lax.rsqrt(var + bn_eps)
                            * gamma + beta)

    return kernel


def pack_weights(conv_ws, fc_w, kernel_sizes, *, d_al, wlanes):
    """bf16 weight slab: conv taps (tap-major / branch-minor, missing taps
    zero-padded) in rows [0, D); fc weight in rows [d_al, d_al+CW)."""
    D, Co = conv_ws[0].shape[1], conv_ws[0].shape[2]
    E = fc_w.shape[1]
    CW = len(kernel_sizes) * Co
    W = jnp.zeros((d_al + CW, wlanes), jnp.float32)
    for i, K in enumerate(kernel_sizes):
        for k in range(K):
            W = W.at[0:D, k * CW + i * Co:k * CW + (i + 1) * Co].set(conv_ws[i][k])
    W = W.at[d_al:d_al + CW, 0:E].set(fc_w)
    return W.astype(jnp.bfloat16)            # host-side bf16: half the DMA


def pack_vectors(conv_bs, fc_b, gamma, beta, kernel_sizes, *, Co, L, wlanes):
    """f32 slab: row0=conv bias, row1=fc bias, row2=gamma, row3=beta,
    rows 8..8+L-1 = additive (-1e30) tail-validity mask (static)."""
    CW = len(kernel_sizes) * Co
    E = int(np.asarray(fc_b).shape[0])
    V = np.zeros((8 + L, wlanes), np.float32)
    V[0, :CW] = np.concatenate([np.asarray(b, np.float32) for b in conv_bs])
    V[1, :E] = np.asarray(fc_b, np.float32)
    V[2, :E] = np.asarray(gamma, np.float32)
    V[3, :E] = np.asarray(beta, np.float32)
    for i, K in enumerate(kernel_sizes):
        V[8 + (L - K + 1):8 + L, i * Co:(i + 1) * Co] = -1e30   # t >= L-K+1
    return jnp.asarray(V)


def cnn_v_forward(batch_feature, conv_ws, conv_bs, fc_w, fc_b,
                  bn_gamma, bn_beta, kernel_sizes, *, batch_tile=64):
    B, L, D = batch_feature.shape
    Co = conv_ws[0].shape[-1]
    E = fc_w.shape[1]
    kernel_sizes = tuple(kernel_sizes)
    maxK = max(kernel_sizes)
    assert maxK <= L, "conv kernel size must not exceed neighbor count L"
    assert batch_tile % 8 == 0

    CW = len(kernel_sizes) * Co
    WP = maxK * CW
    E_PAD = _round_up(E, 128)
    WLANES = _round_up(max(WP, E_PAD), 128)
    d_al = _round_up(D, 16)          # bf16 sublane-pack-aligned start of fc_w

    # Batch tiling: M = TB*L rows per MXU push (TB=64, L=8 -> 512 rows).
    # Per-step x tile is TB*L*D*2 bytes (tiny), safe for v7x's 64 MiB VMEM.
    TB = int(min(batch_tile, _round_up(B, 8)))
    B_pad = _round_up(B, TB)
    nb = B_pad // TB

    if B_pad != B:
        pad = jnp.zeros((B_pad - B, L, D), batch_feature.dtype)
        batch_feature = jnp.concatenate([batch_feature, pad], axis=0)
    # cast features once on the host side (halves the x DMA, no in-kernel packs)
    x2d = batch_feature.reshape(B_pad * L, D).astype(jnp.bfloat16)

    w_pack = pack_weights(conv_ws, fc_w, kernel_sizes, d_al=d_al, wlanes=WLANES)
    v_pack = pack_vectors(conv_bs, fc_b, bn_gamma, bn_beta, kernel_sizes,
                          Co=Co, L=L, wlanes=WLANES)

    kernel = make_cnn_v_kernel(B_real=B, B_pad=B_pad, TB=TB, L=L, D=D, Co=Co,
                               kernel_sizes=kernel_sizes, E=E, d_al=d_al)

    cost = pl.CostEstimate(
        flops=2 * B_pad * L * D * WP + 2 * B_pad * CW * E_PAD,
        transcendentals=0,
        bytes_accessed=(x2d.size * 2 + w_pack.size * 2 + v_pack.size * 4
                        + B_pad * E_PAD * 4),
    )

    out = pl.pallas_call(
        kernel,
        out_shape=jax.ShapeDtypeStruct((B_pad, E_PAD), jnp.float32),
        grid_spec=pltpu.PrefetchScalarGridSpec(
            num_scalar_prefetch=0,
            grid=(nb,),
            in_specs=[
                pl.BlockSpec((TB * L, D), lambda b: (b, 0)),          # x tile
                pl.BlockSpec((d_al + CW, WLANES), lambda b: (0, 0)),  # weights
                pl.BlockSpec((8 + L, WLANES), lambda b: (0, 0)),      # vectors
            ],
            out_specs=pl.BlockSpec((B_pad, E_PAD), lambda b: (0, 0)),
            scratch_shapes=[pltpu.VMEM((B_pad, E_PAD), jnp.float32)],
        ),
        compiler_params=pltpu.CompilerParams(
            # BatchNorm couples every batch block -> axis must be 'arbitrary'
            # (staged rows + last-step normalize), not 'parallel'.
            dimension_semantics=("arbitrary",),
        ),
        cost_estimate=cost,
    )(x2d, w_pack, v_pack)

    return out[:B, :E]


def cnn_v_reference(batch_feature, conv_ws, conv_bs, fc_w, fc_b,
                    bn_gamma, bn_beta, kernel_sizes, slope=0.01, eps=1e-5):
    """Pure-JAX reference mirroring the PyTorch forward (bf16 matmul operands,
    f32 accumulation, same as the kernel)."""
    bf16 = jnp.bfloat16
    B, L, D = batch_feature.shape
    pooled = []
    for (w, b), K in zip(zip(conv_ws, conv_bs), kernel_sizes):
        T = L - K + 1
        conv = sum(jnp.einsum('btd,dc->btc',
                              batch_feature[:, k:k + T, :].astype(bf16),
                              w[k].astype(bf16),
                              preferred_element_type=jnp.float32)
                   for k in range(K)) + b[None, None, :]
        conv = jnp.where(conv > 0, conv, slope * conv)
        pooled.append(jnp.max(conv, axis=1))
    cat = jnp.concatenate(pooled, axis=1)
    cat = jnp.where(cat > 0, cat, slope * cat)
    y = jnp.dot(cat.astype(bf16), fc_w.astype(bf16),
                preferred_element_type=jnp.float32) + fc_b
    mean = y.mean(0, keepdims=True)
    var = ((y - mean) ** 2).mean(0, keepdims=True)
    return (y - mean) / jnp.sqrt(var + eps) * bn_gamma + bn_beta


def init_params(key, D, Co, kernel_sizes, E):
    """Deterministic xavier_normal_-style init matching the module's shapes."""
    conv_ws, conv_bs = [], []
    for K in kernel_sizes:
        key, k1, k2 = jax.random.split(key, 3)
        fan_in, fan_out = 1 * K * D, Co * K * D          # Conv2d(1, Co, (K, D))
        std = float(np.sqrt(2.0 / (fan_in + fan_out)))
        w = jax.random.normal(k1, (K, D, Co), jnp.float32) * std
        bound = 1.0 / float(np.sqrt(fan_in))
        b = jax.random.uniform(k2, (Co,), jnp.float32, -bound, bound)
        conv_ws.append(w)
        conv_bs.append(b)
    in_dim = len(kernel_sizes) * Co
    key, k1, k2 = jax.random.split(key, 3)
    std = float(np.sqrt(2.0 / (in_dim + E)))             # Linear(in_dim, E)
    fc_w = jax.random.normal(k1, (in_dim, E), jnp.float32) * std
    bound = 1.0 / float(np.sqrt(in_dim))
    fc_b = jax.random.uniform(k2, (E,), jnp.float32, -bound, bound)
    bn_gamma = jnp.ones((E,), jnp.float32)               # BatchNorm1d defaults
    bn_beta = jnp.zeros((E,), jnp.float32)
    return conv_ws, conv_bs, fc_w, fc_b, bn_gamma, bn_beta


if __name__ == "__main__":
    key = jax.random.PRNGKey(0)
    # Per the perf review the dominant lever is batching enough v-nodes per
    # call that M = B*L >= 256.  B=200 (M=1600, ~100 KB of features) is still
    # tiny but exercises the batch grid, the cross-block BatchNorm and the
    # padded-batch path (B_pad=256 with batch_tile=64).
    B, L, D = 200, 8, 32          # v-nodes, neighbors per v, feature_size
    Co = 8                        # args.kernel_num
    kernel_sizes = (2, 3)         # args.kernel_sizes_u
    E = 16                        # args.embed_size
    num_u = 20                    # len(edge_dict_u)

    k_feat, k_idx, k_param = jax.random.split(key, 3)

    # self.u_feature = torch.rand(len(edge_dict_u), args.feature_size)
    u_feature = jax.random.uniform(k_feat, (num_u, D), jnp.float32)

    # TODO(synk): feature_constructor is not defined in the reference source;
    # approximated as a fixed-length padded gather of each v-node's u-neighbor
    # features -> (B, L, D)  (== NCHW (B, 1, L, D) with Ci squeezed).
    neighbor_idx = jax.random.randint(k_idx, (B, L), 0, num_u)
    batch_feature = u_feature[neighbor_idx]              # plain-JAX glue gather

    conv_ws, conv_bs, fc_w, fc_b, bn_gamma, bn_beta = init_params(
        k_param, D, Co, kernel_sizes, E)

    out = cnn_v_forward(batch_feature, conv_ws, conv_bs, fc_w, fc_b,
                        bn_gamma, bn_beta, kernel_sizes)
    out = jax.block_until_ready(out)

    ref = cnn_v_reference(batch_feature, conv_ws, conv_bs, fc_w, fc_b,
                          bn_gamma, bn_beta, kernel_sizes)
    np.testing.assert_allclose(np.asarray(out), np.asarray(ref),
                               rtol=3e-3, atol=3e-3)
    print("KERNEL_OK")
</pallas_src>

<mosaic_0001>
module attributes {stable_mosaic.version = 11 : i64} {
  func.func @kernel(%arg0: i32, %arg1: memref<512x32xbf16, #tpu.memory_space<vmem>>, %arg2: memref<48x128xbf16, #tpu.memory_space<vmem>>, %arg3: memref<16x128xf32, #tpu.memory_space<vmem>>, %arg4: memref<256x128xf32, #tpu.memory_space<vmem>>, %arg5: memref<256x128xf32, #tpu.memory_space<vmem>>) attributes {dimension_semantics = [#tpu.dimension_semantics<arbitrary>], iteration_bounds = array<i64: 4>, scalar_prefetch = 0 : i64, scratch_operands = 1 : i64, tpu.core_type = #tpu.core_type<tc>, window_params = [{transform_indices = @transform_0, window_bounds = array<i64: 512, 32>}, {pipeline_mode = #tpu.pipeline_mode<synchronous>, transform_indices = @transform_1, window_bounds = array<i64: 48, 128>}, {pipeline_mode = #tpu.pipeline_mode<synchronous>, transform_indices = @transform_2, window_bounds = array<i64: 16, 128>}, {pipeline_mode = #tpu.pipeline_mode<synchronous>, transform_indices = @transform_3, window_bounds = array<i64: 256, 128>}]} {
    %c0 = arith.constant 0 : index
    %c0_0 = arith.constant 0 : index
    %0 = vector.load %arg2[%c0, %c0_0] : memref<48x128xbf16, #tpu.memory_space<vmem>>, vector<32x48xbf16>
    %c32 = arith.constant 32 : index
    %c0_1 = arith.constant 0 : index
    %1 = vector.load %arg2[%c32, %c0_1] : memref<48x128xbf16, #tpu.memory_space<vmem>>, vector<16x128xbf16>
    %c0_2 = arith.constant 0 : index
    %c0_3 = arith.constant 0 : index
    %2 = vector.load %arg3[%c0_2, %c0_3] : memref<16x128xf32, #tpu.memory_space<vmem>>, vector<1x16xf32>
    %c1 = arith.constant 1 : index
    %c0_4 = arith.constant 0 : index
    %3 = vector.load %arg3[%c1, %c0_4] : memref<16x128xf32, #tpu.memory_space<vmem>>, vector<1x128xf32>
    %c8 = arith.constant 8 : index
    %c0_5 = arith.constant 0 : index
    %4 = vector.load %arg3[%c8, %c0_5] : memref<16x128xf32, #tpu.memory_space<vmem>>, vector<8x16xf32>
    %c0_6 = arith.constant 0 : index
    %c0_7 = arith.constant 0 : index
    %5 = vector.load %arg1[%c0_6, %c0_7] : memref<512x32xbf16, #tpu.memory_space<vmem>>, vector<512x32xbf16>
    %cst = arith.constant dense<0.000000e+00> : vector<512x48xf32>
    %6 = tpu.matmul %5, %0, %cst {dimension_numbers = #tpu.dot_dimension_numbers<[1], [0], [0], [1], [0, 0, 1, 1], [], []>} : vector<512x32xbf16>, vector<32x48xbf16>, vector<512x48xf32> -> vector<512x48xf32>
    %7 = vector.shape_cast %6 : vector<512x48xf32> to vector<64x8x48xf32>
    %8 = vector.extract_strided_slice %7 {offsets = [0, 0, 0], sizes = [64, 8, 16], strides = [1, 1, 1]} : vector<64x8x48xf32> to vector<64x8x16xf32>
    %9 = vector.shape_cast %2 : vector<1x16xf32> to vector<1x1x16xf32>
    %10 = vector.broadcast %9 : vector<1x1x16xf32> to vector<64x8x16xf32>
    %11 = arith.addf %8, %10 : vector<64x8x16xf32>
    %12 = vector.extract_strided_slice %7 {offsets = [0, 0, 16], sizes = [64, 8, 16], strides = [1, 1, 1]} : vector<64x8x48xf32> to vector<64x8x16xf32>
    %c7_i32 = arith.constant 7 : i32
    %13 = tpu.dynamic_rotate %12 by %c7_i32 dim 1 : vector<64x8x16xf32>, i32 -> vector<64x8x16xf32>
    %14 = arith.addf %11, %13 : vector<64x8x16xf32>
    %15 = vector.extract_strided_slice %7 {offsets = [0, 0, 32], sizes = [64, 8, 16], strides = [1, 1, 1]} : vector<64x8x48xf32> to vector<64x8x16xf32>
    %c6_i32 = arith.constant 6 : i32
    %16 = tpu.dynamic_rotate %15 by %c6_i32 dim 1 : vector<64x8x16xf32>, i32 -> vector<64x8x16xf32>
    %17 = arith.addf %14, %16 : vector<64x8x16xf32>
    %cst_8 = arith.constant 0.000000e+00 : f32
    %18 = vector.broadcast %cst_8 : f32 to vector<64x8x16xf32>
    %19 = arith.cmpf ogt, %17, %18 : vector<64x8x16xf32>
    %cst_9 = arith.constant 0.00999999977 : f32
    %20 = vector.broadcast %cst_9 : f32 to vector<64x8x16xf32>
    %21 = arith.mulf %20, %17 : vector<64x8x16xf32>
    %22 = arith.select %19, %17, %21 : vector<64x8x16xi1>, vector<64x8x16xf32>
    %23 = vector.shape_cast %4 : vector<8x16xf32> to vector<1x8x16xf32>
    %24 = vector.broadcast %23 : vector<1x8x16xf32> to vector<64x8x16xf32>
    %25 = arith.addf %22, %24 : vector<64x8x16xf32>
    %cst_10 = arith.constant dense<0xFF800000> : vector<64x16xf32>
    %26 = vector.multi_reduction <maximumf>, %25, %cst_10 [1] : vector<64x8x16xf32> to vector<64x16xf32>
    %cst_11 = arith.constant 0.000000e+00 : f32
    %27 = vector.broadcast %cst_11 : f32 to vector<64x16xf32>
    %28 = arith.cmpf ogt, %26, %27 : vector<64x16xf32>
    %cst_12 = arith.constant 0.00999999977 : f32
    %29 = vector.broadcast %cst_12 : f32 to vector<64x16xf32>
    %30 = arith.mulf %29, %26 : vector<64x16xf32>
    %31 = arith.select %28, %26, %30 : vector<64x16xi1>, vector<64x16xf32>
    %32 = arith.truncf %31 : vector<64x16xf32> to vector<64x16xbf16>
    %cst_13 = arith.constant dense<0.000000e+00> : vector<64x128xf32>
    %33 = tpu.matmul %32, %1, %cst_13 {dimension_numbers = #tpu.dot_dimension_numbers<[1], [0], [0], [1], [0, 0, 1, 1], [], []>} : vector<64x16xbf16>, vector<16x128xbf16>, vector<64x128xf32> -> vector<64x128xf32>
    %34 = vector.broadcast %3 : vector<1x128xf32> to vector<64x128xf32>
    %35 = arith.addf %33, %34 : vector<64x128xf32>
    %c64_i32 = arith.constant 64 : i32
    %36 = arith.muli %arg0, %c64_i32 : i32
    %37 = tpu.assume_multiple %36, 64 : i32
    %38 = arith.index_cast %37 : i32 to index
    %c0_14 = arith.constant 0 : index
    %39 = vector.load %arg5[%38, %c0_14] : memref<256x128xf32, #tpu.memory_space<vmem>>, vector<64x128xf32>
    tpu.vector_store %arg5[%38, %c0_14], %35 {strides = array<i32>} : memref<256x128xf32, #tpu.memory_space<vmem>>, vector<64x128xf32>,
    %c3_i32 = arith.constant 3 : i32
    %40 = arith.cmpi eq, %arg0, %c3_i32 : i32
    %41 = arith.extui %40 : i1 to i32
    %c0_i32 = arith.constant 0 : i32
    %42 = arith.cmpi ne, %41, %c0_i32 : i32
    scf.if %42 {
      %c0_15 = arith.constant 0 : index
      %c0_16 = arith.constant 0 : index
      %43 = vector.load %arg5[%c0_15, %c0_16] : memref<256x128xf32, #tpu.memory_space<vmem>>, vector<256x128xf32>
      %44 = tpu.iota {dimensions = array<i32: 0>} : vector<256x1xi32>
      %c200_i32 = arith.constant 200 : i32
      %45 = vector.broadcast %c200_i32 : i32 to vector<256x1xi32>
      %46 = arith.cmpi slt, %44, %45 : vector<256x1xi32>
      %cst_17 = arith.constant 0.000000e+00 : f32
      %47 = vector.shape_cast %46 : vector<256x1xi1> to vector<256x1xi1>
      %48 = vector.broadcast %47 : vector<256x1xi1> to vector<256x128xi1>
      %49 = vector.broadcast %cst_17 : f32 to vector<256x128xf32>
      %50 = arith.select %48, %43, %49 : vector<256x128xi1>, vector<256x128xf32>
      %cst_18 = arith.constant dense<0.000000e+00> : vector<128xf32>
      %51 = vector.multi_reduction <add>, %50, %cst_18 [0] : vector<256x128xf32> to vector<128xf32>
      %52 = vector.shape_cast %51 : vector<128xf32> to vector<1x128xf32>
      %cst_19 = arith.constant 5.000000e-03 : f32
      %53 = vector.broadcast %cst_19 : f32 to vector<1x128xf32>
      %54 = arith.mulf %52, %53 : vector<1x128xf32>
      %55 = vector.broadcast %54 : vector<1x128xf32> to vector<256x128xf32>
      %56 = arith.subf %43, %55 : vector<256x128xf32>
      %cst_20 = arith.constant 0.000000e+00 : f32
      %57 = vector.shape_cast %46 : vector<256x1xi1> to vector<256x1xi1>
      %58 = vector.broadcast %57 : vector<256x1xi1> to vector<256x128xi1>
      %59 = vector.broadcast %cst_20 : f32 to vector<256x128xf32>
      %60 = arith.select %58, %56, %59 : vector<256x128xi1>, vector<256x128xf32>
      %61 = arith.mulf %60, %60 : vector<256x128xf32>
      %cst_21 = arith.constant dense<0.000000e+00> : vector<128xf32>
      %62 = vector.multi_reduction <add>, %61, %cst_21 [0] : vector<256x128xf32> to vector<128xf32>
      %63 = vector.shape_cast %62 : vector<128xf32> to vector<1x128xf32>
      %cst_22 = arith.constant 5.000000e-03 : f32
      %64 = vector.broadcast %cst_22 : f32 to vector<1x128xf32>
      %65 = arith.mulf %63, %64 : vector<1x128xf32>
      %c2 = arith.constant 2 : index
      %c0_23 = arith.constant 0 : index
      %66 = vector.load %arg3[%c2, %c0_23] : memref<16x128xf32, #tpu.memory_space<vmem>>, vector<1x128xf32>
      %c3 = arith.constant 3 : index
      %c0_24 = arith.constant 0 : index
      %67 = vector.load %arg3[%c3, %c0_24] : memref<16x128xf32, #tpu.memory_space<vmem>>, vector<1x128xf32>
      %68 = vector.broadcast %54 : vector<1x128xf32> to vector<256x128xf32>
      %69 = arith.subf %43, %68 : vector<256x128xf32>
      %cst_25 = arith.constant 9.99999974E-6 : f32
      %70 = vector.broadcast %cst_25 : f32 to vector<1x128xf32>
      %71 = arith.addf %65, %70 : vector<1x128xf32>
      %72 = math.rsqrt %71 : vector<1x128xf32>
      %73 = vector.broadcast %72 : vector<1x128xf32> to vector<256x128xf32>
      %74 = arith.mulf %69, %73 : vector<256x128xf32>
      %75 = vector.broadcast %66 : vector<1x128xf32> to vector<256x128xf32>
      %76 = arith.mulf %74, %75 : vector<256x128xf32>
      %77 = vector.broadcast %67 : vector<1x128xf32> to vector<256x128xf32>
      %78 = arith.addf %76, %77 : vector<256x128xf32>
      %c0_26 = arith.constant 0 : index
      %c0_27 = arith.constant 0 : index
      %79 = vector.load %arg4[%c0_26, %c0_27] : memref<256x128xf32, #tpu.memory_space<vmem>>, vector<256x128xf32>
      tpu.vector_store %arg4[%c0_26, %c0_27], %78 {strides = array<i32>} : memref<256x128xf32, #tpu.memory_space<vmem>>, vector<256x128xf32>,
    } else {
    }
    return
  }
  func.func @transform_0(%arg0: i32) -> (i32, i32) {
    %c0_i32 = arith.constant 0 : i32
    %c0_i32_0 = arith.constant 0 : i32
    return %arg0, %c0_i32 : i32, i32
  }
  func.func @transform_1(%arg0: i32) -> (i32, i32) {
    %c0_i32 = arith.constant 0 : i32
    %c0_i32_0 = arith.constant 0 : i32
    %c0_i32_1 = arith.constant 0 : i32
    return %c0_i32, %c0_i32_0 : i32, i32
  }
  func.func @transform_2(%arg0: i32) -> (i32, i32) {
    %c0_i32 = arith.constant 0 : i32
    %c0_i32_0 = arith.constant 0 : i32
    %c0_i32_1 = arith.constant 0 : i32
    return %c0_i32, %c0_i32_0 : i32, i32
  }
  func.func @transform_3(%arg0: i32) -> (i32, i32) {
    %c0_i32 = arith.constant 0 : i32
    %c0_i32_0 = arith.constant 0 : i32
    %c0_i32_1 = arith.constant 0 : i32
    return %c0_i32, %c0_i32_0 : i32, i32
  }
}

</mosaic_0001>

<bundles_post_ra>
// kernel: tpu_custom_call.1
= control target key start
LH: loop header
LB: loop body
LE: loop exit
PB: predicated region body
PF: predicated region fallthrough
CT: control target
= control target key end

     0   :  { %8 = vsyncpa [#allocation4], 0  ;;  %s3704_s12 = smov 0   ;;  %s5734_s0 = inlined_call_operand.vmem [shape: bf16[2048,32], index: 0, kind: input, shape index: {}]   ;;  %s5735_s1 = inlined_call_operand.vmem [shape: bf16[48,128], index: 1, kind: input, shape index: {}]   ;;  %s5736_s2 = inlined_call_operand.vmem [shape: f32[16,128], index: 2, kind: input, shape index: {}]   ;;  %s5737_s3 = inlined_call_operand.hbm [shape: f32[256,128], index: 3, kind: output, shape index: {}]  }
   0x1 LB: > { %s3710_s13 = sadd.s32 4294967295, %s3677_s12   ;;  %p3378_p0 = scmp.ge.s32.totalorder %s3677_s12, 1  ;;  %s3677_s12 = sphi %s3704_s12, %s14_s12  }
   0x2   : > { %p134_p1 = scmp.lt.s32.totalorder %s3677_s12, 5 }
   0x4   : > { %p135_p2 = pnand %p3378_p0, %p134_p1 }
   0x6   : > { %138 = sbr.rel (%p135_p2) target bundleno = 1130 (0x46a), region = 32 }
   0xd   : > { %v3602_v0 = vld [vmem:[%s5735_s1] sm:$0xff]   ;;  %s3718_s16 = sshll.u32 %s3710_s13, 6  ;;  %v3603_v1 = vld [vmem:[%s5735_s1 + $0x8] sm:$0xff]   ;;  %vm405_vm0 = vcmask 261120   ;;  %s3679_s24 = smov 112   ;;  %vm1819_vm1 = vcmask 130048  }
   0xe   : > { %p154_p3 = scmp.lt.s32.totalorder %s3718_s16, 255  ;;  %3501 = vmatprep.subr.bf16.mxu0 %v3602_v0  ;;  %3579 = vmatprep.subr.bf16.mxu1 %v3602_v0  ;;  %s3680_s25 = smov 96  }
   0xf   : > { %3502 = vmatpush3.bf16.msra.mxu0 %v3602_v0  ;;  %3581 = vmatpush3.bf16.msra.mxu1 %v3602_v0  ;;  %s2807_s11 = scalar_lea.vmem [#allocation2], %s3718_s16  ;;  %p3455_p4 = scmp.ne.s32.totalorder %s3710_s13, 3 }
  0x10   : > { %s155_s19 = scalar_select %p154_p3, %s3718_s16, 255  ;;  %3503 = vmatprep.subr.bf16.mxu0 %v3603_v1  ;;  %3580 = vmatprep.subr.bf16.mxu1 %v3603_v1 }
  0x12   : > { %s3380_s20 = sshll.u32 %s155_s19, 2 }
  0x13   : > { %s3728_s23 = scalar_lea.vmem %s5734_s0, %s3380_s20  ;;  %3504 = vmatpush3.bf16.msra.mxu0 %v3603_v1  ;;  %3582 = vmatpush3.bf16.msra.mxu1 %v3603_v1 }
  0x14   : > { %v3604_v2 = vld [vmem:[%s3728_s23] sm:$0xff]   ;;  %v3605_v3 = vld [vmem:[%s3728_s23 + $0x90] sm:$0xff]   ;;  %v3606_v4 = vld [vmem:[%s3728_s23 + $0x8] sm:$0xff]  }
  0x15   : > { %3505 = vmatprep.mubr.msk.bf16.mxu0 %vm405_vm0, %v3604_v2  ;;  %3541 = vmatprep.mubr.msk.bf16.mxu1 %vm405_vm0, %v3605_v3  ;;  %v3607_v5 = vld [vmem:[%s3728_s23 + $0x98] sm:$0xff]   ;;  %v3608_v6 = vld [vmem:[%s3728_s23 + $0xa0] sm:$0xff]   ;;  %v3610_v7 = vld [vmem:[%s3728_s23 + $0x10] sm:$0xff]  }
  0x16   : > { %3506 = vmatmul.mubr.msk.bf16.vlgmr.msra.gmra.mrb[0].mxu0 %vm405_vm0, %v3606_v4  ;;  %3542 = vmatmul.mubr.msk.bf16.vlgmr.msra.gmra.mrb[0].mxu1 %vm405_vm0, %v3607_v5  ;;  %v3609_v8 = vld [vmem:[%s3728_s23 + $0xa8] sm:$0xff]   ;;  %v3611_v9 = vld [vmem:[%s3728_s23 + $0x18] sm:$0xff]   ;;  %v3612_v10 = vld [vmem:[%s3728_s23 + $0x20] sm:$0xff]  }
  0x17   : > { %3545 = vmatprep.mubr.msk.bf16.mxu1 %vm405_vm0, %v3608_v6  ;;  %3509 = vmatprep.mubr.msk.bf16.mxu0 %vm405_vm0, %v3610_v7  ;;  %v3614_v11 = vld [vmem:[%s3728_s23 + $0xb0] sm:$0xff]   ;;  %v3613_v12 = vld [vmem:[%s3728_s23 + $0x28] sm:$0xff]   ;;  %v3615_v13 = vld [vmem:[%s3728_s23 + $0xb8] sm:$0xff]  }
  0x18   : > { %v3616_v14 = vld [vmem:[%s3728_s23 + $0x30] sm:$0xff]   ;;  %v3618_v15 = vld [vmem:[%s3728_s23 + $0xc0] sm:$0xff]   ;;  %v3617_v16 = vld [vmem:[%s3728_s23 + $0x38] sm:$0xff]  }
  0x19   : > { %v3619_v17 = vld [vmem:[%s3728_s23 + $0xc8] sm:$0xff]   ;;  %v3620_v18 = vld [vmem:[%s3728_s23 + $0x40] sm:$0xff]   ;;  %v3622_v19 = vld [vmem:[%s3728_s23 + $0xd0] sm:$0xff]  }
  0x1a   : > { %v3621_v20 = vld [vmem:[%s3728_s23 + $0x48] sm:$0xff]   ;;  %v3623_v21 = vld [vmem:[%s3728_s23 + $0xd8] sm:$0xff]   ;;  %v3626_v22 = vld [vmem:[%s3728_s23 + $0x50] sm:$0xff]  }
  0x1b   : > { %v3624_v23 = vld [vmem:[%s3728_s23 + $0xe0] sm:$0xff]   ;;  %v3627_v24 = vld [vmem:[%s3728_s23 + $0x58] sm:$0xff]   ;;  %v3625_v25 = vld [vmem:[%s3728_s23 + $0xe8] sm:$0xff]  }
  0x1c   : > { %v3628_v26 = vld [vmem:[%s3728_s23 + $0x60] sm:$0xff]   ;;  %v3630_v27 = vld [vmem:[%s3728_s23 + $0xf0] sm:$0xff]   ;;  %v3629_v28 = vld [vmem:[%s3728_s23 + $0x68] sm:$0xff]  }
  0x1d   : > { %v3631_v29 = vld [vmem:[%s3728_s23 + $0xf8] sm:$0xff]   ;;  %v3632_v30 = vld [vmem:[%s3728_s23 + $0x70] sm:$0xff]   ;;  %v3634_v32 = vld [vmem:[%s3728_s23 + $0x80] sm:$0xff]  }
  0x1e   : > { %3510 = vmatmul.mubr.msk.bf16.gmra.mrb[4].mxu0 %vm405_vm0, %v3611_v9  ;;  %3546 = vmatmul.mubr.msk.bf16.gmra.mrb[4].mxu1 %vm405_vm0, %v3609_v8  ;;  %v3633_v31 = vld [vmem:[%s3728_s23 + $0x78] sm:$0xff]   ;;  %v3635_v33 = vld [vmem:[%s3728_s23 + $0x88] sm:$0xff]  }
  0x1f   : > { %3513 = vmatprep.mubr.msk.bf16.mxu0 %vm405_vm0, %v3612_v10  ;;  %3549 = vmatprep.mubr.msk.bf16.mxu1 %vm405_vm0, %v3614_v11 }
  0x26   : > { %3514 = vmatmul.mubr.msk.bf16.gmra.mrb[8].mxu0 %vm405_vm0, %v3613_v12  ;;  %3550 = vmatmul.mubr.msk.bf16.gmra.mrb[8].mxu1 %vm405_vm0, %v3615_v13 }
  0x27   : > { %3517 = vmatprep.mubr.msk.bf16.mxu0 %vm405_vm0, %v3616_v14  ;;  %3553 = vmatprep.mubr.msk.bf16.mxu1 %vm405_vm0, %v3618_v15 }
  0x2e   : > { %3518 = vmatmul.mubr.msk.bf16.gmra.mrb[12].mxu0 %vm405_vm0, %v3617_v16  ;;  %3554 = vmatmul.mubr.msk.bf16.gmra.mrb[12].mxu1 %vm405_vm0, %v3619_v17 }
  0x2f   : > { %3521 = vmatprep.mubr.msk.bf16.mxu0 %vm405_vm0, %v3620_v18  ;;  %3557 = vmatprep.mubr.msk.bf16.mxu1 %vm405_vm0, %v3622_v19 }
  0x36   : > { %3522 = vmatmul.mubr.msk.bf16.gmra.mrb[16].mxu0 %vm405_vm0, %v3621_v20  ;;  %3558 = vmatmul.mubr.msk.bf16.gmra.mrb[16].mxu1 %vm405_vm0, %v3623_v21 }
  0x37   : > { %3525 = vmatprep.mubr.msk.bf16.mxu0 %vm405_vm0, %v3626_v22  ;;  %3561 = vmatprep.mubr.msk.bf16.mxu1 %vm405_vm0, %v3624_v23 }
  0x3e   : > { %3526 = vmatmul.mubr.msk.bf16.gmra.mrb[20].mxu0 %vm405_vm0, %v3627_v24  ;;  %3562 = vmatmul.mubr.msk.bf16.gmra.mrb[20].mxu1 %vm405_vm0, %v3625_v25 }
  0x3f   : > { %3529 = vmatprep.mubr.msk.bf16.mxu0 %vm405_vm0, %v3628_v26  ;;  %3565 = vmatprep.mubr.msk.bf16.mxu1 %vm405_vm0, %v3630_v27 }
  0x46   : > { %3530 = vmatmul.mubr.msk.bf16.gmra.mrb[24].mxu0 %vm405_vm0, %v3629_v28  ;;  %3566 = vmatmul.mubr.msk.bf16.gmra.mrb[24].mxu1 %vm405_vm0, %v3631_v29 }
  0x47   : > { %3533 = vmatprep.mubr.msk.bf16.mxu0 %vm405_vm0, %v3632_v30 }
  0x4e   : > { %3534 = vmatmul.mubr.msk.bf16.gmra.mrb[28].mxu0 %vm405_vm0, %v3633_v31  ;;  %v4031_v31 = vld [vmem:[%s5736_s2] ss:$0 sm:$0xff] }
  0x4f   : > { %3537 = vmatprep.mubr.msk.bf16.mxu0 %vm405_vm0, %v3634_v32 }
  0x56   : > { %3538 = vmatmul.mubr.msk.bf16.gmra.mrb[32].mxu0 %vm405_vm0, %v3635_v33 }
  0xe9   : > { %v3794_v34 = vpop.f32.mrb[0].mxu0  ;;  %v3796_v35 = vpop.f32.mrb[0].mxu1 }
  0xea   : > { %927 = vrot.lane.b32.xlu0 %v3794_v34, %s3679_s24  ;;  %v3800_v36 = vpop.f32.mrb[1].mxu0  ;;  %v3802_v37 = vpop.f32.mrb[1].mxu1 }
  0xeb   : > { %v3804_v38 = vpop.f32.mrb[2].mxu0  ;;  %v3806_v39 = vpop.f32.mrb[2].mxu1 }
  0xec   : > { %v3808_v40 = vpop.f32.mrb[3].mxu0  ;;  %v3810_v41 = vpop.f32.mrb[3].mxu1 }
  0xed   : > { %1245 = vrot.lane.b32.xlu1 %v3808_v40, %s3680_s25 }
  0xee   : > { %1247 = vrot.lane.b32.xlu0 %v3794_v34, %s3680_s25 }
  0xf1   : > { %v3816_v42 = vpop.f32.mrb[4].mxu0  ;;  %v3818_v43 = vpop.f32.mrb[4].mxu1 }
  0xf2   : > { %999 = vrot.lane.b32.xlu0 %v3796_v35, %s3679_s24  ;;  %v3822_v44 = vpop.f32.mrb[5].mxu0  ;;  %v3824_v45 = vpop.f32.mrb[5].mxu1  ;;  %1007 = vrot.lane.b32.xlu1 %v3818_v43, %s3679_s24 }
  0xf3   : > { %v3828_v46 = vpop.f32.mrb[6].mxu0  ;;  %v3830_v47 = vpop.f32.mrb[6].mxu1 }
  0xf4   : > { %v3832_v48 = vpop.f32.mrb[7].mxu0  ;;  %v3834_v49 = vpop.f32.mrb[7].mxu1 }
  0xf6   : > { %1319 = vrot.lane.b32.xlu0 %v3796_v35, %s3680_s25  ;;  %1327 = vrot.lane.b32.xlu1 %v3818_v43, %s3680_s25 }
  0xf9   : > { %v3840_v50 = vpop.f32.mrb[8].mxu0  ;;  %v3846_v52 = vpop.f32.mrb[8].mxu1 }
  0xfa   : > { %923 = vrot.lane.b32.xlu0 %v3800_v36, %s3679_s24  ;;  %v3844_v51 = vpop.f32.mrb[9].mxu0  ;;  %1009 = vrot.lane.b32.xlu1 %v3830_v47, %s3679_s24  ;;  %v3852_v54 = vpop.f32.mrb[9].mxu1 }
  0xfb   : > { %v3850_v53 = vpop.f32.mrb[10].mxu0  ;;  %v3856_v56 = vpop.f32.mrb[10].mxu1 }
  0xfc   : > { %v3854_v55 = vpop.f32.mrb[11].mxu0  ;;  %v3858_v57 = vpop.f32.mrb[11].mxu1 }
  0xfe   : > { %1243 = vrot.lane.b32.xlu0 %v3800_v36, %s3680_s25  ;;  %1329 = vrot.lane.b32.xlu1 %v3830_v47, %s3680_s25 }
 0x101   : > { %v3864_v58 = vpop.f32.mrb[12].mxu0  ;;  %v3870_v60 = vpop.f32.mrb[12].mxu1 }
 0x102   : > { %995 = vrot.lane.b32.xlu0 %v3802_v37, %s3679_s24  ;;  %v3868_v59 = vpop.f32.mrb[13].mxu0  ;;  %1005 = vrot.lane.b32.xlu1 %v3834_v49, %s3679_s24  ;;  %v3876_v62 = vpop.f32.mrb[13].mxu1 }
 0x103   : > { %v3874_v61 = vpop.f32.mrb[14].mxu0  ;;  %v3880_v0 = vpop.f32.mrb[14].mxu1 }
 0x104   : > { %v3878_v63 = vpop.f32.mrb[15].mxu0  ;;  %v3882_v1 = vpop.f32.mrb[15].mxu1 }
 0x106   : > { %1315 = vrot.lane.b32.xlu0 %v3802_v37, %s3680_s25  ;;  %1325 = vrot.lane.b32.xlu1 %v3834_v49, %s3680_s25 }
 0x109   : > { %v3888_v2 = vpop.f32.mrb[16].mxu0  ;;  %v3894_v4 = vpop.f32.mrb[16].mxu1 }
 0x10a   : > { %929 = vrot.lane.b32.xlu0 %v3804_v38, %s3679_s24  ;;  %v3892_v3 = vpop.f32.mrb[17].mxu0  ;;  %5755 = vst [vmem:[#allocation6_spill] sm:$0xff] %v3894_v4  ;;  %943 = vrot.lane.b32.xlu1 %v3840_v50, %s3679_s24  ;;  %v3900_v6 = vpop.f32.mrb[17].mxu1 }
 0x10b   : > { %v3898_v5 = vpop.f32.mrb[18].mxu0  ;;  %v3904_v8 = vpop.f32.mrb[18].mxu1 }
 0x10c   : > { %v3902_v7 = vpop.f32.mrb[19].mxu0  ;;  %v3906_v9 = vpop.f32.mrb[19].mxu1 }
 0x10e   : > { %1249 = vrot.lane.b32.xlu0 %v3804_v38, %s3680_s25  ;;  %1263 = vrot.lane.b32.xlu1 %v3840_v50, %s3680_s25 }
 0x111   : > { %v3912_v10 = vpop.f32.mrb[20].mxu0  ;;  %v3916_v11 = vpop.f32.mrb[20].mxu1 }
 0x112   : > { %1001 = vrot.lane.b32.xlu0 %v3806_v39, %s3679_s24  ;;  %v3918_v12 = vpop.f32.mrb[21].mxu0  ;;  %1015 = vrot.lane.b32.xlu1 %v3846_v52, %s3679_s24  ;;  %v3922_v13 = vpop.f32.mrb[21].mxu1 }
 0x113   : > { %v3924_v14 = vpop.f32.mrb[22].mxu0  ;;  %v3926_v15 = vpop.f32.mrb[22].mxu1 }
 0x114   : > { %v3928_v16 = vpop.f32.mrb[23].mxu0  ;;  %v3930_v17 = vpop.f32.mrb[23].mxu1 }
 0x116   : > { %1321 = vrot.lane.b32.xlu0 %v3806_v39, %s3680_s25  ;;  %1335 = vrot.lane.b32.xlu1 %v3846_v52, %s3680_s25 }
 0x119   : > { %v3936_v18 = vpop.f32.mrb[24].mxu0  ;;  %v3948_v22 = vpop.f32.mrb[24].mxu1 }
 0x11a   : > { %925 = vrot.lane.b32.xlu0 %v3808_v40, %s3679_s24  ;;  %v3940_v19 = vpop.f32.mrb[25].mxu0  ;;  %939 = vrot.lane.b32.xlu1 %v3844_v51, %s3679_s24  ;;  %v3952_v23 = vpop.f32.mrb[25].mxu1 }
 0x11b   : > { %5756 = vst [vmem:[#allocation7_spill] sm:$0xff] %v3940_v19  ;;  %v3944_v20 = vpop.f32.mrb[26].mxu0  ;;  %v3956_v24 = vpop.f32.mrb[26].mxu1 }
 0x11c   : > { %v3946_v21 = vpop.f32.mrb[27].mxu0  ;;  %5757 = vst [vmem:[#allocation8_spill] sm:$0xff] %v3956_v24  ;;  %v3958_v25 = vpop.f32.mrb[27].mxu1  ;;  %v4051_v24 = vadd.f32 %v4031_v31, %v3800_v36 }
 0x11d   : > { %5758 = vst [vmem:[#allocation9_spill] sm:$0xff] %v3958_v25  ;;  %v4047_v25 = vadd.f32 %v4031_v31, %v3802_v37  ;;  %v4069_v37 = vadd.f32 %v4031_v31, %v3810_v41 }
 0x11e   : > { %997 = vrot.lane.b32.xlu0 %v3810_v41, %s3679_s24  ;;  %1011 = vrot.lane.b32.xlu1 %v3852_v54, %s3679_s24 }
 0x11f   : > { %5767 = vst [vmem:[#allocation18_spill] sm:$0xff] %v4069_v37 }
 0x121   : > { %v4000_v26 = vpop.f32.mrb[28].mxu0 }
 0x122   : > { %1317 = vrot.lane.b32.xlu0 %v3810_v41, %s3680_s25  ;;  %1331 = vrot.lane.b32.xlu1 %v3852_v54, %s3680_s25  ;;  %5759 = vst [vmem:[#allocation10_spill] sm:$0xff] %v4000_v26  ;;  %v4002_v27 = vpop.f32.mrb[29].mxu0  ;;  %v833_v26 = vadd.f32 %v3796_v35, %v4031_v31  ;;  %v4065_v35 = vadd.f32 %v4031_v31, %v3808_v40 }
 0x123   : > { %5760 = vst [vmem:[#allocation11_spill] sm:$0xff] %v4002_v27  ;;  %v4006_v28 = vpop.f32.mrb[30].mxu0  ;;  %v4083_v40 = vadd.f32 %v3816_v42, %v4031_v31  ;;  %v4087_v41 = vadd.f32 %v4031_v31, %v3822_v44 }
 0x124   : > { %5761 = vst [vmem:[#allocation12_spill] sm:$0xff] %v4006_v28  ;;  %v4010_v29 = vpop.f32.mrb[31].mxu0  ;;  %5766 = vst [vmem:[#allocation17_spill] sm:$0xff] %v4065_v35  ;;  %v4091_v35 = vadd.f32 %v3830_v47, %v4031_v31  ;;  %v4111_v47 = vadd.f32 %v4031_v31, %v3844_v51 }
 0x125   : > { %5762 = vst [vmem:[#allocation13_spill] sm:$0xff] %v4010_v29 }
 0x126   : > { %935 = vrot.lane.b32.xlu0 %v3816_v42, %s3679_s24  ;;  %945 = vrot.lane.b32.xlu1 %v3850_v53, %s3679_s24 }
 0x129   : > { %v4024_v30 = vpop.f32.mrb[32].mxu0 }
 0x12a   : > { %1255 = vrot.lane.b32.xlu0 %v3816_v42, %s3680_s25  ;;  %1265 = vrot.lane.b32.xlu1 %v3850_v53, %s3680_s25  ;;  %5763 = vst [vmem:[#allocation14_spill] sm:$0xff] %v4024_v30  ;;  %v4035_v32 = vpop.f32.mrb[33].mxu0  ;;  %v797_v30 = vadd.f32 %v3794_v34, %v4031_v31  ;;  %v4061_v34 = vadd.f32 %v3806_v39, %v4031_v31 }
 0x12b   : > { %v4037_v29 = vpop.f32.mrb[34].mxu0  ;;  %v4079_v39 = vadd.f32 %v4031_v31, %v3824_v45  ;;  %v4103_v42 = vadd.f32 %v4031_v31, %v3832_v48 }
 0x12c   : > { %5764 = vst [vmem:[#allocation15_spill] sm:$0xff] %v4037_v29  ;;  %v4039_v27 = vpop.f32.mrb[35].mxu0  ;;  %5765 = vst [vmem:[#allocation16_spill] sm:$0xff] %v4061_v34 }
 0x12d   : > { %5768 = vst [vmem:[#allocation19_spill] sm:$0xff] %v4079_v39  ;;  %v4099_v39 = vadd.f32 %v4031_v31, %v3834_v49  ;;  %5769 = vst [vmem:[#allocation20_spill] sm:$0xff] %v4103_v42  ;;  %v4121_v49 = vadd.f32 %v3846_v52, %v4031_v31  ;;  %v4139_v52 = vadd.f32 %v4031_v31, %v3858_v57 }
 0x12e   : > { %931 = vrot.lane.b32.xlu0 %v3822_v44, %s3679_s24  ;;  %1017 = vrot.lane.b32.xlu1 %v3856_v56, %s3679_s24 }
 0x132   : > { %1251 = vrot.lane.b32.xlu0 %v3822_v44, %s3680_s25  ;;  %1337 = vrot.lane.b32.xlu1 %v3856_v56, %s3680_s25  ;;  %v4107_v44 = vadd.f32 %v3840_v50, %v4031_v31 }
 0x136   : > { %1003 = vrot.lane.b32.xlu0 %v3824_v45, %s3679_s24  ;;  %941 = vrot.lane.b32.xlu1 %v3854_v55, %s3679_s24 }
 0x13a   : > { %1323 = vrot.lane.b32.xlu0 %v3824_v45, %s3680_s25  ;;  %1261 = vrot.lane.b32.xlu1 %v3854_v55, %s3680_s25 }
 0x13e   : > { %937 = vrot.lane.b32.xlu0 %v3828_v46, %s3679_s24  ;;  %1013 = vrot.lane.b32.xlu1 %v3858_v57, %s3679_s24 }
 0x142   : > { %1257 = vrot.lane.b32.xlu0 %v3828_v46, %s3680_s25  ;;  %1333 = vrot.lane.b32.xlu1 %v3858_v57, %s3680_s25  ;;  %v4156_v57 = vadd.f32 %v3874_v61, %v4031_v31 }
 0x144   : > { %5772 = vst [vmem:[#allocation23_spill] sm:$0xff] %v4156_v57 }
 0x146   : > { %933 = vrot.lane.b32.xlu0 %v3832_v48, %s3679_s24  ;;  %951 = vrot.lane.b32.xlu1 %v3864_v58, %s3679_s24 }
 0x14a   : > { %1253 = vrot.lane.b32.xlu0 %v3832_v48, %s3680_s25  ;;  %1271 = vrot.lane.b32.xlu1 %v3864_v58, %s3680_s25  ;;  %v4125_v48 = vadd.f32 %v4031_v31, %v3852_v54  ;;  %v4143_v54 = vadd.f32 %v3864_v58, %v4031_v31  ;;  %v4160_v58 = vadd.f32 %v3870_v60, %v4031_v31 }
 0x14c   : > { %5770 = vst [vmem:[#allocation21_spill] sm:$0xff] %v4143_v54  ;;  %5773 = vst [vmem:[#allocation24_spill] sm:$0xff] %v4160_v58 }
 0x14e   : > { %1259 = vrot.lane.b32.xlu0 %v3844_v51, %s3680_s25  ;;  %947 = vrot.lane.b32.xlu1 %v3868_v59, %s3679_s24  ;;  %v4131_v51 = vadd.f32 %v4031_v31, %v3854_v55  ;;  %v4152_v55 = vld [vmem:[%s5736_s2 + $0x8] sm:$0xff] }
 0x152   : > { %1023 = vrot.lane.b32.xlu0 %v3870_v60, %s3679_s24  ;;  %1267 = vrot.lane.b32.xlu1 %v3868_v59, %s3680_s25 }
 0x156   : > { %1343 = vrot.lane.b32.xlu0 %v3870_v60, %s3680_s25  ;;  %953 = vrot.lane.b32.xlu1 %v3874_v61, %s3679_s24  ;;  %v4178_v60 = vadd.f32 %v4031_v31, %v3882_v1 }
 0x158   : > { %5777 = vst [vmem:[#allocation28_spill] sm:$0xff] %v4178_v60 }
 0x15a   : > { %1019 = vrot.lane.b32.xlu0 %v3876_v62, %s3679_s24  ;;  %1273 = vrot.lane.b32.xlu1 %v3874_v61, %s3680_s25  ;;  %v4174_v61 = vadd.f32 %v3880_v0, %v4031_v31 }
 0x15c   : > { %v928_v33 = vpop.permute.xlu0 %927  ;;  %5776 = vst [vmem:[#allocation27_spill] sm:$0xff] %v4174_v61  ;;  %v4197_v61 = vadd.f32 %v3898_v5, %v4031_v31 }
 0x15d   : > { %v1117_v28 = vrot.slane %v928_v33, 1  ;;  %v4057_v33 = vadd.f32 %v3804_v38, %v4031_v31  ;;  %v837_v38 = vadd.f32 %v3818_v43, %v4031_v31  ;;  %v4095_v43 = vadd.f32 %v3828_v46, %v4031_v31 }
 0x15e   : > { %1339 = vrot.lane.b32.xlu0 %v3876_v62, %s3680_s25  ;;  %949 = vrot.lane.b32.xlu1 %v3878_v63, %s3679_s24  ;;  %v4117_v46 = vadd.f32 %v3850_v53, %v4031_v31  ;;  %v4135_v53 = vadd.f32 %v3856_v56, %v4031_v31  ;;  %5781 = vst [vmem:[#allocation32_spill] sm:$0xff] %v4197_v61 }
 0x15f   : > { %v4073_v36 = vpop.permute.xlu1 %1245  ;;  %v1181_v34 = vadd.f32 %v1117_v28, %v797_v30  ;;  %v4147_v30 = vadd.f32 %v4031_v31, %v3868_v59  ;;  %v4164_v59 = vadd.f32 %v4031_v31, %v3876_v62  ;;  %v4214_v61 = vadd.f32 %v3904_v8, %v4031_v31 }
 0x160   : > { %v1248_v37 = vpop.permute.xlu0 %1247 }
 0x161   : > { %v1437_v45 = vrot.slane %v1248_v37, 2  ;;  %5771 = vst [vmem:[#allocation22_spill] sm:$0xff] %v4147_v30  ;;  %5774 = vst [vmem:[#allocation25_spill] sm:$0xff] %v4164_v59 }
 0x162   : > { %1025 = vrot.lane.b32.xlu0 %v3880_v0, %s3679_s24  ;;  %1269 = vrot.lane.b32.xlu1 %v3878_v63, %s3680_s25  ;;  %5784 = vst [vmem:[#allocation35_spill] sm:$0xff] %v4214_v61 }
 0x163   : > { %v1501_v50 = vadd.f32 %v1437_v45, %v1181_v34 }
 0x164   : > { %v1000_v28 = vpop.permute.xlu0 %999  ;;  %v1008_v37 = vpop.permute.xlu1 %1007 }
 0x165   : > { %vm1565_vm2 = vcmp.gt.f32.partialorder %v1501_v50, 0.0  ;;  %v1629_v56 = vmul.f32 0.01, %v1501_v50  ;;  %v1153_v34 = vrot.slane %v1000_v28, 1  ;;  %v1157_v45 = vrot.slane %v1008_v37, 1 }
 0x166   : > { %1345 = vrot.lane.b32.xlu0 %v3880_v0, %s3680_s25  ;;  %v4170_v28 = vadd.f32 %v4031_v31, %v3878_v63  ;;  %1021 = vrot.lane.b32.xlu1 %v3882_v1, %s3679_s24  ;;  %v4185_v37 = vadd.f32 %v3888_v2, %v4031_v31  ;;  %v4193_v0 = vadd.f32 %v3894_v4, %v4031_v31 }
 0x167   : > { %v1693_v57 = vsel %vm1565_vm2, %v1501_v50, %v1629_v56  ;;  %v1217_v60 = vadd.f32 %v1153_v34, %v833_v26  ;;  %v1221_v59 = vadd.f32 %v1157_v45, %v837_v38  ;;  %v4208_v26 = vadd.f32 %v4031_v31, %v3902_v7 }
 0x168   : > { %5775 = vst [vmem:[#allocation26_spill] sm:$0xff] %v4170_v28  ;;  %v1757_v62 = vadd.f32 %v1693_v57, %v4152_v55  ;;  %5778 = vst [vmem:[#allocation29_spill] sm:$0xff] %v4185_v37  ;;  %v1320_v63 = vpop.permute.xlu0 %1319  ;;  %v4189_v28 = vadd.f32 %v4031_v31, %v3892_v3  ;;  %v1328_v56 = vpop.permute.xlu1 %1327  ;;  %v4201_v57 = vadd.f32 %v4031_v31, %v3900_v6 }
 0x169   : > { %5780 = vst [vmem:[#allocation31_spill] sm:$0xff] %v4193_v0  ;;  %v1473_v50 = vrot.slane %v1320_v63, 2  ;;  %v1477_v58 = vrot.slane %v1328_v56, 2  ;;  %5783 = vst [vmem:[#allocation34_spill] sm:$0xff] %v4208_v26  ;;  %v4218_v38 = vadd.f32 %v4031_v31, %v3906_v9  ;;  %v4222_v56 = vadd.f32 %v3916_v11, %v4031_v31 }
 0x16a   : > { %5779 = vst [vmem:[#allocation30_spill] sm:$0xff] %v4189_v28  ;;  %5782 = vst [vmem:[#allocation33_spill] sm:$0xff] %v4201_v57  ;;  %v1834_v37 = vsel %vm1819_vm1, %v1757_v62, -inf  ;;  %959 = vrot.lane.b32.xlu0 %v3888_v2, %s3679_s24  ;;  %1341 = vrot.lane.b32.xlu1 %v3882_v1, %s3680_s25  ;;  %v4230_v1 = vadd.f32 %v4031_v31, %v3918_v12 }
 0x16b   : > { %v1835_v34 = vrot.slane %v1834_v37, 4  ;;  %v1537_v63 = vadd.f32 %v1473_v50, %v1217_v60  ;;  %5785 = vst [vmem:[#allocation36_spill] sm:$0xff] %v4218_v38  ;;  %v1541_v45 = vadd.f32 %v1477_v58, %v1221_v59  ;;  %5786 = vst [vmem:[#allocation37_spill] sm:$0xff] %v4222_v56  ;;  %v4226_v60 = vadd.f32 %v3912_v10, %v4031_v31 }
 0x16c   : > { %v924_v62 = vpop.permute.xlu0 %923  ;;  %5788 = vst [vmem:[#allocation39_spill] sm:$0xff] %v4230_v1  ;;  %v1010_v28 = vpop.permute.xlu1 %1009  ;;  %v4236_v38 = vadd.f32 %v4031_v31, %v3922_v13 }
 0x16d   : > { %5787 = vst [vmem:[#allocation38_spill] sm:$0xff] %v4226_v60  ;;  %v1836_v50 = vmax.f32 %v1834_v37, %v1835_v34  ;;  %vm1601_vm3 = vcmp.gt.f32.partialorder %v1537_v63, 0.0  ;;  %v1665_v61 = vmul.f32 0.01, %v1537_v63  ;;  %v1115_v57 = vrot.slane %v924_v62, 1 }
 0x16e   : > { %vm1605_vm4 = vcmp.gt.f32.partialorder %v1541_v45, 0.0  ;;  %v1669_v58 = vmul.f32 0.01, %v1541_v45  ;;  %v1158_v59 = vrot.slane %v1010_v28, 1  ;;  %1279 = vrot.lane.b32.xlu0 %v3888_v2, %s3680_s25  ;;  %5789 = vst [vmem:[#allocation40_spill] sm:$0xff] %v4236_v38  ;;  %957 = vrot.lane.b32.xlu1 %v3902_v7, %s3679_s24  ;;  %v4242_v37 = vadd.f32 %v3926_v15, %v4031_v31 }
 0x16f   : > { %v1837_v60 = vrot.slane %v1836_v50, 2  ;;  %v1729_v56 = vsel %vm1601_vm3, %v1537_v63, %v1665_v61  ;;  %v4246_v34 = vadd.f32 %v3924_v14, %v4031_v31  ;;  %v4251_v38 = vadd.f32 %v4031_v31, %v3930_v17 }
 0x170   : > { %5790 = vst [vmem:[#allocation41_spill] sm:$0xff] %v4242_v37  ;;  %v1793_v28 = vadd.f32 %v1729_v56, %v4152_v55  ;;  %v1733_v2 = vsel %vm1605_vm4, %v1541_v45, %v1669_v58  ;;  %v1244_v62 = vpop.permute.xlu0 %1243  ;;  %v4255_v61 = vadd.f32 %v4031_v31, %v3928_v16  ;;  %v1179_v37 = vadd.f32 %v1115_v57, %v4051_v24  ;;  %v1330_v26 = vpop.permute.xlu1 %1329 }
 0x171   : > { %5791 = vst [vmem:[#allocation42_spill] sm:$0xff] %v4246_v34  ;;  %5792 = vst [vmem:[#allocation43_spill] sm:$0xff] %v4251_v38  ;;  %v1838_v63 = vmax.f32 %v1836_v50, %v1837_v60  ;;  %v1797_v1 = vadd.f32 %v1733_v2, %v4152_v55  ;;  %v1435_v0 = vrot.slane %v1244_v62, 2  ;;  %v1222_v45 = vadd.f32 %v1158_v59, %v4091_v35  ;;  %v5802_v38 = vld [vmem:[#allocation9_spill] sm:$0xff] }
 0x172   : > { %5793 = vst [vmem:[#allocation44_spill] sm:$0xff] %v4255_v61  ;;  %v2086_v34 = vsel %vm1819_vm1, %v1793_v28, -inf  ;;  %v1478_v56 = vrot.slane %v1330_v26, 2  ;;  %1031 = vrot.lane.b32.xlu0 %v3894_v4, %s3679_s24  ;;  %v4265_v58 = vadd.f32 %v3936_v18, %v4031_v31  ;;  %1277 = vrot.lane.b32.xlu1 %v3902_v7, %s3680_s25  ;;  %v4272_v24 = vadd.f32 %v4031_v31, %v3940_v19 }
 0x173   : > { %v1839_v61 = vrot.slane %v1838_v63, 1  ;;  %v2114_v60 = vsel %vm1819_vm1, %v1797_v1, -inf  ;;  %v1499_v50 = vadd.f32 %v1435_v0, %v1179_v37  ;;  %v4276_v59 = vadd.f32 %v3944_v20, %v4031_v31 }
 0x174   : > { %5794 = vst [vmem:[#allocation45_spill] sm:$0xff] %v4265_v58  ;;  %5795 = vst [vmem:[#allocation46_spill] sm:$0xff] %v4272_v24  ;;  %v2115_v35 = vrot.slane %v2114_v60, 4  ;;  %v1542_v57 = vadd.f32 %v1478_v56, %v1222_v45  ;;  %v996_v26 = vpop.permute.xlu0 %995  ;;  %v4280_v28 = vadd.f32 %v4031_v31, %v3946_v21  ;;  %v2087_v1 = vrot.slane %v2086_v34, 4  ;;  %v1006_v37 = vpop.permute.xlu1 %1005 }
 0x175   : > { %5796 = vst [vmem:[#allocation47_spill] sm:$0xff] %v4276_v59  ;;  %vm1563_vm5 = vcmp.gt.f32.partialorder %v1499_v50, 0.0  ;;  %v1627_v0 = vmul.f32 0.01, %v1499_v50  ;;  %v4284_v7 = vadd.f32 %v3948_v22, %v4031_v31  ;;  %v1151_v45 = vrot.slane %v996_v26, 1  ;;  %v5800_v59 = vld [vmem:[#allocation8_spill] sm:$0xff] }
 0x176   : > { %5797 = vst [vmem:[#allocation48_spill] sm:$0xff] %v4280_v28  ;;  %v2116_v2 = vmax.f32 %v2114_v60, %v2115_v35  ;;  %vm1606_vm6 = vcmp.gt.f32.partialorder %v1542_v57, 0.0  ;;  %v1670_v62 = vmul.f32 0.01, %v1542_v57  ;;  %955 = vrot.lane.b32.xlu0 %v3892_v3, %s3679_s24  ;;  %v1840_v56 = vmax.f32 %v1838_v63, %v1839_v61  ;;  %1039 = vrot.lane.b32.xlu1 %v3916_v11, %s3679_s24 }
 0x177   : > { %5798 = vst [vmem:[#allocation49_spill] sm:$0xff] %v4284_v7  ;;  %v1691_v24 = vsel %vm1563_vm5, %v1499_v50, %v1627_v0  ;;  %v4292_v28 = vadd.f32 %v4031_v31, %v3952_v23  ;;  %v4296_v58 = vadd.f32 %v5800_v59, %v4031_v31  ;;  %v4301_v61 = vadd.f32 %v4031_v31, %v5802_v38 }
 0x178   : > { %v2117_v60 = vrot.slane %v2116_v2, 2  ;;  %v1755_v35 = vadd.f32 %v1691_v24, %v4152_v55  ;;  %v1734_v26 = vsel %vm1606_vm6, %v1542_v57, %v1670_v62  ;;  %v1316_v7 = vpop.permute.xlu0 %1315  ;;  %v2088_v63 = vmax.f32 %v2086_v34, %v2087_v1  ;;  %v1326_v4 = vpop.permute.xlu1 %1325  ;;  %v5806_v1 = vld [vmem:[#allocation11_spill] sm:$0xff] }
 0x179   : > { %5799 = vst [vmem:[#allocation50_spill] sm:$0xff] %v4292_v28  ;;  %5801 = vst [vmem:[#allocation8_spill] sm:$0xff] %v4296_v58  ;;  %v1798_v50 = vadd.f32 %v1734_v26, %v4152_v55  ;;  %v1156_v0 = vrot.slane %v1006_v37, 1  ;;  %v5804_v28 = vld [vmem:[#allocation10_spill] sm:$0xff]  ;;  %v1215_v24 = vadd.f32 %v1151_v45, %v4047_v25  ;;  %v1471_v57 = vrot.slane %v1316_v7, 2 }
 0x17a   : > { %5803 = vst [vmem:[#allocation9_spill] sm:$0xff] %v4301_v61  ;;  %v4306_v30 = vadd.f32 %v5804_v28, %v4031_v31  ;;  %v2118_v54 = vmax.f32 %v2116_v2, %v2117_v60  ;;  %v1820_v58 = vsel %vm1819_vm1, %v1755_v35, -inf  ;;  %1275 = vrot.lane.b32.xlu0 %v3892_v3, %s3680_s25  ;;  %vm2270_vm7 = vcmp.gt.f32.partialorder %v1840_v56, 0.0  ;;  %1359 = vrot.lane.b32.xlu1 %v3916_v11, %s3680_s25 }
 0x17b   : > { %v1821_v62 = vrot.slane %v1820_v58, 4  ;;  %v2121_v34 = vsel %vm1819_vm1, %v1798_v50, -inf  ;;  %v4317_v37 = vadd.f32 %v4031_v31, %v5806_v1  ;;  %v2334_v2 = vmul.f32 0.01, %v1840_v56 }
 0x17c   : > { %5805 = vst [vmem:[#allocation10_spill] sm:$0xff] %v4306_v30  ;;  %v2119_v60 = vrot.slane %v2118_v54, 1  ;;  %v2122_v35 = vrot.slane %v2121_v34, 4  ;;  %v1535_v26 = vadd.f32 %v1471_v57, %v1215_v24  ;;  %v930_v25 = vpop.permute.xlu0 %929  ;;  %v2089_v7 = vrot.slane %v2088_v63, 2  ;;  %v944_v61 = vpop.permute.xlu1 %943  ;;  %v5808_v24 = vld [vmem:[#allocation12_spill] sm:$0xff] }
 0x17d   : > { %5807 = vst [vmem:[#allocation11_spill] sm:$0xff] %v4317_v37  ;;  %v1822_v45 = vmax.f32 %v1820_v58, %v1821_v62  ;;  %v1220_v3 = vadd.f32 %v1156_v0, %v4099_v39  ;;  %v1476_v30 = vrot.slane %v1326_v4, 2  ;;  %v1118_v19 = vrot.slane %v930_v25, 1  ;;  %v5810_v58 = vld [vmem:[#allocation13_spill] sm:$0xff] }
 0x17e   : > { %v2123_v42 = vmax.f32 %v2121_v34, %v2122_v35  ;;  %vm1599_vm8 = vcmp.gt.f32.partialorder %v1535_v26, 0.0  ;;  %v1663_v50 = vmul.f32 0.01, %v1535_v26  ;;  %1027 = vrot.lane.b32.xlu0 %v3900_v6, %s3679_s24  ;;  %v2120_v11 = vmax.f32 %v2118_v54, %v2119_v60  ;;  %1041 = vrot.lane.b32.xlu1 %v3926_v15, %s3679_s24  ;;  %v5812_v35 = vld [vmem:[#allocation14_spill] sm:$0xff] }
 0x17f   : > { %v1540_v37 = vadd.f32 %v1476_v30, %v1220_v3  ;;  %v4326_v57 = vadd.f32 %v5808_v24, %v4031_v31  ;;  %v4330_v4 = vadd.f32 %v4031_v31, %v5810_v58  ;;  %v1823_v39 = vrot.slane %v1822_v45, 2 }
 0x180   : > { %v2124_v0 = vrot.slane %v2123_v42, 2  ;;  %v1727_v62 = vsel %vm1599_vm8, %v1535_v26, %v1663_v50  ;;  %v1250_v34 = vpop.permute.xlu0 %1249  ;;  %v4334_v25 = vadd.f32 %v5812_v35, %v4031_v31  ;;  %v2398_v54 = vsel %vm2270_vm7, %v1840_v56, %v2334_v2  ;;  %v1264_v3 = vpop.permute.xlu1 %1263 }
 0x181   : > { %5809 = vst [vmem:[#allocation51_spill] sm:$0xff] %v4326_v57  ;;  %5811 = vst [vmem:[#allocation52_spill] sm:$0xff] %v4330_v4  ;;  %v1791_v30 = vadd.f32 %v1727_v62, %v4152_v55  ;;  %vm1604_vm9 = vcmp.gt.f32.partialorder %v1540_v37, 0.0  ;;  %v1668_v60 = vmul.f32 0.01, %v1540_v37  ;;  %v2090_v57 = vmax.f32 %v2088_v63, %v2089_v7 }
 0x182   : > { %5813 = vst [vmem:[#allocation53_spill] sm:$0xff] %v4334_v25  ;;  %v1182_v24 = vadd.f32 %v1118_v19, %v4057_v33  ;;  %v1125_v58 = vrot.slane %v944_v61, 1  ;;  %v1438_v4 = vrot.slane %v1250_v34, 2  ;;  %1347 = vrot.lane.b32.xlu0 %v3900_v6, %s3680_s25  ;;  %v2374_v26 = vmul.f32 0.01, %v2120_v11  ;;  %1361 = vrot.lane.b32.xlu1 %v3926_v15, %s3680_s25 }
 0x183   : > { %v2072_v50 = vsel %vm1819_vm1, %v1791_v30, -inf  ;;  %v1732_v35 = vsel %vm1604_vm9, %v1540_v37, %v1668_v60  ;;  %v4346_v56 = vadd.f32 %v4031_v31, %v4035_v32  ;;  %v1824_v2 = vmax.f32 %v1822_v45, %v1823_v39 }
 0x184   : > { %v2125_v63 = vmax.f32 %v2123_v42, %v2124_v0  ;;  %v1796_v19 = vadd.f32 %v1732_v35, %v4152_v55  ;;  %v1502_v33 = vadd.f32 %v1438_v4, %v1182_v24  ;;  %v1002_v61 = vpop.permute.xlu0 %1001  ;;  %v2462_v7 = vpack.c.bf16 %v2398_v54, %v2398_v54  ;;  %v1016_v34 = vpop.permute.xlu1 %1015 }
 0x185   : > { %5814 = vst [vmem:[#allocation54_spill] sm:$0xff] %v4346_v56  ;;  %vm2310_vm10 = vcmp.gt.f32.partialorder %v2120_v11, 0.0  ;;  %v2073_v6 = vrot.slane %v2072_v50, 4  ;;  %v1445_v62 = vrot.slane %v1264_v3, 2  ;;  %v2091_v30 = vrot.slane %v2090_v57, 1 }
 0x186   : > { %v2107_v37 = vsel %vm1819_vm1, %v1796_v19, -inf  ;;  %v1189_v15 = vadd.f32 %v1125_v58, %v4107_v44  ;;  %vm1566_vm11 = vcmp.gt.f32.partialorder %v1502_v33, 0.0  ;;  %961 = vrot.lane.b32.xlu0 %v3898_v5, %s3679_s24  ;;  %v1630_v42 = vmul.f32 0.01, %v1502_v33  ;;  %1037 = vrot.lane.b32.xlu1 %v3930_v17, %s3679_s24 }
 0x187   : > { %v2108_v45 = vrot.slane %v2107_v37, 4  ;;  %v4357_v24 = vadd.f32 %v4037_v29, %v4031_v31  ;;  %v4361_v4 = vadd.f32 %v4031_v31, %v4039_v27  ;;  %v4363_v39 = vsel %vm2310_vm10, %v2120_v11, %v2374_v26 }
 0x188   : > { %v1825_v44 = vrot.slane %v1824_v2, 1  ;;  %v2126_v58 = vrot.slane %v2125_v63, 1  ;;  %v1509_v0 = vadd.f32 %v1445_v62, %v1189_v15  ;;  %v1322_v35 = vpop.permute.xlu0 %1321  ;;  %v1436_v54 = vrot.slane %v4073_v36, 2  ;;  %v1336_v56 = vpop.permute.xlu1 %1335 }
 0x189   : > { %5815 = vst [vmem:[#allocation55_spill] sm:$0xff] %v4357_v24  ;;  %v2074_v60 = vmax.f32 %v2072_v50, %v2073_v6  ;;  %v2109_v3 = vmax.f32 %v2107_v37, %v2108_v45  ;;  %v1694_v19 = vsel %vm1566_vm11, %v1502_v33, %v1630_v42  ;;  %v4366_v25 = vunpack.c.l.b16 %v2462_v7  ;;  %v5816_v45 = vld [vmem:[#allocation16_spill] sm:$0xff] }
 0x18a   : > { %v4368_v29 = vmax.f32 %v2090_v57, %v2091_v30  ;;  %v1758_v24 = vadd.f32 %v1694_v19, %v4152_v55  ;;  %v1154_v31 = vrot.slane %v1002_v61, 1  ;;  %1281 = vrot.lane.b32.xlu0 %v3898_v5, %s3680_s25  ;;  %vm1573_vm12 = vcmp.gt.f32.partialorder %v1509_v0, 0.0  ;;  %1357 = vrot.lane.b32.xlu1 %v3930_v17, %s3680_s25 }
 0x18b   : > { %v2110_v26 = vrot.slane %v2109_v3, 2  ;;  %v1637_v36 = vmul.f32 0.01, %v1509_v0  ;;  %v1826_v50 = vmax.f32 %v1824_v2, %v1825_v44  ;;  %v4377_v33 = vmax.f32 %v2125_v63, %v2126_v58 }
 0x18c   : > { %v1841_v57 = vsel %vm1819_vm1, %v1758_v24, -inf  ;;  %v1161_v7 = vrot.slane %v1016_v34, 1  ;;  %v926_v6 = vpop.permute.xlu0 %925  ;;  %v2075_v61 = vrot.slane %v2074_v60, 2  ;;  %v940_v37 = vpop.permute.xlu1 %939  ;;  %v1218_v42 = vadd.f32 %v1154_v31, %v5816_v45 }
 0x18d   : > { %v2111_v62 = vmax.f32 %v2109_v3, %v2110_v26  ;;  %v1842_v30 = vrot.slane %v1841_v57, 4  ;;  %v1701_v5 = vsel %vm1573_vm12, %v1509_v0, %v1637_v36  ;;  %v1474_v11 = vrot.slane %v1322_v35, 2  ;;  %v5817_v36 = vld [vmem:[#allocation17_spill] sm:$0xff] }
 0x18e   : > { %v1765_v15 = vadd.f32 %v1701_v5, %v4152_v55  ;;  %v1225_v19 = vadd.f32 %v1161_v7, %v4121_v49  ;;  %1033 = vrot.lane.b32.xlu0 %v3904_v8, %s3679_s24  ;;  %v1481_v63 = vrot.slane %v1336_v56, 2  ;;  %v1116_v34 = vrot.slane %v926_v6, 1  ;;  %975 = vrot.lane.b32.xlu1 %v3936_v18, %s3679_s24 }
 0x18f   : > { %v2112_v17 = vrot.slane %v2111_v62, 1  ;;  %v1843_v2 = vmax.f32 %v1841_v57, %v1842_v30  ;;  %vm2268_vm13 = vcmp.gt.f32.partialorder %v1826_v50, 0.0  ;;  %v2332_v24 = vmul.f32 0.01, %v1826_v50 }
 0x190   : > { %v1890_v44 = vsel %vm1819_vm1, %v1765_v15, -inf  ;;  %v1538_v58 = vadd.f32 %v1474_v11, %v1218_v42  ;;  %v4388_v0 = vpop.permute.xlu0 %997  ;;  %vm2311_vm14 = vcmp.gt.f32.partialorder %v4377_v33, 0.0  ;;  %v1545_v3 = vadd.f32 %v1481_v63, %v1225_v19  ;;  %v4391_v31 = vpop.permute.xlu1 %1011 }
 0x191   : > { %v1844_v49 = vrot.slane %v1843_v2, 2  ;;  %v1891_v35 = vrot.slane %v1890_v44, 4  ;;  %v2076_v26 = vmax.f32 %v2074_v60, %v2075_v61  ;;  %v1180_v57 = vadd.f32 %v1116_v34, %v5817_v36 }
 0x192   : > { %vm1602_vm15 = vcmp.gt.f32.partialorder %v1538_v58, 0.0  ;;  %v1666_v56 = vmul.f32 0.01, %v1538_v58  ;;  %1029 = vrot.lane.b32.xlu0 %v3906_v9, %s3679_s24  ;;  %v2113_v7 = vmax.f32 %v2111_v62, %v2112_v17  ;;  %v1123_v30 = vrot.slane %v940_v37, 1  ;;  %1295 = vrot.lane.b32.xlu1 %v3936_v18, %s3680_s25 }
 0x193   : > { %v1845_v6 = vmax.f32 %v1843_v2, %v1844_v49  ;;  %v1892_v11 = vmax.f32 %v1890_v44, %v1891_v35  ;;  %vm1609_vm0 = vcmp.gt.f32.partialorder %v1545_v3, 0.0  ;;  %v1673_v15 = vmul.f32 0.01, %v1545_v3 }
 0x194   : > { %v1730_v5 = vsel %vm1602_vm15, %v1538_v58, %v1666_v56  ;;  %v1500_v45 = vadd.f32 %v1436_v54, %v1180_v57  ;;  %v1318_v42 = vpop.permute.xlu0 %1317  ;;  %v2375_v60 = vmul.f32 0.01, %v4377_v33  ;;  %v1332_v34 = vpop.permute.xlu1 %1331  ;;  %v2396_v62 = vsel %vm2268_vm13, %v1826_v50, %v2332_v24 }
 0x195   : > { %v1846_v61 = vrot.slane %v1845_v6, 1  ;;  %v1893_v19 = vrot.slane %v1892_v11, 2  ;;  %v1794_v63 = vadd.f32 %v1730_v5, %v4152_v55  ;;  %v1737_v17 = vsel %vm1609_vm0, %v1545_v3, %v1673_v15 }
 0x196   : > { %vm1564_vm2 = vcmp.gt.f32.partialorder %v1500_v45, 0.0  ;;  %v1628_v37 = vmul.f32 0.01, %v1500_v45  ;;  %1349 = vrot.lane.b32.xlu0 %v3906_v9, %s3680_s25  ;;  %v2373_v18 = vmul.f32 0.01, %v2113_v7  ;;  %1047 = vrot.lane.b32.xlu1 %v3948_v22, %s3679_s24  ;;  %v2077_v58 = vrot.slane %v2076_v26, 1 }
 0x197   : > { %v1847_v2 = vmax.f32 %v1845_v6, %v1846_v61  ;;  %v1894_v44 = vmax.f32 %v1892_v11, %v1893_v19  ;;  %v2093_v54 = vsel %vm1819_vm1, %v1794_v63, -inf  ;;  %vm2309_vm3 = vcmp.gt.f32.partialorder %v2113_v7, 0.0 }
 0x198   : > { %v1692_v49 = vsel %vm1564_vm2, %v1500_v45, %v1628_v37  ;;  %v4407_v35 = vadd.f32 %v1123_v30, %v4111_v47  ;;  %v936_v50 = vpop.permute.xlu0 %935  ;;  %v2460_v24 = vpack.c.bf16 %v2396_v62, %v2396_v62  ;;  %v2439_v9 = vsel %vm2311_vm14, %v4377_v33, %v2375_v60  ;;  %v4413_v36 = vpop.permute.xlu1 %945 }
 0x199   : > { %v2094_v3 = vrot.slane %v2093_v54, 4  ;;  %v1801_v56 = vadd.f32 %v1737_v17, %v4152_v55  ;;  %v2335_v57 = vmul.f32 0.01, %v1847_v2  ;;  %v1895_v6 = vrot.slane %v1894_v44, 1 }
 0x19a   : > { %v1756_v11 = vadd.f32 %v1692_v49, %v4152_v55  ;;  %v1152_v5 = vrot.slane %v4388_v0, 1  ;;  %967 = vrot.lane.b32.xlu0 %v3912_v10, %s3679_s24  ;;  %v2437_v47 = vsel %vm2309_vm3, %v2113_v7, %v2373_v18  ;;  %vm2271_vm4 = vcmp.gt.f32.partialorder %v1847_v2, 0.0  ;;  %1043 = vrot.lane.b32.xlu1 %v3952_v23, %s3679_s24 }
 0x19b   : > { %v1159_v30 = vrot.slane %v4391_v31, 1  ;;  %v1472_v15 = vrot.slane %v1318_v42, 2  ;;  %v5818_v33 = vpack.c.bf16 %v4363_v39, %v4363_v39  ;;  %v2503_v60 = vpack.c.bf16 %v2439_v9, %v2439_v9  ;;  %v5820_v42 = vld [vmem:[#allocation18_spill] sm:$0xff] }
 0x19c   : > { %v4427_v61 = vmax.f32 %v2076_v26, %v2077_v58  ;;  %v1827_v0 = vsel %vm1819_vm1, %v1756_v11, -inf  ;;  %v1256_v19 = vpop.permute.xlu0 %1255  ;;  %v4430_v63 = vunpack.c.l.b16 %v2460_v24  ;;  %v2142_v7 = vsel %vm1819_vm1, %v1801_v56, -inf  ;;  %v1266_v17 = vpop.permute.xlu1 %1265 }
 0x19d   : > { %v4425_v45 = vunpack.c.l.b16 %v5818_v33  ;;  %v1828_v31 = vrot.slane %v1827_v0, 4  ;;  %v1216_v62 = vadd.f32 %v1152_v5, %v5820_v42  ;;  %v2501_v37 = vpack.c.bf16 %v2437_v47, %v2437_v47 }
 0x19e   : > { %v4434_v18 = vsel %vm2271_vm4, %v1847_v2, %v2335_v57  ;;  %v1896_v39 = vmax.f32 %v1894_v44, %v1895_v6  ;;  %v2095_v49 = vmax.f32 %v2093_v54, %v2094_v3  ;;  %1287 = vrot.lane.b32.xlu0 %v3912_v10, %s3680_s25  ;;  %v1223_v58 = vadd.f32 %v1159_v30, %v4125_v48 }
 0x19f   : > { %5819 = vst [vmem:[#allocation16_spill] sm:$0xff] %v4425_v45  ;;  %v1829_v26 = vmax.f32 %v1827_v0, %v1828_v31  ;;  %v1536_v9 = vadd.f32 %v1472_v15, %v1216_v62  ;;  %v1479_v24 = vrot.slane %v1332_v34, 2  ;;  %1363 = vrot.lane.b32.xlu1 %v3952_v23, %s3680_s25  ;;  %v4441_v56 = vunpack.c.l.b16 %v2503_v60 }
 0x1a0   : > { %v4444_v11 = vmul.f32 0.01, %v4427_v61  ;;  %v2143_v2 = vrot.slane %v2142_v7, 4  ;;  %v1121_v57 = vrot.slane %v936_v50, 1  ;;  %v932_v44 = vpop.permute.xlu0 %931  ;;  %v1018_v6 = vpop.permute.xlu1 %1017  ;;  %v4446_v5 = vunpack.c.l.b16 %v2501_v37 }
 0x1a1   : > { %5821 = vst [vmem:[#allocation17_spill] sm:$0xff] %v4441_v56  ;;  %v1830_v54 = vrot.slane %v1829_v26, 2  ;;  %vm1600_vm5 = vcmp.gt.f32.partialorder %v1536_v9, 0.0  ;;  %v1664_v3 = vmul.f32 0.01, %v1536_v9  ;;  %v1543_v10 = vadd.f32 %v1479_v24, %v1223_v58 }
 0x1a2   : > { %5822 = vst [vmem:[#allocation18_spill] sm:$0xff] %v4444_v11  ;;  %5823 = vst [vmem:[#allocation56_spill] sm:$0xff] %v4446_v5  ;;  %v2463_v48 = vpack.c.bf16 %v4434_v18, %v4434_v18  ;;  %vm2278_vm6 = vcmp.gt.f32.partialorder %v1896_v39, 0.0  ;;  %v2096_v23 = vrot.slane %v2095_v49, 2  ;;  %963 = vrot.lane.b32.xlu0 %v3918_v12, %s3679_s24  ;;  %v2342_v34 = vmul.f32 0.01, %v1896_v39 }
 0x1a3   : > { %v1728_v47 = vsel %vm1600_vm5, %v1536_v9, %v1664_v3  ;;  %vm1607_vm7 = vcmp.gt.f32.partialorder %v1543_v10, 0.0  ;;  %v1671_v50 = vmul.f32 0.01, %v1543_v10  ;;  %977 = vrot.lane.b32.xlu1 %v3944_v20, %s3679_s24  ;;  %v1185_v15 = vadd.f32 %v1121_v57, %v4083_v40 }
 0x1a4   : > { %v1792_v30 = vadd.f32 %v1728_v47, %v4152_v55  ;;  %v1126_v33 = vrot.slane %v4413_v36, 1  ;;  %v1441_v60 = vrot.slane %v1256_v19, 2  ;;  %v1252_v0 = vpop.permute.xlu0 %1251  ;;  %v2144_v31 = vmax.f32 %v2142_v7, %v2143_v2  ;;  %v1338_v18 = vpop.permute.xlu1 %1337 }
 0x1a5   : > { %v1831_v42 = vmax.f32 %v1829_v26, %v1830_v54  ;;  %v1735_v62 = vsel %vm1607_vm7, %v1543_v10, %v1671_v50  ;;  %v1446_v37 = vrot.slane %v1266_v17, 2  ;;  %v2406_v40 = vsel %vm2278_vm6, %v1896_v39, %v2342_v34 }
 0x1a6   : > { %v2079_v58 = vsel %vm1819_vm1, %v1792_v30, -inf  ;;  %v1799_v9 = vadd.f32 %v1735_v62, %v4152_v55  ;;  %v1190_v24 = vadd.f32 %v1126_v33, %v4117_v46  ;;  %v1505_v3 = vadd.f32 %v1441_v60, %v1185_v15  ;;  %1283 = vrot.lane.b32.xlu0 %v3918_v12, %s3680_s25 }
 0x1a7   : > { %v2080_v36 = vrot.slane %v2079_v58, 4  ;;  %v1119_v19 = vrot.slane %v932_v44, 1  ;;  %v1162_v57 = vrot.slane %v1018_v6, 1  ;;  %1297 = vrot.lane.b32.xlu1 %v3944_v20, %s3680_s25  ;;  %v2097_v54 = vmax.f32 %v2095_v49, %v2096_v23 }
 0x1a8   : > { %v2128_v7 = vsel %vm1819_vm1, %v1799_v9, -inf  ;;  %vm1569_vm8 = vcmp.gt.f32.partialorder %v1505_v3, 0.0  ;;  %v1633_v17 = vmul.f32 0.01, %v1505_v3  ;;  %v1510_v26 = vadd.f32 %v1446_v37, %v1190_v24  ;;  %v1004_v2 = vpop.permute.xlu0 %1003  ;;  %v4466_v50 = vpop.permute.xlu1 %941 }
 0x1a9   : > { %v2145_v46 = vrot.slane %v2144_v31, 2  ;;  %v1832_v10 = vrot.slane %v1831_v42, 1  ;;  %v2081_v47 = vmax.f32 %v2079_v58, %v2080_v36  ;;  %v1226_v44 = vadd.f32 %v1162_v57, %v4135_v53 }
 0x1aa   : > { %v1697_v12 = vsel %vm1569_vm8, %v1505_v3, %v1633_v17  ;;  %vm1574_vm9 = vcmp.gt.f32.partialorder %v1510_v26, 0.0  ;;  %v1638_v39 = vmul.f32 0.01, %v1510_v26  ;;  %1035 = vrot.lane.b32.xlu0 %v3922_v13, %s3679_s24  ;;  %v4471_v20 = vunpack.c.l.b16 %v2463_v48 }
 0x1ab   : > { %v2470_v6 = vpack.c.bf16 %v2406_v40, %v2406_v40  ;;  %v2129_v34 = vrot.slane %v2128_v7, 4  ;;  %v1761_v30 = vadd.f32 %v1697_v12, %v4152_v55  ;;  %1049 = vrot.lane.b32.xlu1 %v5800_v59, %s3679_s24  ;;  %v1183_v23 = vadd.f32 %v1119_v19, %v4087_v41  ;;  %v5824_v12 = vld [vmem:[#allocation19_spill] sm:$0xff] }
 0x1ac   : > { %v1702_v49 = vsel %vm1574_vm9, %v1510_v26, %v1638_v39  ;;  %v1439_v15 = vrot.slane %v1252_v0, 2  ;;  %v1482_v33 = vrot.slane %v1338_v18, 2  ;;  %v1324_v60 = vpop.permute.xlu0 %1323  ;;  %v2098_v62 = vrot.slane %v2097_v54, 1  ;;  %v1262_v58 = vpop.permute.xlu1 %1261 }
 0x1ad   : > { %v1833_v53 = vmax.f32 %v1831_v42, %v1832_v10  ;;  %v1862_v37 = vsel %vm1819_vm1, %v1761_v30, -inf  ;;  %v1766_v48 = vadd.f32 %v1702_v49, %v4152_v55  ;;  %v2146_v9 = vmax.f32 %v2144_v31, %v2145_v46 }
 0x1ae   : > { %v2082_v24 = vrot.slane %v2081_v47, 2  ;;  %v1503_v3 = vadd.f32 %v1439_v15, %v1183_v23  ;;  %v1546_v40 = vadd.f32 %v1482_v33, %v1226_v44  ;;  %1355 = vrot.lane.b32.xlu0 %v3922_v13, %s3680_s25  ;;  %v4481_v36 = vunpack.c.l.b16 %v2470_v6 }
 0x1af   : > { %v2130_v41 = vmax.f32 %v2128_v7, %v2129_v34  ;;  %v1897_v0 = vsel %vm1819_vm1, %v1766_v48, -inf  ;;  %v1155_v18 = vrot.slane %v1004_v2, 1  ;;  %973 = vrot.lane.b32.xlu1 %v3946_v21, %s3679_s24  ;;  %v1863_v42 = vrot.slane %v1862_v37, 4 }
 0x1b0   : > { %v1898_v19 = vrot.slane %v1897_v0, 4  ;;  %vm1567_vm10 = vcmp.gt.f32.partialorder %v1503_v3, 0.0  ;;  %v1631_v57 = vmul.f32 0.01, %v1503_v3  ;;  %v4486_v31 = vpop.permute.xlu0 %937  ;;  %vm2269_vm11 = vcmp.gt.f32.partialorder %v1833_v53, 0.0  ;;  %v4488_v13 = vpop.permute.xlu1 %1013 }
 0x1b1   : > { %v2333_v17 = vmul.f32 0.01, %v1833_v53  ;;  %vm1610_vm12 = vcmp.gt.f32.partialorder %v1546_v40, 0.0  ;;  %v1674_v26 = vmul.f32 0.01, %v1546_v40  ;;  %v2083_v46 = vmax.f32 %v2081_v47, %v2082_v24 }
 0x1b2   : > { %v1899_v7 = vmax.f32 %v1897_v0, %v1898_v19  ;;  %v1695_v10 = vsel %vm1567_vm10, %v1503_v3, %v1631_v57  ;;  %v1219_v2 = vadd.f32 %v1155_v18, %v5824_v12  ;;  %969 = vrot.lane.b32.xlu0 %v3924_v14, %s3679_s24  ;;  %v4493_v39 = vmax.f32 %v2097_v54, %v2098_v62 }
 0x1b3   : > { %v2131_v44 = vrot.slane %v2130_v41, 2  ;;  %v1759_v6 = vadd.f32 %v1695_v10, %v4152_v55  ;;  %v1738_v34 = vsel %vm1610_vm12, %v1546_v40, %v1674_v26  ;;  %1293 = vrot.lane.b32.xlu1 %v3946_v21, %s3680_s25  ;;  %v1864_v30 = vmax.f32 %v1862_v37, %v1863_v42 }
 0x1b4   : > { %5825 = vst [vmem:[#allocation19_spill] sm:$0xff] %v4493_v39  ;;  %v1900_v49 = vrot.slane %v1899_v7, 2  ;;  %v1802_v47 = vadd.f32 %v1738_v34, %v4152_v55  ;;  %v1124_v23 = vrot.slane %v4466_v50, 1  ;;  %v1258_v15 = vpop.permute.xlu0 %1257  ;;  %v2147_v33 = vrot.slane %v2146_v9, 1  ;;  %v4502_v24 = vpop.permute.xlu1 %1333 }
 0x1b5   : > { %v2397_v48 = vsel %vm2269_vm11, %v1833_v53, %v2333_v17  ;;  %v1848_v54 = vsel %vm1819_vm1, %v1759_v6, -inf  ;;  %v1475_v62 = vrot.slane %v1324_v60, 2  ;;  %v2084_v3 = vrot.slane %v2083_v46, 1 }
 0x1b6   : > { %v1901_v40 = vmax.f32 %v1899_v7, %v1900_v49  ;;  %v1849_v0 = vrot.slane %v1848_v54, 4  ;;  %v2149_v21 = vsel %vm1819_vm1, %v1802_v47, -inf  ;;  %1289 = vrot.lane.b32.xlu0 %v3924_v14, %s3680_s25  ;;  %v2132_v37 = vmax.f32 %v2130_v41, %v2131_v44 }
 0x1b7   : > { %v1188_v50 = vadd.f32 %v1124_v23, %v4131_v51  ;;  %v1539_v18 = vadd.f32 %v1475_v62, %v1219_v2  ;;  %v1444_v42 = vrot.slane %v1262_v58, 2  ;;  %1045 = vrot.lane.b32.xlu1 %v5802_v38, %s3679_s24  ;;  %v2461_v53 = vpack.c.bf16 %v2397_v48, %v2397_v48 }
 0x1b8   : > { %v1865_v60 = vrot.slane %v1864_v30, 2  ;;  %v1850_v19 = vmax.f32 %v1848_v54, %v1849_v0  ;;  %v2150_v57 = vrot.slane %v2149_v21, 4  ;;  %v4510_v17 = vpop.permute.xlu0 %933  ;;  %v4512_v26 = vmax.f32 %v2146_v9, %v2147_v33  ;;  %v4514_v14 = vpop.permute.xlu1 %951 }
 0x1b9   : > { %vm1603_vm13 = vcmp.gt.f32.partialorder %v1539_v18, 0.0  ;;  %v1667_v7 = vmul.f32 0.01, %v1539_v18  ;;  %v1508_v10 = vadd.f32 %v1444_v42, %v1188_v50  ;;  %v4516_v41 = vmax.f32 %v2083_v46, %v2084_v3 }
 0x1ba   : > { %5826 = vst [vmem:[#allocation57_spill] sm:$0xff] %v4512_v26  ;;  %v1902_v51 = vrot.slane %v1901_v40, 1  ;;  %v1851_v58 = vrot.slane %v1850_v19, 2  ;;  %v1122_v12 = vrot.slane %v4486_v31, 1  ;;  %965 = vrot.lane.b32.xlu0 %v3928_v16, %s3679_s24  ;;  %v2133_v2 = vrot.slane %v2132_v37, 1 }
 0x1bb   : > { %v1731_v44 = vsel %vm1603_vm13, %v1539_v18, %v1667_v7  ;;  %vm1572_vm14 = vcmp.gt.f32.partialorder %v1508_v10, 0.0  ;;  %v1636_v6 = vmul.f32 0.01, %v1508_v10  ;;  %1365 = vrot.lane.b32.xlu1 %v5802_v38, %s3680_s25  ;;  %v4523_v9 = vunpack.c.l.b16 %v2461_v53  ;;  %v5828_v7 = vld [vmem:[#allocation7_spill] sm:$0xff] }
 0x1bc   : > { %v4525_v34 = vmax.f32 %v1864_v30, %v1865_v60  ;;  %v2151_v46 = vmax.f32 %v2149_v21, %v2150_v57  ;;  %v1795_v49 = vadd.f32 %v1731_v44, %v4152_v55  ;;  %v1254_v47 = vpop.permute.xlu0 %1253  ;;  %v1852_v23 = vmax.f32 %v1850_v19, %v1851_v58  ;;  %v4529_v54 = vpop.permute.xlu1 %1271 }
 0x1bd   : > { %v1700_v31 = vsel %vm1572_vm14, %v1508_v10, %v1636_v6  ;;  %v1160_v33 = vrot.slane %v4488_v13, 1  ;;  %v1442_v48 = vrot.slane %v1258_v15, 2  ;;  %v1903_v62 = vmax.f32 %v1901_v40, %v1902_v51 }
 0x1be   : > { %v2100_v3 = vsel %vm1819_vm1, %v1795_v49, -inf  ;;  %v1764_v38 = vadd.f32 %v1700_v31, %v4152_v55  ;;  %v1186_v0 = vadd.f32 %v1122_v12, %v4095_v43  ;;  %1285 = vrot.lane.b32.xlu0 %v3928_v16, %s3680_s25  ;;  %v4537_v30 = vmul.f32 0.01, %v4516_v41 }
 0x1bf   : > { %v4539_v21 = vmax.f32 %v2132_v37, %v2133_v2  ;;  %v2101_v50 = vrot.slane %v2100_v3, 4  ;;  %v1224_v13 = vadd.f32 %v1160_v33, %v4139_v52  ;;  %983 = vrot.lane.b32.xlu1 %v5804_v28, %s3679_s24  ;;  %v2152_v15 = vrot.slane %v2151_v46, 2 }
 0x1c0   : > { %5827 = vst [vmem:[#allocation58_spill] sm:$0xff] %v4537_v30  ;;  %v1883_v40 = vsel %vm1819_vm1, %v1764_v38, -inf  ;;  %v1506_v18 = vadd.f32 %v1442_v48, %v1186_v0  ;;  %v1480_v43 = vrot.slane %v4502_v24, 2  ;;  %v1260_v42 = vpop.permute.xlu0 %1259  ;;  %v1867_v16 = vrot.slane %v4525_v34, 1  ;;  %v4547_v37 = vpop.permute.xlu1 %947 }
 0x1c1   : > { %v1853_v53 = vrot.slane %v1852_v23, 1  ;;  %v2102_v60 = vmax.f32 %v2100_v3, %v2101_v50  ;;  %v1884_v19 = vrot.slane %v1883_v40, 4  ;;  %vm2279_vm15 = vcmp.gt.f32.partialorder %v1903_v62, 0.0 }
 0x1c2   : > { %v2343_v57 = vmul.f32 0.01, %v1903_v62  ;;  %vm1570_vm0 = vcmp.gt.f32.partialorder %v1506_v18, 0.0  ;;  %v1634_v52 = vmul.f32 0.01, %v1506_v18  ;;  %971 = vrot.lane.b32.xlu0 %v5828_v7, %s3679_s24  ;;  %v1544_v58 = vadd.f32 %v1480_v43, %v1224_v13 }
 0x1c3   : > { %v2103_v10 = vrot.slane %v2102_v60, 2  ;;  %v1885_v51 = vmax.f32 %v1883_v40, %v1884_v19  ;;  %v1120_v24 = vrot.slane %v4510_v17, 1  ;;  %1303 = vrot.lane.b32.xlu1 %v5804_v28, %s3680_s25  ;;  %v4554_v12 = vmax.f32 %v2151_v46, %v2152_v15  ;;  %v5829_v28 = vld [vmem:[#allocation20_spill] sm:$0xff]  ;;  %v5830_v15 = vld [vmem:[#allocation21_spill] sm:$0xff] }
 0x1c4   : > { %v1698_v2 = vsel %vm1570_vm0, %v1506_v18, %v1634_v52  ;;  %v1129_v44 = vrot.slane %v4514_v14, 1  ;;  %v1440_v6 = vrot.slane %v1254_v47, 2  ;;  %v4557_v49 = vpop.permute.xlu0 %1023  ;;  %v1854_v31 = vmax.f32 %v1852_v23, %v1853_v53  ;;  %v4560_v38 = vpop.permute.xlu1 %1267 }
 0x1c5   : > { %v2104_v33 = vmax.f32 %v2102_v60, %v2103_v10  ;;  %v1886_v48 = vrot.slane %v1885_v51, 2  ;;  %v1762_v3 = vadd.f32 %v1698_v2, %v4152_v55  ;;  %v2407_v17 = vsel %vm2279_vm15, %v1903_v62, %v2343_v57  ;;  %v5831_v10 = vld [vmem:[#allocation14_spill] sm:$0xff] }
 0x1c6   : > { %vm1608_vm2 = vcmp.gt.f32.partialorder %v1544_v58, 0.0  ;;  %v1672_v0 = vmul.f32 0.01, %v1544_v58  ;;  %v1184_v46 = vadd.f32 %v1120_v24, %v5829_v28  ;;  %1291 = vrot.lane.b32.xlu0 %v5828_v7, %s3680_s25  ;;  %v1449_v23 = vrot.slane %v4529_v54, 2 }
 0x1c7   : > { %v2105_v14 = vrot.slane %v2104_v33, 1  ;;  %v1887_v47 = vmax.f32 %v1885_v51, %v1886_v48  ;;  %v1869_v50 = vsel %vm1819_vm1, %v1762_v3, -inf  ;;  %979 = vrot.lane.b32.xlu1 %v5806_v1, %s3679_s24  ;;  %v1193_v40 = vadd.f32 %v1129_v44, %v5830_v15 }
 0x1c8   : > { %v1736_v13 = vsel %vm1608_vm2, %v1544_v58, %v1672_v0  ;;  %v1504_v62 = vadd.f32 %v1440_v6, %v1184_v46  ;;  %v1443_v18 = vrot.slane %v1260_v42, 2  ;;  %v4571_v43 = vpop.permute.xlu0 %1343  ;;  %vm2272_vm3 = vcmp.gt.f32.partialorder %v1854_v31, 0.0  ;;  %v4574_v57 = vpop.permute.xlu1 %953 }
 0x1c9   : > { %v2336_v53 = vmul.f32 0.01, %v1854_v31  ;;  %v1870_v60 = vrot.slane %v1869_v50, 4  ;;  %v1800_v19 = vadd.f32 %v1736_v13, %v4152_v55  ;;  %v2106_v52 = vmax.f32 %v2104_v33, %v2105_v14 }
 0x1ca   : > { %vm1568_vm4 = vcmp.gt.f32.partialorder %v1504_v62, 0.0  ;;  %v1632_v54 = vmul.f32 0.01, %v1504_v62  ;;  %v1513_v7 = vadd.f32 %v1449_v23, %v1193_v40  ;;  %991 = vrot.lane.b32.xlu0 %v5831_v10, %s3679_s24  ;;  %v4579_v51 = vmax.f32 %v4525_v34, %v1867_v16 }
 0x1cb   : > { %v1888_v42 = vrot.slane %v1887_v47, 1  ;;  %v2135_v58 = vsel %vm1819_vm1, %v1800_v19, -inf  ;;  %v1507_v24 = vadd.f32 %v1443_v18, %v4407_v35  ;;  %1299 = vrot.lane.b32.xlu1 %v5806_v1, %s3680_s25  ;;  %v2471_v55 = vpack.c.bf16 %v2407_v17, %v2407_v17  ;;  %v4597_v35 = vld [vmem:[%s5736_s2 + $0x8] sm:$0xff] }
 0x1cc   : > { %v2154_v2 = vrot.slane %v4554_v12, 1  ;;  %v2136_v44 = vrot.slane %v2135_v58, 4  ;;  %v1696_v6 = vsel %vm1568_vm4, %v1504_v62, %v1632_v54  ;;  %v4586_v33 = vpop.permute.xlu0 %1019  ;;  %v4589_v48 = vmul.f32 0.01, %v4539_v21  ;;  %v4600_v3 = vpop.permute.xlu1 %1273 }
 0x1cd   : > { %v4592_v34 = vsel %vm2272_vm3, %v1854_v31, %v2336_v53  ;;  %v1871_v16 = vmax.f32 %v1869_v50, %v1870_v60  ;;  %v1760_v1 = vadd.f32 %v4597_v35, %v1696_v6  ;;  %v2372_v17 = vmul.f32 0.01, %v2106_v52  ;;  %v5833_v50 = vld [vmem:[#allocation12_spill] sm:$0xff] }
 0x1ce   : > { %5832 = vst [vmem:[#allocation7_spill] sm:$0xff] %v4589_v48  ;;  %v2137_v0 = vmax.f32 %v2135_v58, %v2136_v44  ;;  %vm1577_vm5 = vcmp.gt.f32.partialorder %v1513_v7, 0.0  ;;  %v1641_v28 = vmul.f32 0.01, %v1513_v7  ;;  %1311 = vrot.lane.b32.xlu0 %v5831_v10, %s3680_s25  ;;  %v1889_v46 = vmax.f32 %v1887_v47, %v1888_v42 }
 0x1cf   : > { %v1855_v31 = vsel %vm1819_vm1, %v1760_v1, -inf  ;;  %vm1571_vm6 = vcmp.gt.f32.partialorder %v1507_v24, 0.0  ;;  %v1635_v14 = vmul.f32 0.01, %v1507_v24  ;;  %985 = vrot.lane.b32.xlu1 %v5833_v50, %s3679_s24  ;;  %v4608_v23 = vmul.f32 0.01, %v4579_v51 }
 0x1d0   : > { %v4610_v13 = vunpack.c.l.b16 %v2471_v55  ;;  %v4613_v15 = vmax.f32 %v4554_v12, %v2154_v2  ;;  %vm2308_vm7 = vcmp.gt.f32.partialorder %v2106_v52, 0.0  ;;  %v4615_v40 = vpop.permute.xlu0 %1339  ;;  %v1856_v62 = vrot.slane %v1855_v31, 4  ;;  %v4618_v60 = vpop.permute.xlu1 %949 }
 0x1d1   : > { %v1705_v47 = vsel %vm1577_vm5, %v1513_v7, %v1641_v28  ;;  %v1699_v18 = vsel %vm1571_vm6, %v1507_v24, %v1635_v14  ;;  %v1127_v53 = vrot.slane %v4547_v37, 1  ;;  %v1872_v54 = vrot.slane %v1871_v16, 2  ;;  %v5835_v24 = vld [vmem:[#allocation22_spill] sm:$0xff]  ;;  %v5836_v28 = vld [vmem:[#allocation24_spill] sm:$0xff] }
 0x1d2   : > { %5834 = vst [vmem:[#allocation20_spill] sm:$0xff] %v4613_v15  ;;  %v2138_v10 = vrot.slane %v2137_v0, 2  ;;  %v1769_v42 = vadd.f32 %v4597_v35, %v1705_v47  ;;  %987 = vrot.lane.b32.xlu0 %v4035_v32, %s3679_s24  ;;  %v4625_v12 = vsel %vm2308_vm7, %v2106_v52, %v2372_v17  ;;  %vm2277_vm8 = vcmp.gt.f32.partialorder %v1889_v46, 0.0 }
 0x1d3   : > { %v1763_v7 = vadd.f32 %v4597_v35, %v1699_v18  ;;  %v1165_v58 = vrot.slane %v4557_v49, 1  ;;  %1305 = vrot.lane.b32.xlu1 %v5833_v50, %s3680_s25  ;;  %v1191_v55 = vadd.f32 %v1127_v53, %v5835_v24  ;;  %v1447_v2 = vrot.slane %v4560_v38, 2 }
 0x1d4   : > { %v1918_v37 = vsel %vm1819_vm1, %v1769_v42, -inf  ;;  %v1485_v44 = vrot.slane %v4571_v43, 2  ;;  %v4635_v6 = vpop.permute.xlu0 %1025  ;;  %v1857_v52 = vmax.f32 %v1855_v31, %v1856_v62  ;;  %v4639_v49 = vpop.permute.xlu1 %1269  ;;  %v2341_v47 = vmul.f32 0.01, %v1889_v46  ;;  %v5837_v62 = vld [vmem:[#allocation13_spill] sm:$0xff] }
 0x1d5   : > { %v1919_v1 = vrot.slane %v1918_v37, 4  ;;  %v1876_v17 = vsel %vm1819_vm1, %v1763_v7, -inf  ;;  %v1229_v14 = vadd.f32 %v1165_v58, %v5836_v28  ;;  %v2139_v50 = vmax.f32 %v2137_v0, %v2138_v10  ;;  %v5840_v28 = vld [vmem:[#allocation23_spill] sm:$0xff] }
 0x1d6   : > { %v1877_v18 = vrot.slane %v1876_v17, 4  ;;  %v1511_v42 = vadd.f32 %v1447_v2, %v1191_v55  ;;  %1307 = vrot.lane.b32.xlu0 %v4035_v32, %s3680_s25  ;;  %v1130_v43 = vrot.slane %v4574_v57, 1  ;;  %v1163_v31 = vrot.slane %v4586_v33, 1 }
 0x1d7   : > { %v1920_v38 = vmax.f32 %v1918_v37, %v1919_v1  ;;  %v1549_v53 = vadd.f32 %v1485_v44, %v1229_v14  ;;  %981 = vrot.lane.b32.xlu1 %v5837_v62, %s3679_s24  ;;  %v4649_v58 = vmax.f32 %v1871_v16, %v1872_v54  ;;  %v1858_v24 = vrot.slane %v1857_v52, 2  ;;  %v5838_v44 = vld [vmem:[#allocation25_spill] sm:$0xff]  ;;  %v5839_v16 = vld [vmem:[#allocation15_spill] sm:$0xff] }
 0x1d8   : > { %v1878_v0 = vmax.f32 %v1876_v17, %v1877_v18  ;;  %vm1575_vm9 = vcmp.gt.f32.partialorder %v1511_v42, 0.0  ;;  %v4651_v10 = vpop.permute.xlu0 %1345  ;;  %v1639_v37 = vmul.f32 0.01, %v1511_v42  ;;  %v4653_v55 = vpop.permute.xlu1 %1021  ;;  %v4656_v57 = vsel %vm2277_vm8, %v1889_v46, %v2341_v47 }
 0x1d9   : > { %v1921_v32 = vrot.slane %v1920_v38, 2  ;;  %vm1613_vm10 = vcmp.gt.f32.partialorder %v1549_v53, 0.0  ;;  %v1677_v2 = vmul.f32 0.01, %v1549_v53  ;;  %v1227_v1 = vadd.f32 %v1163_v31, %v5838_v44  ;;  %v5843_v31 = vld [vmem:[#allocation27_spill] sm:$0xff] }
 0x1da   : > { %v1879_v33 = vrot.slane %v1878_v0, 2  ;;  %993 = vrot.lane.b32.xlu0 %v5839_v16, %s3679_s24  ;;  %v2140_v54 = vrot.slane %v2139_v50, 1  ;;  %v1703_v17 = vsel %vm1575_vm9, %v1511_v42, %v1639_v37  ;;  %v1194_v14 = vadd.f32 %v1130_v43, %v5840_v28 }
 0x1db   : > { %v1450_v18 = vrot.slane %v4600_v3, 2  ;;  %1301 = vrot.lane.b32.xlu1 %v5837_v62, %s3680_s25  ;;  %v1767_v46 = vadd.f32 %v4597_v35, %v1703_v17  ;;  %v1741_v47 = vsel %vm1613_vm10, %v1549_v53, %v1677_v2  ;;  %v1483_v7 = vrot.slane %v4615_v40, 2 }
 0x1dc   : > { %v1880_v19 = vmax.f32 %v1878_v0, %v1879_v33  ;;  %v4667_v56 = vpop.permute.xlu0 %959  ;;  %v1859_v44 = vmax.f32 %v1857_v52, %v1858_v24  ;;  %v4671_v42 = vmax.f32 %v1920_v38, %v1921_v32  ;;  %v1805_v43 = vadd.f32 %v4597_v35, %v1741_v47  ;;  %v4674_v3 = vpop.permute.xlu1 %1341 }
 0x1dd   : > { %v1904_v62 = vsel %vm1819_vm1, %v1767_v46, -inf  ;;  %v1514_v0 = vadd.f32 %v1450_v18, %v1194_v14  ;;  %v1547_v33 = vadd.f32 %v1483_v7, %v1227_v1  ;;  %v4680_v53 = vmax.f32 %v2139_v50, %v2140_v54  ;;  %v5841_v46 = vld [vmem:[#allocation6_spill] sm:$0xff] }
 0x1de   : > { %v1881_v37 = vrot.slane %v1880_v19, 1  ;;  %1313 = vrot.lane.b32.xlu0 %v5839_v16, %s3680_s25  ;;  %v1905_v2 = vrot.slane %v1904_v62, 4  ;;  %v2170_v52 = vsel %vm1819_vm1, %v1805_v43, -inf  ;;  %v1128_v16 = vrot.slane %v4618_v60, 1 }
 0x1df   : > { %989 = vrot.lane.b32.xlu1 %v4039_v27, %s3679_s24  ;;  %v2171_v24 = vrot.slane %v2170_v52, 4  ;;  %vm1578_vm11 = vcmp.gt.f32.partialorder %v1514_v0, 0.0  ;;  %v1642_v32 = vmul.f32 0.01, %v1514_v0  ;;  %vm1611_vm12 = vcmp.gt.f32.partialorder %v1547_v33, 0.0 }
 0x1e0   : > { %v1882_v38 = vmax.f32 %v1880_v19, %v1881_v37  ;;  %v4685_v17 = vpop.permute.xlu0 %1279  ;;  %v1906_v7 = vmax.f32 %v1904_v62, %v1905_v2  ;;  %v1675_v1 = vmul.f32 0.01, %v1547_v33  ;;  %v4688_v28 = vpop.permute.xlu1 %957  ;;  %v1860_v50 = vrot.slane %v1859_v44, 1 }
 0x1e1   : > { %v1923_v54 = vrot.slane %v4671_v42, 1  ;;  %v2172_v14 = vmax.f32 %v2170_v52, %v2171_v24  ;;  %v1706_v18 = vsel %vm1578_vm11, %v1514_v0, %v1642_v32  ;;  %v1166_v2 = vrot.slane %v4635_v6, 1  ;;  %v5842_v24 = vld [vmem:[#allocation26_spill] sm:$0xff] }
 0x1e2   : > { %1351 = vrot.lane.b32.xlu0 %v5841_v46, %s3680_s25  ;;  %v2340_v19 = vmul.f32 0.01, %v1882_v38  ;;  %v1907_v47 = vrot.slane %v1906_v7, 2  ;;  %v1770_v43 = vadd.f32 %v4597_v35, %v1706_v18  ;;  %v1739_v37 = vsel %vm1611_vm12, %v1547_v33, %v1675_v1 }
 0x1e3   : > { %1309 = vrot.lane.b32.xlu1 %v4039_v27, %s3680_s25  ;;  %vm2276_vm13 = vcmp.gt.f32.partialorder %v1882_v38, 0.0  ;;  %v2173_v60 = vrot.slane %v2172_v14, 2  ;;  %v1803_v62 = vadd.f32 %v4597_v35, %v1739_v37  ;;  %v1192_v32 = vadd.f32 %v1128_v16, %v5842_v24 }
 0x1e4   : > { %v4698_v40 = vpop.permute.xlu0 %1031  ;;  %v1908_v0 = vmax.f32 %v1906_v7, %v1907_v47  ;;  %v1925_v52 = vsel %vm1819_vm1, %v1770_v43, -inf  ;;  %v1448_v46 = vrot.slane %v4639_v49, 2  ;;  %v4703_v18 = vpop.permute.xlu1 %1277  ;;  %v1230_v45 = vadd.f32 %v1166_v2, %v5843_v31 }
 0x1e5   : > { %v2174_v33 = vmax.f32 %v2172_v14, %v2173_v60  ;;  %v1926_v1 = vrot.slane %v1925_v52, 4  ;;  %v2156_v27 = vsel %vm1819_vm1, %v1803_v62, -inf  ;;  %v2404_v6 = vsel %vm2276_vm13, %v1882_v38, %v2340_v19 }
 0x1e6   : > { %1353 = vrot.lane.b32.xlu0 %v3904_v8, %s3680_s25  ;;  %v1909_v37 = vrot.slane %v1908_v0, 1  ;;  %v2157_v7 = vrot.slane %v2156_v27, 4  ;;  %v1512_v47 = vadd.f32 %v1448_v46, %v1192_v32  ;;  %v4711_v16 = vmax.f32 %v1859_v44, %v1860_v50  ;;  %v5844_v44 = vld [vmem:[#allocation28_spill] sm:$0xff] }
 0x1e7   : > { %1367 = vrot.lane.b32.xlu1 %v3948_v22, %s3680_s25  ;;  %v2175_v49 = vrot.slane %v2174_v33, 1  ;;  %v1486_v14 = vrot.slane %v4651_v10, 2  ;;  %v1164_v43 = vrot.slane %v4653_v55, 1  ;;  %v1927_v31 = vmax.f32 %v1925_v52, %v1926_v1 }
 0x1e8   : > { %v4715_v60 = vpop.permute.xlu0 %955  ;;  %v2158_v62 = vmax.f32 %v2156_v27, %v2157_v7  ;;  %vm1576_vm14 = vcmp.gt.f32.partialorder %v1512_v47, 0.0  ;;  %v1640_v8 = vmul.f32 0.01, %v1512_v47  ;;  %v4717_v38 = vpop.permute.xlu1 %1039  ;;  %v4720_v19 = vmax.f32 %v4671_v42, %v1923_v54 }
 0x1e9   : > { %v2468_v2 = vpack.c.bf16 %v2404_v6, %v2404_v6  ;;  %v1550_v22 = vadd.f32 %v1486_v14, %v1230_v45  ;;  %v1228_v50 = vadd.f32 %v1164_v43, %v5844_v44  ;;  %v5845_v10 = vpack.c.bf16 %v4625_v12, %v4625_v12 }
 0x1ea   : > { %v1910_v55 = vmax.f32 %v1908_v0, %v1909_v37  ;;  %v2159_v32 = vrot.slane %v2158_v62, 2  ;;  %v1704_v52 = vsel %vm1576_vm14, %v1512_v47, %v1640_v8  ;;  %v5847_v46 = vpack.c.bf16 %v4656_v57, %v4656_v57 }
 0x1eb   : > { %v4726_v24 = vunpack.c.l.b16 %v5845_v10  ;;  %1369 = vrot.lane.b32.xlu1 %v5800_v59, %s3680_s25  ;;  %v5848_v45 = vrot.slane %v4649_v58, 1  ;;  %v4741_v12 = vmul.f32 0.01, %v4680_v53  ;;  %v1768_v0 = vadd.f32 %v4597_v35, %v1704_v52 }
 0x1ec   : > { %v4733_v42 = vunpack.c.l.b16 %v5847_v46  ;;  %v4744_v1 = vpop.permute.xlu0 %1275  ;;  %v2176_v27 = vmax.f32 %v2174_v33, %v2175_v49  ;;  %v1928_v6 = vrot.slane %v1927_v31, 2  ;;  %vm1614_vm15 = vcmp.gt.f32.partialorder %v1550_v22, 0.0  ;;  %v4746_v37 = vpop.permute.xlu1 %1359 }
 0x1ed   : > { %5846 = vst [vmem:[#allocation21_spill] sm:$0xff] %v4726_v24  ;;  %v4738_v54 = vmax.f32 %v4649_v58, %v5848_v45  ;;  %5849 = vst [vmem:[#allocation14_spill] sm:$0xff] %v4741_v12  ;;  %v1678_v59 = vmul.f32 0.01, %v1550_v22  ;;  %v4749_v57 = vmul.f32 0.01, %v4711_v16  ;;  %v4754_v58 = vunpack.c.l.b16 %v2468_v2 }
 0x1ee   : > { %v4752_v7 = vmul.f32 0.01, %v4720_v19  ;;  %v1911_v47 = vsel %vm1819_vm1, %v1768_v0, -inf  ;;  %v2344_v14 = vmul.f32 0.01, %v1910_v55  ;;  %v2160_v43 = vmax.f32 %v2158_v62, %v2159_v32 }
 0x1ef   : > { %v1912_v8 = vrot.slane %v1911_v47, 4  ;;  %v1742_v44 = vsel %vm1614_vm15, %v1550_v22, %v1678_v59  ;;  %vm2280_vm0 = vcmp.gt.f32.partialorder %v1910_v55, 0.0  ;;  %v1484_v49 = vrot.slane %v4674_v3, 2  ;;  %v5850_v22 = vld [vmem:[#allocation29_spill] sm:$0xff] }
 0x1f0   : > { %v1806_v33 = vadd.f32 %v4597_v35, %v1742_v44  ;;  %v1133_v10 = vrot.slane %v4667_v56, 1  ;;  %v4760_v52 = vpop.permute.xlu0 %1027  ;;  %vm2318_vm2 = vcmp.gt.f32.partialorder %v2176_v27, 0.0  ;;  %v2382_v46 = vmul.f32 0.01, %v2176_v27  ;;  %v4763_v5 = vpop.permute.xlu1 %1041 }
 0x1f1   : > { %v1929_v45 = vmax.f32 %v1927_v31, %v1928_v6  ;;  %v1453_v2 = vrot.slane %v4685_v17, 2  ;;  %v1548_v32 = vadd.f32 %v1484_v49, %v1228_v50  ;;  %v1132_v59 = vrot.slane %v4688_v28, 1  ;;  %v5851_v31 = vld [vmem:[#allocation34_spill] sm:$0xff]  ;;  %v5854_v28 = vld [vmem:[#allocation37_spill] sm:$0xff] }
 0x1f2   : > { %v2177_v62 = vsel %vm1819_vm1, %v1806_v33, -inf  ;;  %v1197_v0 = vadd.f32 %v1133_v10, %v5850_v22  ;;  %v4768_v44 = vsel %vm2280_vm0, %v1910_v55, %v2344_v14  ;;  %v2161_v3 = vrot.slane %v2160_v43, 1  ;;  %v5852_v22 = vld [vmem:[#allocation31_spill] sm:$0xff] }
 0x1f3   : > { %v1913_v56 = vmax.f32 %v1911_v47, %v1912_v8  ;;  %v2178_v24 = vrot.slane %v2177_v62, 4  ;;  %vm1612_vm3 = vcmp.gt.f32.partialorder %v1548_v32, 0.0  ;;  %v1676_v12 = vmul.f32 0.01, %v1548_v32 }
 0x1f4   : > { %v1517_v48 = vadd.f32 %v1453_v2, %v1197_v0  ;;  %v1196_v6 = vadd.f32 %v1132_v59, %v5851_v31  ;;  %v4771_v17 = vpop.permute.xlu0 %1347  ;;  %v2446_v30 = vsel %vm2318_vm2, %v2176_v27, %v2382_v46  ;;  %v1930_v33 = vrot.slane %v1929_v45, 1  ;;  %v4775_v10 = vpop.permute.xlu1 %1361 }
 0x1f5   : > { %v2179_v50 = vmax.f32 %v2177_v62, %v2178_v24  ;;  %v1169_v49 = vrot.slane %v4698_v40, 1  ;;  %v1740_v55 = vsel %vm1612_vm3, %v1548_v32, %v1676_v12  ;;  %v2162_v14 = vmax.f32 %v2160_v43, %v2161_v3 }
 0x1f6   : > { %vm1581_vm4 = vcmp.gt.f32.partialorder %v1517_v48, 0.0  ;;  %v1645_v47 = vmul.f32 0.01, %v1517_v48  ;;  %v1914_v8 = vrot.slane %v1913_v56, 2  ;;  %v1804_v2 = vadd.f32 %v4597_v35, %v1740_v55  ;;  %v5853_v55 = vld [vmem:[#allocation30_spill] sm:$0xff] }
 0x1f7   : > { %v4781_v0 = vadd.f32 %v1169_v49, %v5852_v22  ;;  %v2510_v27 = vpack.c.bf16 %v2446_v30, %v2446_v30  ;;  %v1452_v24 = vrot.slane %v4703_v18, 2  ;;  %v1131_v40 = vrot.slane %v4715_v60, 1 }
 0x1f8   : > { %v1709_v46 = vsel %vm1581_vm4, %v1517_v48, %v1645_v47  ;;  %v4785_v62 = vpop.permute.xlu0 %961  ;;  %v4787_v59 = vmax.f32 %v1929_v45, %v1930_v33  ;;  %v2180_v12 = vrot.slane %v2179_v50, 2  ;;  %v2163_v32 = vsel %vm1819_vm1, %v1804_v2, -inf  ;;  %v4791_v3 = vpop.permute.xlu1 %1037 }
 0x1f9   : > { %v1773_v43 = vadd.f32 %v4597_v35, %v1709_v46  ;;  %v2164_v31 = vrot.slane %v2163_v32, 4  ;;  %v1516_v49 = vadd.f32 %v1452_v24, %v1196_v6  ;;  %v1195_v30 = vadd.f32 %v1131_v40, %v5853_v55 }
 0x1fa   : > { %v1173_v48 = vrot.slane %v4717_v38, 1  ;;  %vm2316_vm5 = vcmp.gt.f32.partialorder %v2162_v14, 0.0  ;;  %v2380_v18 = vmul.f32 0.01, %v2162_v14  ;;  %v1915_v60 = vmax.f32 %v1913_v56, %v1914_v8 }
 0x1fb   : > { %v1946_v47 = vsel %vm1819_vm1, %v1773_v43, -inf  ;;  %v2165_v45 = vmax.f32 %v2163_v32, %v2164_v31  ;;  %vm1580_vm6 = vcmp.gt.f32.partialorder %v1516_v49, 0.0  ;;  %v1644_v22 = vmul.f32 0.01, %v1516_v49 }
 0x1fc   : > { %v1947_v33 = vrot.slane %v1946_v47, 4  ;;  %v2181_v2 = vmax.f32 %v2179_v50, %v2180_v12  ;;  %v1237_v46 = vadd.f32 %v1173_v48, %v5854_v28  ;;  %v1451_v11 = vrot.slane %v4744_v1, 2  ;;  %v4799_v24 = vpop.permute.xlu1 %1357  ;;  %v4802_v8 = vpop.permute.xlu0 %1281  ;;  %v5856_v48 = vld [vmem:[#allocation33_spill] sm:$0xff] }
 0x1fd   : > { %v1493_v6 = vrot.slane %v4746_v37, 2  ;;  %v2166_v40 = vrot.slane %v2165_v45, 2  ;;  %v1708_v55 = vsel %vm1580_vm6, %v1516_v49, %v1644_v22  ;;  %v1167_v56 = vrot.slane %v4760_v52, 1 }
 0x1fe   : > { %v1948_v38 = vmax.f32 %v1946_v47, %v1947_v33  ;;  %v4804_v32 = vunpack.c.l.b16 %v2510_v27  ;;  %v1916_v43 = vrot.slane %v1915_v60, 1  ;;  %v1772_v50 = vadd.f32 %v4597_v35, %v1708_v55 }
 0x1ff   : > { %v1515_v12 = vadd.f32 %v1451_v11, %v1195_v30  ;;  %v2167_v28 = vmax.f32 %v2165_v45, %v2166_v40  ;;  %v1557_v1 = vadd.f32 %v1493_v6, %v1237_v46  ;;  %v1231_v37 = vadd.f32 %v1167_v56, %v5856_v48  ;;  %v3636_v11 = vld [vmem:[%s5735_s1 + $0x10] sm:$0xff]  }
 0x200   : > { %5855 = vst [vmem:[#allocation12_spill] sm:$0xff] %v4804_v32  ;;  %v1949_v31 = vrot.slane %v1948_v38, 2  ;;  %v4809_v15 = vsel %vm2316_vm5, %v2162_v14, %v2380_v18  ;;  %v1939_v49 = vsel %vm1819_vm1, %v1772_v50, -inf  ;;  %v4812_v47 = vpop.permute.xlu1 %975  ;;  %v2182_v27 = vrot.slane %v2181_v2, 1  ;;  %v4820_v55 = vpop.permute.xlu0 %1033  ;;  %3569 = vmatprep.subr.bf16.mxu1 %v3636_v11  ;;  %v5857_v50 = vld [vmem:[#allocation41_spill] sm:$0xff] }
 0x201   : > { %vm1579_vm7 = vcmp.gt.f32.partialorder %v1515_v12, 0.0  ;;  %v1643_v52 = vmul.f32 0.01, %v1515_v12  ;;  %v2168_v33 = vrot.slane %v2167_v28, 1  ;;  %v1940_v32 = vrot.slane %v1939_v49, 4  ;;  %3570 = vmatpush3.bf16.msra.mxu1 %v3636_v11 }
 0x202   : > { %v1950_v22 = vmax.f32 %v1948_v38, %v1949_v31  ;;  %vm1621_vm8 = vcmp.gt.f32.partialorder %v1557_v1, 0.0  ;;  %v1685_v45 = vmul.f32 0.01, %v1557_v1  ;;  %v1174_v14 = vrot.slane %v4763_v5, 1 }
 0x203   : > { %v1707_v30 = vsel %vm1579_vm7, %v1515_v12, %v1643_v52  ;;  %v4818_v18 = vmax.f32 %v1915_v60, %v1916_v43  ;;  %v2169_v46 = vmax.f32 %v2167_v28, %v2168_v33  ;;  %v1941_v40 = vmax.f32 %v1939_v49, %v1940_v32 }
 0x204   : > { %v1951_v6 = vrot.slane %v1950_v22, 1  ;;  %v1771_v38 = vadd.f32 %v4597_v35, %v1707_v30  ;;  %v1749_v56 = vsel %vm1621_vm8, %v1557_v1, %v1685_v45  ;;  %v1238_v31 = vadd.f32 %v1174_v14, %v5857_v50  ;;  %v4827_v28 = vpop.permute.xlu1 %1295 }
 0x205   : > { %v1487_v48 = vrot.slane %v4771_v17, 2  ;;  %v2183_v5 = vmax.f32 %v2181_v2, %v2182_v27  ;;  %v1942_v43 = vrot.slane %v1941_v40, 2  ;;  %v1813_v49 = vadd.f32 %v4597_v35, %v1749_v56 }
 0x206   : > { %v1952_v60 = vmax.f32 %v1950_v22, %v1951_v6  ;;  %v1932_v32 = vsel %vm1819_vm1, %v1771_v38, -inf  ;;  %v1494_v1 = vrot.slane %v4775_v10, 2  ;;  %v4833_v33 = vmul.f32 0.01, %v4818_v18 }
 0x207   : > { %v1551_v52 = vadd.f32 %v1487_v48, %v1231_v37  ;;  %vm2317_vm9 = vcmp.gt.f32.partialorder %v2169_v46, 0.0  ;;  %v2381_v17 = vmul.f32 0.01, %v2169_v46  ;;  %v1943_v11 = vmax.f32 %v1941_v40, %v1942_v43  ;;  %v4837_v37 = vpop.permute.xlu0 %1029 }
 0x208   : > { %v2350_v30 = vmul.f32 0.01, %v1952_v60  ;;  %v1933_v45 = vrot.slane %v1932_v32, 4  ;;  %v2226_v2 = vsel %vm1819_vm1, %v1813_v49, -inf  ;;  %vm2273_vm11 = vcmp.gt.f32.partialorder %v4711_v16, 0.0  ;;  %v4842_v43 = vpop.permute.xlu1 %1047 }
 0x209   : > { %vm1615_vm10 = vcmp.gt.f32.partialorder %v1551_v52, 0.0  ;;  %vm2286_vm12 = vcmp.gt.f32.partialorder %v1952_v60, 0.0  ;;  %v1944_v27 = vrot.slane %v1943_v11, 1  ;;  %v2227_v22 = vrot.slane %v2226_v2, 4 }
 0x20a   : > { %v1679_v14 = vmul.f32 0.01, %v1551_v52  ;;  %vm2319_vm13 = vcmp.gt.f32.partialorder %v2183_v5, 0.0  ;;  %v2383_v10 = vmul.f32 0.01, %v2183_v5  ;;  %v1934_v6 = vmax.f32 %v1932_v32, %v1933_v45 }
 0x20b   : > { %v1558_v38 = vadd.f32 %v1494_v1, %v1238_v31  ;;  %v4840_v56 = vsel %vm2317_vm9, %v2169_v46, %v2381_v17  ;;  %v1945_v40 = vmax.f32 %v1943_v11, %v1944_v27  ;;  %v2228_v50 = vmax.f32 %v2226_v2, %v2227_v22  ;;  %v4854_v2 = vpop.permute.xlu0 %1349 }
 0x20c   : > { %v1743_v48 = vsel %vm1615_vm10, %v1551_v52, %v1679_v14  ;;  %vm2281_vm14 = vcmp.gt.f32.partialorder %v4818_v18, 0.0  ;;  %v4845_v49 = vsel %vm2286_vm12, %v1952_v60, %v2350_v30  ;;  %v1935_v12 = vrot.slane %v1934_v6, 2 }
 0x20d   : > { %v1807_v26 = vadd.f32 %v4597_v35, %v1743_v48  ;;  %vm1622_vm15 = vcmp.gt.f32.partialorder %v1558_v38, 0.0  ;;  %vm2285_vm0 = vcmp.gt.f32.partialorder %v1945_v40, 0.0  ;;  %v2349_v39 = vmul.f32 0.01, %v1945_v40 }
 0x20e   : > { %v2229_v32 = vrot.slane %v2228_v50, 2  ;;  %v1686_v31 = vmul.f32 0.01, %v1558_v38  ;;  %v4849_v46 = vsel %vm2319_vm13, %v2183_v5, %v2383_v10  ;;  %v2509_v52 = vpack.c.bf16 %v4840_v56, %v4840_v56 }
 0x20f   : > { %v1936_v1 = vmax.f32 %v1934_v6, %v1935_v12  ;;  %v2184_v17 = vsel %vm1819_vm1, %v1807_v26, -inf  ;;  %v2413_v11 = vsel %vm2285_vm0, %v1945_v40, %v2349_v39  ;;  %v2478_v27 = vpack.c.bf16 %v4845_v49, %v4845_v49  ;;  %v4862_v39 = vpop.permute.xlu1 %1043 }
 0x210   : > { %v2230_v60 = vmax.f32 %v2228_v50, %v2229_v32  ;;  %v2185_v30 = vrot.slane %v2184_v17, 4  ;;  %v1750_v45 = vsel %vm1622_vm15, %v1558_v38, %v1686_v31  ;;  %vm2274_vm2 = vcmp.gt.f32.partialorder %v4579_v51, 0.0 }
 0x211   : > { %v1937_v22 = vrot.slane %v1936_v1, 1  ;;  %v1814_v14 = vadd.f32 %v4597_v35, %v1750_v45  ;;  %vm2275_vm3 = vcmp.gt.f32.partialorder %v4738_v54, 0.0  ;;  %vm2282_vm4 = vcmp.gt.f32.partialorder %v4720_v19, 0.0 }
 0x212   : > { %v2231_v5 = vrot.slane %v2230_v60, 1  ;;  %v2186_v10 = vmax.f32 %v2184_v17, %v2185_v30  ;;  %v2477_v26 = vpack.c.bf16 %v2413_v11, %v2413_v11  ;;  %vm2656_vm5 = vcmask 1041409   ;;  %v4872_v11 = vpop.permute.xlu0 %967 }
 0x213   : > { %v1938_v12 = vmax.f32 %v1936_v1, %v1937_v22  ;;  %v2233_v6 = vsel %vm1819_vm1, %v1814_v14, -inf  ;;  %v2339_v38 = vmul.f32 0.01, %v4738_v54  ;;  %vm2283_vm6 = vcmp.gt.f32.partialorder %v4787_v59, 0.0 }
 0x214   : > { %v2232_v56 = vmax.f32 %v2230_v60, %v2231_v5  ;;  %v2187_v40 = vrot.slane %v2186_v10, 2  ;;  %v2234_v50 = vrot.slane %v2233_v6, 4  ;;  %v2347_v49 = vmul.f32 0.01, %v4787_v59 }
 0x215   : > { %vm2284_vm7 = vcmp.gt.f32.partialorder %v1938_v12, 0.0  ;;  %v2348_v48 = vmul.f32 0.01, %v1938_v12  ;;  %v2401_v32 = vsel %vm2273_vm11, %v4711_v16, %v4749_v57  ;;  %v2609_v60 = vunpack.c.l.b16 %v2477_v26 }
 0x216   : > { %vm2326_vm8 = vcmp.gt.f32.partialorder %v2232_v56, 0.0  ;;  %v2390_v31 = vmul.f32 0.01, %v2232_v56  ;;  %v2188_v1 = vmax.f32 %v2186_v10, %v2187_v40  ;;  %v2235_v17 = vmax.f32 %v2233_v6, %v2234_v50  ;;  %v4885_v10 = vpop.permute.xlu1 %1363 }
 0x217   : > { %v2412_v30 = vsel %vm2284_vm7, %v1938_v12, %v2348_v48  ;;  %v2402_v45 = vsel %vm2274_vm2, %v4579_v51, %v4608_v23  ;;  %v2403_v22 = vsel %vm2275_vm3, %v4738_v54, %v2339_v38  ;;  %v2409_v57 = vsel %vm2281_vm14, %v4818_v18, %v4833_v33 }
 0x218   : > { %v2476_v14 = vpack.c.bf16 %v2412_v30, %v2412_v30  ;;  %v2189_v5 = vrot.slane %v2188_v1, 1  ;;  %v2236_v16 = vrot.slane %v2235_v17, 2  ;;  %v4887_v26 = vsel %vm2326_vm8, %v2232_v56, %v2390_v31 }
 0x219   : > { %v2410_v51 = vsel %vm2282_vm4, %v4720_v19, %v4752_v7  ;;  %v2411_v23 = vsel %vm2283_vm6, %v4787_v59, %v2347_v49  ;;  %v2465_v54 = vpack.c.bf16 %v2401_v32, %v2401_v32  ;;  %v2466_v40 = vpack.c.bf16 %v2402_v45, %v2402_v45  ;;  %v4910_v32 = vpop.permute.xlu0 %1287 }
 0x21a   : > { %v2608_v12 = vunpack.c.l.b16 %v2476_v14  ;;  %v2190_v6 = vmax.f32 %v2188_v1, %v2189_v5  ;;  %v4896_v38 = vmax.f32 %v2235_v17, %v2236_v16  ;;  %v5858_v18 = vpack.c.bf16 %v4809_v15, %v4809_v15 }
 0x21b   : > { %v2511_v56 = vpack.c.bf16 %v4849_v46, %v4849_v46  ;;  %v4905_v50 = vunpack.c.l.b16 %v2509_v52  ;;  %v2467_v19 = vpack.c.bf16 %v2403_v22, %v2403_v22  ;;  %v2610_v7 = vunpack.c.l.b16 %v2478_v27  ;;  %v4916_v22 = vpop.permute.xlu1 %977 }
 0x21c   : > { %v4901_v33 = vunpack.c.l.b16 %v5858_v18  ;;  %v2677_v59 = vsel %vm2656_vm5, %v2609_v60, %v2608_v12  ;;  %v2473_v49 = vpack.c.bf16 %v2409_v57, %v2409_v57  ;;  %v2384_v31 = vmul.f32 0.01, %v2190_v6 }
 0x21d   : > { %v2474_v1 = vpack.c.bf16 %v2410_v51, %v2410_v51  ;;  %v2475_v15 = vpack.c.bf16 %v2411_v23, %v2411_v23  ;;  %v5859_v17 = vpack.c.bf16 %v4592_v34, %v4592_v34  ;;  %vm2320_vm9 = vcmp.gt.f32.partialorder %v2190_v6, 0.0  ;;  %v4935_v12 = vpop.permute.xlu0 %963 }
 0x21e   : > { %v2238_v52 = vrot.slane %v4896_v38, 1  ;;  %v2597_v45 = vunpack.c.l.b16 %v2465_v54  ;;  %v2598_v27 = vunpack.c.l.b16 %v2466_v40  ;;  %v2599_v60 = vunpack.c.l.b16 %v2467_v19  ;;  %v5861_v19 = vld [vmem:[#allocation32_spill] sm:$0xff] }
 0x21f   : > { %v2596_v30 = vunpack.c.l.b16 %v5859_v17  ;;  %v2657_v14 = vsel %vm2656_vm5, %v4523_v9, %v4430_v63  ;;  %vm2658_vm10 = vcmask 1042434   ;;  %vm2660_vm11 = vcmask 1043459   ;;  %v5862_v17 = vld [vmem:[#allocation43_spill] sm:$0xff] }
 0x220   : > { %v5860_v5 = vpack.c.bf16 %v4768_v44, %v4768_v44  ;;  %v2605_v34 = vunpack.c.l.b16 %v2473_v49  ;;  %v2659_v57 = vsel %vm2658_vm10, %v4366_v25, %v2657_v14  ;;  %vm2662_vm12 = vcmask 1044484  }
 0x221   : > { %v4926_v51 = vsel %vm2320_vm9, %v2190_v6, %v2384_v31  ;;  %v2606_v23 = vunpack.c.l.b16 %v2474_v1  ;;  %v2661_v54 = vsel %vm2660_vm11, %v4471_v20, %v2659_v57  ;;  %vm2664_vm13 = vcmask 1045509  }
 0x222   : > { %v2604_v16 = vunpack.c.l.b16 %v5860_v5  ;;  %v2663_v63 = vsel %vm2662_vm12, %v2596_v30, %v2661_v54  ;;  %vm5754_vm14 = vcmask 1046534   ;;  %v2670_v9 = vsel %vm2656_vm5, %v4733_v42, %v4754_v58  ;;  %v4946_v58 = vpop.permute.xlu1 %1297 }
 0x223   : > { %v1134_v44 = vrot.slane %v4785_v62, 1  ;;  %v2665_v25 = vsel %vm2664_vm13, %v2597_v45, %v2663_v63  ;;  %vm5753_vm15 = vcmask 1047559   ;;  %v2671_v6 = vsel %vm2658_vm10, %v4481_v36, %v2670_v9 }
 0x224   : > { %v1172_v20 = vrot.slane %v4791_v3, 1  ;;  %v2667_v40 = vsel %vm5754_vm14, %v2598_v27, %v2665_v25  ;;  %v2672_v18 = vsel %vm2660_vm11, %v4610_v13, %v2671_v6  ;;  %v1454_v42 = vrot.slane %v4802_v8, 2 }
 0x225   : > { %v1198_v49 = vadd.f32 %v1134_v44, %v5861_v19  ;;  %v2607_v62 = vunpack.c.l.b16 %v2475_v15  ;;  %v2669_v31 = vsel %vm5753_vm15, %v2599_v60, %v2667_v40  ;;  %v2673_v1 = vsel %vm2662_vm12, %v2604_v16, %v2672_v18 }
 0x226   : > { %v1236_v36 = vadd.f32 %v1172_v20, %v5862_v17  ;;  %v2674_v3 = vsel %vm2664_vm13, %v2605_v34, %v2673_v1  ;;  %v4953_v45 = vsel %vm2658_vm10, %v2610_v7, %v2677_v59  ;;  %v1492_v13 = vrot.slane %v4799_v24, 2  ;;  %v4961_v34 = vpop.permute.xlu0 %1283  ;;  %v5863_v7 = vld [vmem:[#allocation35_spill] sm:$0xff]  ;;  %v5864_v24 = vld [vmem:[#allocation45_spill] sm:$0xff]  ;;  %v4969_v9 = vpop.permute.xlu1 %1049 }
 0x227   : > { %v1518_v30 = vadd.f32 %v1454_v42, %v1198_v49  ;;  %v2675_v27 = vsel %vm5754_vm14, %v2606_v23, %v2674_v3  ;;  %v1170_v8 = vrot.slane %v4820_v55, 1  ;;  %v1141_v15 = vrot.slane %v4812_v47, 1  ;;  %v5865_v23 = vld [vmem:[#allocation36_spill] sm:$0xff] }
 0x228   : > { %v1168_v60 = vrot.slane %v4837_v37, 1  ;;  %v2676_v14 = vsel %vm5753_vm15, %v2607_v62, %v2675_v27  ;;  %v1556_v16 = vadd.f32 %v1492_v13, %v1236_v36  ;;  %v1461_v37 = vrot.slane %v4827_v28, 2 }
 0x229   : > { %vm1582_vm0 = vcmp.gt.f32.partialorder %v1518_v30, 0.0  ;;  %v1646_v5 = vmul.f32 0.01, %v1518_v30  ;;  %v2719_v57 = vpack.c.b16 %v2676_v14, %v2669_v31  ;;  %v4964_v59 = vadd.f32 %v1170_v8, %v5863_v7  ;;  %v5866_v31 = vld [vmem:[#allocation49_spill] sm:$0xff] }
 0x22a   : > { %v1205_v54 = vadd.f32 %v1141_v15, %v5864_v24  ;;  %v1232_v63 = vadd.f32 %v1168_v60, %v5865_v23  ;;  %vm1620_vm2 = vcmp.gt.f32.partialorder %v1556_v16, 0.0  ;;  %v1684_v47 = vmul.f32 0.01, %v1556_v16  ;;  %v4988_v60 = vpop.permute.xlu1 %973 }
 0x22b   : > { %v1710_v55 = vsel %vm1582_vm0, %v1518_v30, %v1646_v5  ;;  %3571 = vmatprep.mubr.msk.bf16.mxu1 %vm1819_vm1, %v2719_v57  ;;  %v1488_v25 = vrot.slane %v4854_v2, 2  ;;  %v1177_v6 = vrot.slane %v4842_v43, 1  ;;  %v1137_v20 = vrot.slane %v4872_v11, 1  ;;  %v5867_v43 = vld [vmem:[#allocation38_spill] sm:$0xff]  ;;  %v4984_v11 = vpop.permute.xlu0 %1035 }
 0x22c   : > { %v1774_v44 = vadd.f32 %v4597_v35, %v1710_v55  ;;  %v1748_v40 = vsel %vm1620_vm2, %v1556_v16, %v1684_v47  ;;  %v1525_v18 = vadd.f32 %v1461_v37, %v1205_v54  ;;  %v1175_v19 = vrot.slane %v4862_v39, 1 }
 0x22d   : > { %v1457_v49 = vrot.slane %v4910_v32, 2  ;;  %v1812_v42 = vadd.f32 %v4597_v35, %v1748_v40  ;;  %v1552_v62 = vadd.f32 %v1488_v25, %v1232_v63  ;;  %v4981_v1 = vadd.f32 %v1177_v6, %v5866_v31  ;;  %v5868_v32 = vld [vmem:[#allocation50_spill] sm:$0xff] }
 0x22e   : > { %v1953_v28 = vsel %vm1819_vm1, %v1774_v44, -inf  ;;  %vm1589_vm3 = vcmp.gt.f32.partialorder %v1525_v18, 0.0  ;;  %v1653_v2 = vmul.f32 0.01, %v1525_v18  ;;  %v1201_v36 = vadd.f32 %v1137_v20, %v5867_v43 }
 0x22f   : > { %v1954_v17 = vrot.slane %v1953_v28, 4  ;;  %v2219_v3 = vsel %vm1819_vm1, %v1812_v42, -inf  ;;  %vm1616_vm4 = vcmp.gt.f32.partialorder %v1552_v62, 0.0  ;;  %v1680_v39 = vmul.f32 0.01, %v1552_v62  ;;  %v5001_v25 = vpop.permute.xlu0 %1355 }
 0x230   : > { %v1239_v30 = vadd.f32 %v1175_v19, %v5868_v32  ;;  %v2220_v27 = vrot.slane %v2219_v3, 4  ;;  %v1717_v8 = vsel %vm1589_vm3, %v1525_v18, %v1653_v2  ;;  %v1521_v15 = vadd.f32 %v1457_v49, %v1201_v36  ;;  %v5869_v32 = vld [vmem:[#allocation39_spill] sm:$0xff] }
 0x231   : > { %v1955_v13 = vmax.f32 %v1953_v28, %v1954_v17  ;;  %v4993_v14 = vmax.f32 %v4896_v38, %v2238_v52  ;;  %v1781_v5 = vadd.f32 %v4597_v35, %v1717_v8  ;;  %v1744_v16 = vsel %vm1616_vm4, %v1552_v62, %v1680_v39  ;;  %v5004_v28 = vpop.permute.xlu1 %1293 }
 0x232   : > { %v1495_v57 = vrot.slane %v4885_v10, 2  ;;  %v2221_v24 = vmax.f32 %v2219_v3, %v2220_v27  ;;  %v1808_v54 = vadd.f32 %v4597_v35, %v1744_v16  ;;  %vm1585_vm6 = vcmp.gt.f32.partialorder %v1521_v15, 0.0 }
 0x233   : > { %v1956_v7 = vrot.slane %v1955_v13, 2  ;;  %v2002_v23 = vsel %vm1819_vm1, %v1781_v5, -inf  ;;  %v1649_v63 = vmul.f32 0.01, %v1521_v15  ;;  %v1135_v47 = vrot.slane %v4935_v12, 1 }
 0x234   : > { %v1559_v55 = vadd.f32 %v1495_v57, %v1239_v30  ;;  %v2222_v44 = vrot.slane %v2221_v24, 2  ;;  %v2003_v38 = vrot.slane %v2002_v23, 4  ;;  %v2191_v52 = vsel %vm1819_vm1, %v1808_v54, -inf }
 0x235   : > { %v1957_v37 = vmax.f32 %v1955_v13, %v1956_v7  ;;  %v2192_v6 = vrot.slane %v2191_v52, 4  ;;  %v1713_v10 = vsel %vm1585_vm6, %v1521_v15, %v1649_v63  ;;  %vm2327_vm8 = vcmp.gt.f32.partialorder %v4993_v14, 0.0  ;;  %v5011_v15 = vpop.permute.xlu0 %969 }
 0x236   : > { %vm1623_vm7 = vcmp.gt.f32.partialorder %v1559_v55, 0.0  ;;  %v1687_v20 = vmul.f32 0.01, %v1559_v55  ;;  %v2223_v18 = vmax.f32 %v2221_v24, %v2222_v44  ;;  %v2004_v19 = vmax.f32 %v2002_v23, %v2003_v38 }
 0x237   : > { %v1958_v40 = vrot.slane %v1957_v37, 1  ;;  %v1777_v49 = vadd.f32 %v4597_v35, %v1713_v10  ;;  %v2193_v12 = vmax.f32 %v2191_v52, %v2192_v6  ;;  %v1455_v62 = vrot.slane %v4961_v34, 2 }
 0x238   : > { %v1751_v42 = vsel %vm1623_vm7, %v1559_v55, %v1687_v20  ;;  %v2224_v17 = vrot.slane %v2223_v18, 1  ;;  %v2005_v2 = vrot.slane %v2004_v19, 2  ;;  %v1199_v30 = vadd.f32 %v1135_v47, %v5869_v32 }
 0x239   : > { %v1959_v31 = vmax.f32 %v1957_v37, %v1958_v40  ;;  %v1974_v43 = vsel %vm1819_vm1, %v1777_v49, -inf  ;;  %v2194_v36 = vrot.slane %v2193_v12, 2  ;;  %v1815_v39 = vadd.f32 %v4597_v35, %v1751_v42  ;;  %v5016_v35 = vpop.permute.xlu1 %1045 }
 0x23a   : > { %v1975_v3 = vrot.slane %v1974_v43, 4  ;;  %v2225_v27 = vmax.f32 %v2223_v18, %v2224_v17  ;;  %v2006_v8 = vmax.f32 %v2004_v19, %v2005_v2  ;;  %v1519_v57 = vadd.f32 %v1455_v62, %v1199_v30  ;;  %v5020_v19 = vpop.permute.xlu0 %1289  ;;  %v5870_v62 = vld [vmem:[#allocation47_spill] sm:$0xff] }
 0x23b   : > { %vm2287_vm9 = vcmp.gt.f32.partialorder %v1959_v31, 0.0  ;;  %v2351_v13 = vmul.f32 0.01, %v1959_v31  ;;  %v2195_v5 = vmax.f32 %v2193_v12, %v2194_v36  ;;  %v2240_v34 = vsel %vm1819_vm1, %v1815_v39, -inf  ;;  %v5037_v36 = vld [vmem:[%s5736_s2 + $0x8] sm:$0xff] }
 0x23c   : > { %v1976_v16 = vmax.f32 %v1974_v43, %v1975_v3  ;;  %v2391_v7 = vmul.f32 0.01, %v4993_v14  ;;  %v2007_v54 = vrot.slane %v2006_v8, 1  ;;  %v1142_v23 = vrot.slane %v4916_v22, 1 }
 0x23d   : > { %v2415_v24 = vsel %vm2287_vm9, %v1959_v31, %v2351_v13  ;;  %v2389_v55 = vmul.f32 0.01, %v2225_v27  ;;  %v2241_v37 = vrot.slane %v2240_v34, 4  ;;  %vm2325_vm0 = vcmp.gt.f32.partialorder %v2225_v27, 0.0 }
 0x23e   : > { %v2479_v63 = vpack.c.bf16 %v2415_v24, %v2415_v24  ;;  %v1977_v47 = vrot.slane %v1976_v16, 2  ;;  %v2008_v44 = vmax.f32 %v2006_v8, %v2007_v54  ;;  %vm1583_vm2 = vcmp.gt.f32.partialorder %v1519_v57, 0.0  ;;  %v5871_v24 = vld [vmem:[#allocation40_spill] sm:$0xff] }
 0x23f   : > { %v1647_v38 = vmul.f32 0.01, %v1519_v57  ;;  %v2196_v10 = vrot.slane %v2195_v5, 1  ;;  %v2242_v18 = vmax.f32 %v2240_v34, %v2241_v37  ;;  %v5025_v49 = vsel %vm2327_vm8, %v4993_v14, %v2391_v7  ;;  %v5040_v14 = vpop.permute.xlu1 %1365 }
 0x240   : > { %v2611_v6 = vunpack.c.l.b16 %v2479_v63  ;;  %v1978_v20 = vmax.f32 %v1976_v16, %v1977_v47  ;;  %vm2294_vm3 = vcmp.gt.f32.partialorder %v2008_v44, 0.0  ;;  %v2358_v40 = vmul.f32 0.01, %v2008_v44  ;;  %v5872_v63 = vld [vmem:[#allocation8_spill] sm:$0xff] }
 0x241   : > { %v1711_v22 = vsel %vm1583_vm2, %v1519_v57, %v1647_v38  ;;  %v5031_v42 = vsel %vm2325_vm0, %v2225_v27, %v2389_v55  ;;  %v1206_v31 = vadd.f32 %v1142_v23, %v5870_v62  ;;  %v2243_v43 = vrot.slane %v2242_v18, 2 }
 0x242   : > { %v5029_v12 = vsel %vm2660_vm11, %v2611_v6, %v4953_v45  ;;  %v2422_v17 = vsel %vm2294_vm3, %v2008_v44, %v2358_v40  ;;  %v1979_v2 = vrot.slane %v1978_v20, 1  ;;  %v1775_v3 = vadd.f32 %v5037_v36, %v1711_v22 }
 0x243   : > { %v5042_v39 = vmax.f32 %v2195_v5, %v2196_v10  ;;  %v1462_v45 = vrot.slane %v4946_v58, 2  ;;  %v1171_v32 = vrot.slane %v4984_v11, 1  ;;  %v1178_v30 = vrot.slane %v4969_v9, 1  ;;  %v966_v11 = vpop.permute.xlu0 %965  ;;  %v5060_v6 = vpop.permute.xlu1 %983 }
 0x244   : > { %v1980_v13 = vmax.f32 %v1978_v20, %v1979_v2  ;;  %v2244_v27 = vmax.f32 %v2242_v18, %v2243_v43  ;;  %v1960_v8 = vsel %vm1819_vm1, %v1775_v3, -inf  ;;  %v1491_v16 = vrot.slane %v5001_v25, 2 }
 0x245   : > { %v2486_v34 = vpack.c.bf16 %v2422_v17, %v2422_v17  ;;  %v1961_v57 = vrot.slane %v1960_v8, 4  ;;  %v1526_v7 = vadd.f32 %v1462_v45, %v1206_v31  ;;  %v1235_v54 = vadd.f32 %v1171_v32, %v5871_v24  ;;  %v5873_v45 = vld [vmem:[#allocation48_spill] sm:$0xff] }
 0x246   : > { %vm2290_vm4 = vcmp.gt.f32.partialorder %v1980_v13, 0.0  ;;  %v2354_v5 = vmul.f32 0.01, %v1980_v13  ;;  %v2245_v23 = vrot.slane %v2244_v27, 1  ;;  %v5051_v58 = vadd.f32 %v1178_v30, %v5872_v63 }
 0x247   : > { %v1962_v55 = vmax.f32 %v1960_v8, %v1961_v57  ;;  %vm1590_vm6 = vcmp.gt.f32.partialorder %v1526_v7, 0.0  ;;  %v1654_v9 = vmul.f32 0.01, %v1526_v7  ;;  %v1555_v47 = vadd.f32 %v1491_v16, %v1235_v54 }
 0x248   : > { %v5055_v25 = vsel %vm2290_vm4, %v1980_v13, %v2354_v5  ;;  %v5057_v44 = vmax.f32 %v2244_v27, %v2245_v23  ;;  %v1140_v38 = vrot.slane %v4988_v60, 1  ;;  %v1138_v40 = vrot.slane %v5011_v15, 1  ;;  %v1286_v13 = vpop.permute.xlu0 %1285  ;;  %v5083_v23 = vpop.permute.xlu1 %1303 }
 0x249   : > { %v1963_v10 = vrot.slane %v1962_v55, 2  ;;  %v1718_v20 = vsel %vm1590_vm6, %v1526_v7, %v1654_v9  ;;  %vm1619_vm7 = vcmp.gt.f32.partialorder %v1555_v47, 0.0  ;;  %v2517_v18 = vpack.c.bf16 %v5031_v42, %v5031_v42 }
 0x24a   : > { %v5066_v22 = vmul.f32 0.01, %v5042_v39  ;;  %v1782_v62 = vadd.f32 %v5037_v36, %v1718_v20  ;;  %v1683_v31 = vmul.f32 0.01, %v1555_v47  ;;  %v5069_v17 = vunpack.c.l.b16 %v2486_v34  ;;  %v5874_v34 = vld [vmem:[#allocation42_spill] sm:$0xff] }
 0x24b   : > { %v2482_v60 = vpack.c.bf16 %v5055_v25, %v5055_v25  ;;  %v5074_v2 = vmul.f32 0.01, %v5057_v44  ;;  %v1964_v43 = vmax.f32 %v1962_v55, %v1963_v10  ;;  %v1204_v32 = vadd.f32 %v1140_v38, %v5873_v45  ;;  %v5876_v45 = vld [vmem:[#allocation44_spill] sm:$0xff] }
 0x24c   : > { %v2009_v15 = vsel %vm1819_vm1, %v1782_v62, -inf  ;;  %v1747_v3 = vsel %vm1619_vm7, %v1555_v47, %v1683_v31  ;;  %v1460_v30 = vrot.slane %v5004_v28, 2  ;;  %v1202_v57 = vadd.f32 %v1138_v40, %v5874_v34  ;;  %v5875_v62 = vld [vmem:[#allocation9_spill] sm:$0xff]  ;;  %v5093_v34 = vpop.permute.xlu1 %979 }
 0x24d   : > { %v1965_v27 = vrot.slane %v1964_v43, 1  ;;  %v2010_v8 = vrot.slane %v2009_v15, 4  ;;  %v1811_v16 = vadd.f32 %v5037_v36, %v1747_v3  ;;  %v1458_v24 = vrot.slane %v5020_v19, 2  ;;  %v5088_v3 = vpop.permute.xlu0 %971 }
 0x24e   : > { %v1524_v7 = vadd.f32 %v1460_v30, %v1204_v32  ;;  %v1176_v54 = vrot.slane %v5016_v35, 1  ;;  %v1136_v5 = vrot.slane %v966_v11, 1  ;;  %v1496_v28 = vrot.slane %v5040_v14, 2 }
 0x24f   : > { %v1966_v63 = vmax.f32 %v1964_v43, %v1965_v27  ;;  %v2011_v55 = vmax.f32 %v2009_v15, %v2010_v8  ;;  %v2212_v9 = vsel %vm1819_vm1, %v1811_v16, -inf  ;;  %v1522_v10 = vadd.f32 %v1458_v24, %v1202_v57 }
 0x250   : > { %v2213_v47 = vrot.slane %v2212_v9, 4  ;;  %vm1588_vm8 = vcmp.gt.f32.partialorder %v1524_v7, 0.0  ;;  %v1652_v38 = vmul.f32 0.01, %v1524_v7  ;;  %v1240_v19 = vadd.f32 %v1176_v54, %v5875_v62 }
 0x251   : > { %vm2288_vm9 = vcmp.gt.f32.partialorder %v1966_v63, 0.0  ;;  %v2352_v20 = vmul.f32 0.01, %v1966_v63  ;;  %v2012_v40 = vrot.slane %v2011_v55, 2  ;;  %vm1586_vm0 = vcmp.gt.f32.partialorder %v1522_v10, 0.0 }
 0x252   : > { %v2214_v31 = vmax.f32 %v2212_v9, %v2213_v47  ;;  %v1716_v35 = vsel %vm1588_vm8, %v1524_v7, %v1652_v38  ;;  %v1650_v11 = vmul.f32 0.01, %v1522_v10  ;;  %vm2328_vm2 = vcmp.gt.f32.partialorder %v5057_v44, 0.0 }
 0x253   : > { %v2416_v43 = vsel %vm2288_vm9, %v1966_v63, %v2352_v20  ;;  %v2013_v15 = vmax.f32 %v2011_v55, %v2012_v40  ;;  %v1780_v14 = vadd.f32 %v5037_v36, %v1716_v35  ;;  %v1200_v32 = vadd.f32 %v1136_v5, %v5876_v45 }
 0x254   : > { %v2480_v30 = vpack.c.bf16 %v2416_v43, %v2416_v43  ;;  %v2215_v27 = vrot.slane %v2214_v31, 2  ;;  %v1714_v8 = vsel %vm1586_vm0, %v1522_v10, %v1650_v11  ;;  %v1560_v16 = vadd.f32 %v1496_v28, %v1240_v19  ;;  %v1292_v19 = vpop.permute.xlu0 %1291 }
 0x255   : > { %v2014_v57 = vrot.slane %v2013_v15, 1  ;;  %v1995_v7 = vsel %vm1819_vm1, %v1780_v14, -inf  ;;  %v1778_v24 = vadd.f32 %v5037_v36, %v1714_v8  ;;  %v1456_v54 = vrot.slane %v1286_v13, 2  ;;  %v1300_v14 = vpop.permute.xlu1 %1299 }
 0x256   : > { %v2612_v9 = vunpack.c.l.b16 %v2480_v30  ;;  %v2216_v47 = vmax.f32 %v2214_v31, %v2215_v27  ;;  %v1996_v63 = vrot.slane %v1995_v7, 4  ;;  %vm1624_vm3 = vcmp.gt.f32.partialorder %v1560_v16, 0.0 }
 0x257   : > { %v2015_v55 = vmax.f32 %v2013_v15, %v2014_v57  ;;  %v1981_v38 = vsel %vm1819_vm1, %v1778_v24, -inf  ;;  %v1688_v5 = vmul.f32 0.01, %v1560_v16  ;;  %v1520_v20 = vadd.f32 %v1456_v54, %v1200_v32 }
 0x258   : > { %v5100_v28 = vsel %vm2662_vm12, %v2612_v9, %v5029_v12  ;;  %v2217_v10 = vrot.slane %v2216_v47, 1  ;;  %v1997_v40 = vmax.f32 %v1995_v7, %v1996_v63  ;;  %v1982_v62 = vrot.slane %v1981_v38, 4  ;;  %v5119_v63 = vpop.permute.xlu0 %991 }
 0x259   : > { %vm2295_vm4 = vcmp.gt.f32.partialorder %v2015_v55, 0.0  ;;  %v2359_v35 = vmul.f32 0.01, %v2015_v55  ;;  %v1752_v13 = vsel %vm1624_vm3, %v1560_v16, %v1688_v5  ;;  %vm1584_vm6 = vcmp.gt.f32.partialorder %v1520_v20, 0.0 }
 0x25a   : > { %v2218_v31 = vmax.f32 %v2216_v47, %v2217_v10  ;;  %v1998_v11 = vrot.slane %v1997_v40, 2  ;;  %v1983_v43 = vmax.f32 %v1981_v38, %v1982_v62  ;;  %v1816_v15 = vadd.f32 %v5037_v36, %v1752_v13  ;;  %v5878_v13 = vld [vmem:[#allocation46_spill] sm:$0xff] }
 0x25b   : > { %v5106_v45 = vunpack.c.l.b16 %v2482_v60  ;;  %v2423_v12 = vsel %vm2295_vm4, %v2015_v55, %v2359_v35  ;;  %v1648_v32 = vmul.f32 0.01, %v1520_v20  ;;  %v1145_v30 = vrot.slane %v5060_v6, 1  ;;  %v5877_v6 = vld [vmem:[#allocation10_spill] sm:$0xff] }
 0x25c   : > { %v2487_v27 = vpack.c.bf16 %v2423_v12, %v2423_v12  ;;  %vm2324_vm7 = vcmp.gt.f32.partialorder %v2218_v31, 0.0  ;;  %v2388_v8 = vmul.f32 0.01, %v2218_v31  ;;  %v1999_v16 = vmax.f32 %v1997_v40, %v1998_v11 }
 0x25d   : > { %v1984_v57 = vrot.slane %v1983_v43, 2  ;;  %v2247_v7 = vsel %vm1819_vm1, %v1816_v15, -inf  ;;  %v1712_v24 = vsel %vm1584_vm6, %v1520_v20, %v1648_v32  ;;  %v1139_v54 = vrot.slane %v5088_v3, 1 }
 0x25e   : > { %v5116_v25 = vsel %vm2328_vm2, %v5057_v44, %v5074_v2  ;;  %v2000_v60 = vrot.slane %v1999_v16, 1  ;;  %v2248_v9 = vrot.slane %v2247_v7, 4  ;;  %v1209_v47 = vadd.f32 %v1145_v30, %v5877_v6  ;;  %v5127_v44 = vpop.permute.xlu1 %985 }
 0x25f   : > { %v5121_v55 = vunpack.c.l.b16 %v2487_v27  ;;  %v5123_v38 = vsel %vm2324_vm7, %v2218_v31, %v2388_v8  ;;  %v1985_v5 = vmax.f32 %v1983_v43, %v1984_v57  ;;  %v1776_v20 = vadd.f32 %v5037_v36, %v1712_v24  ;;  %v5879_v8 = vld [vmem:[#allocation11_spill] sm:$0xff]  ;;  %v1312_v24 = vpop.permute.xlu0 %1311 }
 0x260   : > { %v2001_v3 = vmax.f32 %v1999_v16, %v2000_v60  ;;  %v2249_v10 = vmax.f32 %v2247_v7, %v2248_v9  ;;  %v1465_v40 = vrot.slane %v5083_v23, 2  ;;  %v1459_v62 = vrot.slane %v1292_v19, 2 }
 0x261   : > { %v1986_v2 = vrot.slane %v1985_v5, 1  ;;  %v1967_v35 = vsel %vm1819_vm1, %v1776_v20, -inf  ;;  %v1203_v11 = vadd.f32 %v1139_v54, %v5878_v13  ;;  %v1143_v15 = vrot.slane %v5093_v34, 1 }
 0x262   : > { %vm2293_vm8 = vcmp.gt.f32.partialorder %v2001_v3, 0.0  ;;  %v2357_v31 = vmul.f32 0.01, %v2001_v3  ;;  %v2250_v12 = vrot.slane %v2249_v10, 2  ;;  %v1968_v43 = vrot.slane %v1967_v35, 4  ;;  %v1306_v20 = vpop.permute.xlu1 %1305 }
 0x263   : > { %v1987_v32 = vmax.f32 %v1985_v5, %v1986_v2  ;;  %v1529_v30 = vadd.f32 %v1465_v40, %v1209_v47  ;;  %v1523_v27 = vadd.f32 %v1459_v62, %v1203_v11  ;;  %v1207_v16 = vadd.f32 %v1143_v15, %v5879_v8 }
 0x264   : > { %v2421_v23 = vsel %vm2293_vm8, %v2001_v3, %v2357_v31  ;;  %v2251_v19 = vmax.f32 %v2249_v10, %v2250_v12  ;;  %v1969_v57 = vmax.f32 %v1967_v35, %v1968_v43  ;;  %v1463_v7 = vrot.slane %v1300_v14, 2 }
 0x265   : > { %v2485_v60 = vpack.c.bf16 %v2421_v23, %v2421_v23  ;;  %vm2291_vm9 = vcmp.gt.f32.partialorder %v1987_v32, 0.0  ;;  %v2355_v9 = vmul.f32 0.01, %v1987_v32  ;;  %vm1593_vm0 = vcmp.gt.f32.partialorder %v1529_v30, 0.0 }
 0x266   : > { %v2252_v54 = vrot.slane %v2251_v19, 1  ;;  %v1970_v34 = vrot.slane %v1969_v57, 2  ;;  %v1657_v6 = vmul.f32 0.01, %v1529_v30  ;;  %vm1587_vm2 = vcmp.gt.f32.partialorder %v1523_v27, 0.0 }
 0x267   : > { %v2516_v47 = vpack.c.bf16 %v5123_v38, %v5123_v38  ;;  %v2419_v5 = vsel %vm2291_vm9, %v1987_v32, %v2355_v9  ;;  %v1651_v40 = vmul.f32 0.01, %v1523_v27  ;;  %v1527_v62 = vadd.f32 %v1463_v7, %v1207_v16  ;;  %v988_v32 = vpop.permute.xlu0 %987 }
 0x268   : > { %v2483_v3 = vpack.c.bf16 %v2419_v5, %v2419_v5  ;;  %v5135_v10 = vmax.f32 %v2251_v19, %v2252_v54  ;;  %v1971_v14 = vmax.f32 %v1969_v57, %v1970_v34  ;;  %v1721_v2 = vsel %vm1593_vm0, %v1529_v30, %v1657_v6  ;;  %v5880_v54 = vld [vmem:[#allocation53_spill] sm:$0xff] }
 0x269   : > { %v1785_v35 = vadd.f32 %v5037_v36, %v1721_v2  ;;  %v1715_v13 = vsel %vm1587_vm2, %v1523_v27, %v1651_v40  ;;  %vm1591_vm3 = vcmp.gt.f32.partialorder %v1527_v62, 0.0  ;;  %v1655_v11 = vmul.f32 0.01, %v1527_v62 }
 0x26a   : > { %v5138_v15 = vunpack.c.l.b16 %v2485_v60  ;;  %v5140_v31 = vunpack.c.l.b16 %v2483_v3  ;;  %v5143_v12 = vmul.f32 0.01, %v5135_v10  ;;  %v1972_v43 = vrot.slane %v1971_v14, 1  ;;  %v982_v60 = vpop.permute.xlu1 %981 }
 0x26b   : > { %v2030_v8 = vsel %vm1819_vm1, %v1785_v35, -inf  ;;  %v1779_v16 = vadd.f32 %v5037_v36, %v1715_v13  ;;  %v1719_v23 = vsel %vm1591_vm3, %v1527_v62, %v1655_v11  ;;  %v1149_v30 = vrot.slane %v5119_v63, 1  ;;  %v5881_v63 = vld [vmem:[#allocation51_spill] sm:$0xff]  ;;  %v1308_v52 = vpop.permute.xlu0 %1307 }
 0x26c   : > { %v1973_v19 = vmax.f32 %v1971_v14, %v1972_v43  ;;  %v2031_v27 = vrot.slane %v2030_v8, 4  ;;  %v1783_v57 = vadd.f32 %v5037_v36, %v1719_v23  ;;  %v1146_v7 = vrot.slane %v5127_v44, 1 }
 0x26d   : > { %v1988_v9 = vsel %vm1819_vm1, %v1779_v16, -inf  ;;  %v1213_v34 = vadd.f32 %v1149_v30, %v5880_v54  ;;  %v1469_v6 = vrot.slane %v1312_v24, 2  ;;  %v1466_v5 = vrot.slane %v1306_v20, 2 }
 0x26e   : > { %vm2289_vm4 = vcmp.gt.f32.partialorder %v1973_v19, 0.0  ;;  %v2353_v40 = vmul.f32 0.01, %v1973_v19  ;;  %v2032_v3 = vmax.f32 %v2030_v8, %v2031_v27  ;;  %v1989_v2 = vrot.slane %v1988_v9, 4  ;;  %v5882_v8 = vld [vmem:[#allocation54_spill] sm:$0xff]  ;;  %v1302_v48 = vpop.permute.xlu1 %1301 }
 0x26f   : > { %v2016_v62 = vsel %vm1819_vm1, %v1783_v57, -inf  ;;  %v1210_v14 = vadd.f32 %v1146_v7, %v5881_v63  ;;  %v1533_v35 = vadd.f32 %v1469_v6, %v1213_v34  ;;  %v1147_v13 = vrot.slane %v988_v32, 1 }
 0x270   : > { %v2417_v11 = vsel %vm2289_vm4, %v1973_v19, %v2353_v40  ;;  %v2033_v43 = vrot.slane %v2032_v3, 2  ;;  %v1990_v44 = vmax.f32 %v1988_v9, %v1989_v2  ;;  %v2017_v23 = vrot.slane %v2016_v62, 4 }
 0x271   : > { %v2481_v16 = vpack.c.bf16 %v2417_v11, %v2417_v11  ;;  %vm1597_vm6 = vcmp.gt.f32.partialorder %v1533_v35, 0.0  ;;  %v1661_v30 = vmul.f32 0.01, %v1533_v35  ;;  %v1530_v24 = vadd.f32 %v1466_v5, %v1210_v14  ;;  %v994_v11 = vpop.permute.xlu0 %993 }
 0x272   : > { %v2034_v20 = vmax.f32 %v2032_v3, %v2033_v43  ;;  %v1991_v54 = vrot.slane %v1990_v44, 2  ;;  %v2018_v37 = vmax.f32 %v2016_v62, %v2017_v23  ;;  %v1211_v27 = vadd.f32 %v1147_v13, %v5882_v8  ;;  %v5883_v23 = vld [vmem:[#allocation52_spill] sm:$0xff] }
 0x273   : > { %v5155_v57 = vunpack.c.l.b16 %v2481_v16  ;;  %v1725_v7 = vsel %vm1597_vm6, %v1533_v35, %v1661_v30  ;;  %vm1594_vm7 = vcmp.gt.f32.partialorder %v1530_v24, 0.0  ;;  %v1658_v32 = vmul.f32 0.01, %v1530_v24 }
 0x274   : > { %v2035_v19 = vrot.slane %v2034_v20, 1  ;;  %v1992_v34 = vmax.f32 %v1990_v44, %v1991_v54  ;;  %v2019_v9 = vrot.slane %v2018_v37, 2  ;;  %v1789_v6 = vadd.f32 %v5037_v36, %v1725_v7 }
 0x275   : > { %v1722_v40 = vsel %vm1594_vm7, %v1530_v24, %v1658_v32  ;;  %v1144_v2 = vrot.slane %v982_v60, 1  ;;  %v1467_v63 = vrot.slane %v1308_v52, 2  ;;  %v1464_v5 = vrot.slane %v1302_v48, 2 }
 0x276   : > { %v2036_v3 = vmax.f32 %v2034_v20, %v2035_v19  ;;  %v1993_v14 = vrot.slane %v1992_v34, 1  ;;  %v2020_v62 = vmax.f32 %v2018_v37, %v2019_v9  ;;  %v2058_v13 = vsel %vm1819_vm1, %v1789_v6, -inf }
 0x277   : > { %v2059_v43 = vrot.slane %v2058_v13, 4  ;;  %v1786_v35 = vadd.f32 %v5037_v36, %v1722_v40  ;;  %v1208_v16 = vadd.f32 %v1144_v2, %v5883_v23  ;;  %v1531_v30 = vadd.f32 %v1467_v63, %v1211_v27 }
 0x278   : > { %vm2298_vm8 = vcmp.gt.f32.partialorder %v2036_v3, 0.0  ;;  %v2362_v44 = vmul.f32 0.01, %v2036_v3  ;;  %v1994_v54 = vmax.f32 %v1992_v34, %v1993_v14  ;;  %v2021_v8 = vrot.slane %v2020_v62, 1  ;;  %v1314_v34 = vpop.permute.xlu0 %1313 }
 0x279   : > { %v2060_v24 = vmax.f32 %v2058_v13, %v2059_v43  ;;  %v2037_v52 = vsel %vm1819_vm1, %v1786_v35, -inf  ;;  %vm1595_vm9 = vcmp.gt.f32.partialorder %v1531_v30, 0.0  ;;  %v1659_v48 = vmul.f32 0.01, %v1531_v30  ;;  %v990_v43 = vpop.permute.xlu1 %989 }
 0x27a   : > { %v2426_v60 = vsel %vm2298_vm8, %v2036_v3, %v2362_v44  ;;  %vm2292_vm0 = vcmp.gt.f32.partialorder %v1994_v54, 0.0  ;;  %v2356_v37 = vmul.f32 0.01, %v1994_v54  ;;  %v2022_v20 = vmax.f32 %v2020_v62, %v2021_v8 }
 0x27b   : > { %v2490_v7 = vpack.c.bf16 %v2426_v60, %v2426_v60  ;;  %v2061_v32 = vrot.slane %v2060_v24, 2  ;;  %v2038_v19 = vrot.slane %v2037_v52, 4  ;;  %v1723_v9 = vsel %vm1595_vm9, %v1531_v30, %v1659_v48 }
 0x27c   : > { %v2420_v6 = vsel %vm2292_vm0, %v1994_v54, %v2356_v37  ;;  %vm2296_vm2 = vcmp.gt.f32.partialorder %v2022_v20, 0.0  ;;  %v2360_v27 = vmul.f32 0.01, %v2022_v20  ;;  %v1787_v40 = vadd.f32 %v5037_v36, %v1723_v9  ;;  %v5884_v37 = vld [vmem:[#allocation55_spill] sm:$0xff] }
 0x27d   : > { %v5163_v2 = vunpack.c.l.b16 %v2490_v7  ;;  %v2484_v63 = vpack.c.bf16 %v2420_v6, %v2420_v6  ;;  %v2062_v14 = vmax.f32 %v2060_v24, %v2061_v32  ;;  %v2039_v13 = vmax.f32 %v2037_v52, %v2038_v19  ;;  %v1352_v19 = vpop.permute.xlu0 %1351 }
 0x27e   : > { %v2424_v3 = vsel %vm2296_vm2, %v2022_v20, %v2360_v27  ;;  %v2044_v35 = vsel %vm1819_vm1, %v1787_v40, -inf  ;;  %v1528_v62 = vadd.f32 %v1464_v5, %v1208_v16  ;;  %v1150_v23 = vrot.slane %v994_v11, 1 }
 0x27f   : > { %v2616_v44 = vunpack.c.l.b16 %v2484_v63  ;;  %v2488_v8 = vpack.c.bf16 %v2424_v3, %v2424_v3  ;;  %v2063_v30 = vrot.slane %v2062_v14, 1  ;;  %v2040_v54 = vrot.slane %v2039_v13, 2  ;;  %v1310_v63 = vpop.permute.xlu1 %1309 }
 0x280   : > { %v2045_v48 = vrot.slane %v2044_v35, 4  ;;  %vm1592_vm3 = vcmp.gt.f32.partialorder %v1528_v62, 0.0  ;;  %v1656_v60 = vmul.f32 0.01, %v1528_v62  ;;  %v1214_v9 = vadd.f32 %v1150_v23, %v5884_v37 }
 0x281   : > { %v2684_v7 = vsel %vm2656_vm5, %v5138_v15, %v2616_v44  ;;  %v2620_v24 = vunpack.c.l.b16 %v2488_v8  ;;  %v2064_v52 = vmax.f32 %v2062_v14, %v2063_v30  ;;  %v2041_v32 = vmax.f32 %v2039_v13, %v2040_v54 }
 0x282   : > { %v2685_v20 = vsel %vm2658_vm10, %v5069_v17, %v2684_v7  ;;  %v2046_v5 = vmax.f32 %v2044_v35, %v2045_v48  ;;  %v1720_v11 = vsel %vm1592_vm3, %v1528_v62, %v1656_v60  ;;  %v1470_v16 = vrot.slane %v1314_v34, 2  ;;  %v1354_v7 = vpop.permute.xlu0 %1353 }
 0x283   : > { %v2686_v6 = vsel %vm2660_vm11, %v5121_v55, %v2685_v20  ;;  %vm2302_vm4 = vcmp.gt.f32.partialorder %v2064_v52, 0.0  ;;  %v2366_v27 = vmul.f32 0.01, %v2064_v52  ;;  %v2042_v40 = vrot.slane %v2041_v32, 1  ;;  %v1368_v20 = vpop.permute.xlu1 %1367 }
 0x284   : > { %v5174_v3 = vsel %vm2662_vm12, %v2620_v24, %v2686_v6  ;;  %v2047_v15 = vrot.slane %v2046_v5, 2  ;;  %v1784_v14 = vadd.f32 %v5037_v36, %v1720_v11  ;;  %v1534_v13 = vadd.f32 %v1470_v16, %v1214_v9 }
 0x285   : > { %v2430_v23 = vsel %vm2302_vm4, %v2064_v52, %v2366_v27  ;;  %v2043_v17 = vmax.f32 %v2041_v32, %v2042_v40  ;;  %v1148_v35 = vrot.slane %v990_v43, 1  ;;  %v1489_v62 = vrot.slane %v1352_v19, 2 }
 0x286   : > { %v2494_v34 = vpack.c.bf16 %v2430_v23, %v2430_v23  ;;  %v2048_v44 = vmax.f32 %v2046_v5, %v2047_v15  ;;  %v2023_v8 = vsel %vm1819_vm1, %v1784_v14, -inf  ;;  %vm1598_vm6 = vcmp.gt.f32.partialorder %v1534_v13, 0.0 }
 0x287   : > { %vm2299_vm7 = vcmp.gt.f32.partialorder %v2043_v17, 0.0  ;;  %v2363_v55 = vmul.f32 0.01, %v2043_v17  ;;  %v2024_v30 = vrot.slane %v2023_v8, 4  ;;  %v1662_v54 = vmul.f32 0.01, %v1534_v13 }
 0x288   : > { %v5178_v48 = vunpack.c.l.b16 %v2494_v34  ;;  %v2049_v60 = vrot.slane %v2048_v44, 1  ;;  %v1212_v37 = vadd.f32 %v1148_v35, %v4361_v4  ;;  %v1553_v9 = vadd.f32 %v1489_v62, %v4781_v0 }
 0x289   : > { %v2427_v24 = vsel %vm2299_vm7, %v2043_v17, %v2363_v55  ;;  %v2025_v43 = vmax.f32 %v2023_v8, %v2024_v30  ;;  %v1726_v52 = vsel %vm1598_vm6, %v1534_v13, %v1662_v54  ;;  %v1468_v32 = vrot.slane %v1310_v63, 2  ;;  %v1370_v30 = vpop.permute.xlu1 %1369 }
 0x28a   : > { %v2491_v5 = vpack.c.bf16 %v2427_v24, %v2427_v24  ;;  %v2050_v11 = vmax.f32 %v2048_v44, %v2049_v60  ;;  %v1790_v16 = vadd.f32 %v5037_v36, %v1726_v52  ;;  %vm1617_vm8 = vcmp.gt.f32.partialorder %v1553_v9, 0.0 }
 0x28b   : > { %v2026_v19 = vrot.slane %v2025_v43, 2  ;;  %v1681_v6 = vmul.f32 0.01, %v1553_v9  ;;  %v1532_v27 = vadd.f32 %v1468_v32, %v1212_v37  ;;  %v1490_v40 = vrot.slane %v1354_v7, 2 }
 0x28c   : > { %v5183_v15 = vunpack.c.l.b16 %v2491_v5  ;;  %vm2300_vm9 = vcmp.gt.f32.partialorder %v2050_v11, 0.0  ;;  %v2364_v4 = vmul.f32 0.01, %v2050_v11  ;;  %v2065_v0 = vsel %vm1819_vm1, %v1790_v16, -inf }
 0x28d   : > { %v2027_v14 = vmax.f32 %v2025_v43, %v2026_v19  ;;  %v2066_v23 = vrot.slane %v2065_v0, 4  ;;  %v1745_v13 = vsel %vm1617_vm8, %v1553_v9, %v1681_v6  ;;  %vm1596_vm0 = vcmp.gt.f32.partialorder %v1532_v27, 0.0 }
 0x28e   : > { %v2428_v63 = vsel %vm2300_vm9, %v2050_v11, %v2364_v4  ;;  %v1809_v17 = vadd.f32 %v5037_v36, %v1745_v13  ;;  %v1660_v35 = vmul.f32 0.01, %v1532_v27  ;;  %v1554_v62 = vadd.f32 %v1490_v40, %v4964_v59 }
 0x28f   : > { %v2492_v34 = vpack.c.bf16 %v2428_v63, %v2428_v63  ;;  %v2028_v44 = vrot.slane %v2027_v14, 1  ;;  %v2067_v8 = vmax.f32 %v2065_v0, %v2066_v23  ;;  %v1497_v55 = vrot.slane %v1368_v20, 2 }
 0x290   : > { %v2198_v54 = vsel %vm1819_vm1, %v1809_v17, -inf  ;;  %v1724_v60 = vsel %vm1596_vm0, %v1532_v27, %v1660_v35  ;;  %vm1618_vm2 = vcmp.gt.f32.partialorder %v1554_v62, 0.0  ;;  %v1682_v37 = vmul.f32 0.01, %v1554_v62 }
 0x291   : > { %v5189_v7 = vunpack.c.l.b16 %v2492_v34  ;;  %v2029_v9 = vmax.f32 %v2027_v14, %v2028_v44  ;;  %v2068_v24 = vrot.slane %v2067_v8, 2  ;;  %v2199_v43 = vrot.slane %v2198_v54, 4 }
 0x292   : > { %v1788_v52 = vadd.f32 %v5037_v36, %v1724_v60  ;;  %v1746_v32 = vsel %vm1618_vm2, %v1554_v62, %v1682_v37  ;;  %v1561_v59 = vadd.f32 %v1497_v55, %v4981_v1  ;;  %v1498_v5 = vrot.slane %v1370_v30, 2 }
 0x293   : > { %vm2297_vm3 = vcmp.gt.f32.partialorder %v2029_v9, 0.0  ;;  %v2361_v11 = vmul.f32 0.01, %v2029_v9  ;;  %v2069_v20 = vmax.f32 %v2067_v8, %v2068_v24  ;;  %v2200_v16 = vmax.f32 %v2198_v54, %v2199_v43 }
 0x294   : > { %v2051_v19 = vsel %vm1819_vm1, %v1788_v52, -inf  ;;  %v1810_v6 = vadd.f32 %v5037_v36, %v1746_v32  ;;  %vm1625_vm4 = vcmp.gt.f32.partialorder %v1561_v59, 0.0  ;;  %v1689_v27 = vmul.f32 0.01, %v1561_v59 }
 0x295   : > { %v2425_v40 = vsel %vm2297_vm3, %v2029_v9, %v2361_v11  ;;  %v2070_v4 = vrot.slane %v2069_v20, 1  ;;  %v2201_v0 = vrot.slane %v2200_v16, 2  ;;  %v2052_v14 = vrot.slane %v2051_v19, 4 }
 0x296   : > { %v2489_v23 = vpack.c.bf16 %v2425_v40, %v2425_v40  ;;  %v2205_v13 = vsel %vm1819_vm1, %v1810_v6, -inf  ;;  %v1753_v63 = vsel %vm1625_vm4, %v1561_v59, %v1689_v27  ;;  %v1562_v1 = vadd.f32 %v1498_v5, %v5051_v58 }
 0x297   : > { %v2071_v17 = vmax.f32 %v2069_v20, %v2070_v4  ;;  %v2202_v35 = vmax.f32 %v2200_v16, %v2201_v0  ;;  %v2053_v62 = vmax.f32 %v2051_v19, %v2052_v14  ;;  %v2206_v34 = vrot.slane %v2205_v13, 4 }
 0x298   : > { %v2621_v44 = vunpack.c.l.b16 %v2489_v23  ;;  %v1817_v8 = vadd.f32 %v5037_v36, %v1753_v63  ;;  %vm1626_vm6 = vcmp.gt.f32.partialorder %v1562_v1, 0.0  ;;  %v1690_v55 = vmul.f32 0.01, %v1562_v1 }
 0x299   : > { %vm2303_vm7 = vcmp.gt.f32.partialorder %v2071_v17, 0.0  ;;  %v2367_v30 = vmul.f32 0.01, %v2071_v17  ;;  %v2203_v54 = vrot.slane %v2202_v35, 1  ;;  %v2054_v60 = vrot.slane %v2053_v62, 2 }
 0x29a   : > { %vm2304_vm8 = vcmp.gt.f32.partialorder %v4427_v61, 0.0  ;;  %v2207_v37 = vmax.f32 %v2205_v13, %v2206_v34  ;;  %v2254_v9 = vsel %vm1819_vm1, %v1817_v8, -inf  ;;  %v1754_v24 = vsel %vm1626_vm6, %v1562_v1, %v1690_v55  ;;  %v5886_v34 = vld [vmem:[#allocation57_spill] sm:$0xff]  ;;  %v5887_v55 = vld [vmem:[#allocation20_spill] sm:$0xff] }
 0x29b   : > { %v2681_v58 = vsel %vm2664_vm13, %v5155_v57, %v5100_v28  ;;  %v2431_v43 = vsel %vm2303_vm7, %v2071_v17, %v2367_v30  ;;  %v5203_v52 = vmax.f32 %v2202_v35, %v2203_v54  ;;  %v2055_v32 = vmax.f32 %v2053_v62, %v2054_v60  ;;  %v5885_v62 = vld [vmem:[#allocation19_spill] sm:$0xff] }
 0x29c   : > { %v2255_v59 = vrot.slane %v2254_v9, 4  ;;  %vm2312_vm9 = vcmp.gt.f32.partialorder %v4539_v21, 0.0  ;;  %vm2313_vm0 = vcmp.gt.f32.partialorder %v4680_v53, 0.0  ;;  %v2495_v5 = vpack.c.bf16 %v2431_v43, %v2431_v43 }
 0x29d   : > { %v2208_v11 = vrot.slane %v2207_v37, 2  ;;  %v1818_v20 = vadd.f32 %v5037_v36, %v1754_v24  ;;  %v2682_v16 = vsel %vm5754_vm14, %v5106_v45, %v2681_v58  ;;  %v5211_v19 = vmul.f32 0.01, %v5203_v52  ;;  %v5888_v58 = vld [vmem:[#allocation18_spill] sm:$0xff] }
 0x29e   : > { %v2056_v28 = vrot.slane %v2055_v32, 1  ;;  %v2256_v57 = vmax.f32 %v2254_v9, %v2255_v59  ;;  %v2683_v6 = vsel %vm5753_vm15, %v5140_v31, %v2682_v16  ;;  %v5215_v27 = vunpack.c.l.b16 %v2495_v5  ;;  %v5889_v59 = vld [vmem:[#allocation58_spill] sm:$0xff] }
 0x29f   : > { %v2209_v40 = vmax.f32 %v2207_v37, %v2208_v11  ;;  %v2261_v4 = vsel %vm1819_vm1, %v1818_v20, -inf  ;;  %v2688_v0 = vsel %vm2664_vm13, %v2621_v44, %v5174_v3  ;;  %vm2305_vm2 = vcmp.gt.f32.partialorder %v4516_v41, 0.0 }
 0x2a0   : > { %v2057_v36 = vmax.f32 %v2055_v32, %v2056_v28  ;;  %v2257_v14 = vrot.slane %v2256_v57, 2  ;;  %v2262_v23 = vrot.slane %v2261_v4, 4  ;;  %v2689_v45 = vsel %vm5754_vm14, %v5163_v2, %v2688_v0 }
 0x2a1   : > { %v2210_v13 = vrot.slane %v2209_v40, 1  ;;  %v2690_v63 = vsel %vm5753_vm15, %v5183_v15, %v2689_v45  ;;  %vm2306_vm3 = vcmp.gt.f32.partialorder %v4368_v29, 0.0  ;;  %vm2307_vm6 = vcmp.gt.f32.partialorder %v5885_v62, 0.0 }
 0x2a2   : > { %vm2301_vm4 = vcmp.gt.f32.partialorder %v2057_v36, 0.0  ;;  %v2365_v31 = vmul.f32 0.01, %v2057_v36  ;;  %v2258_v1 = vmax.f32 %v2256_v57, %v2257_v14  ;;  %v2263_v17 = vmax.f32 %v2261_v4, %v2262_v23  ;;  %v5890_v57 = vld [vmem:[#allocation7_spill] sm:$0xff] }
 0x2a3   : > { %v5226_v35 = vmax.f32 %v2209_v40, %v2210_v13  ;;  %v2720_v3 = vpack.c.b16 %v2690_v63, %v2683_v6  ;;  %vm2314_vm7 = vcmp.gt.f32.partialorder %v5886_v34, 0.0  ;;  %vm2315_vm15 = vcmp.gt.f32.partialorder %v5887_v55, 0.0  ;;  %v5891_v6 = vld [vmem:[#allocation14_spill] sm:$0xff] }
 0x2a4   : > { %v2429_v2 = vsel %vm2301_vm4, %v2057_v36, %v2365_v31  ;;  %v2259_v44 = vrot.slane %v2258_v1, 1  ;;  %v2264_v8 = vrot.slane %v2263_v17, 2  ;;  %v2370_v30 = vmul.f32 0.01, %v4368_v29 }
 0x2a5   : > { %v2493_v15 = vpack.c.bf16 %v2429_v2, %v2429_v2  ;;  %3572 = vmatmul.mubr.msk.bf16.vlgmr.msra.gmra.mrb[28].mxu1 %vm1819_vm1, %v2720_v3  ;;  %v2371_v54 = vmul.f32 0.01, %v5885_v62  ;;  %v2378_v60 = vmul.f32 0.01, %v5886_v34  ;;  %vm2321_vm14 = vcmp.gt.f32.partialorder %v5042_v39, 0.0 }
 0x2a6   : > { %v2260_v37 = vmax.f32 %v2258_v1, %v2259_v44  ;;  %v2265_v9 = vmax.f32 %v2263_v17, %v2264_v8  ;;  %v2379_v24 = vmul.f32 0.01, %v5887_v55  ;;  %v2432_v43 = vsel %vm2304_vm8, %v4427_v61, %v5888_v58 }
 0x2a7   : > { %vm2329_vm4 = vcmp.gt.f32.partialorder %v5135_v10, 0.0  ;;  %v2625_v32 = vunpack.c.l.b16 %v2493_v15  ;;  %v2433_v5 = vsel %vm2305_vm2, %v4516_v41, %v5889_v59  ;;  %v2434_v11 = vsel %vm2306_vm3, %v4368_v29, %v2370_v30  ;;  %v5893_v15 = vld [vmem:[#allocation56_spill] sm:$0xff] }
 0x2a8   : > { %v2435_v20 = vsel %vm2307_vm6, %v5885_v62, %v2371_v54  ;;  %v2394_v16 = vmul.f32 0.01, %v2260_v37  ;;  %v2266_v28 = vrot.slane %v2265_v9, 1  ;;  %v2440_v61 = vsel %vm2312_vm9, %v4539_v21, %v5890_v57 }
 0x2a9   : > { %v2441_v41 = vsel %vm2313_vm0, %v4680_v53, %v5891_v6  ;;  %v2442_v29 = vsel %vm2314_vm7, %v5886_v34, %v2378_v60  ;;  %v2443_v40 = vsel %vm2315_vm15, %v5887_v55, %v2379_v24  ;;  %v2496_v4 = vpack.c.bf16 %v2432_v43, %v2432_v43  ;;  %v5892_v55 = vld [vmem:[#allocation21_spill] sm:$0xff]  ;;  %v5894_v60 = vld [vmem:[#allocation16_spill] sm:$0xff] }
 0x2aa   : > { %v2497_v0 = vpack.c.bf16 %v2433_v5, %v2433_v5  ;;  %v2267_v36 = vmax.f32 %v2265_v9, %v2266_v28  ;;  %v2498_v14 = vpack.c.bf16 %v2434_v11, %v2434_v11  ;;  %v2499_v23 = vpack.c.bf16 %v2435_v20, %v2435_v20  ;;  %v5895_v24 = vld [vmem:[#allocation17_spill] sm:$0xff] }
 0x2ab   : > { %v2504_v45 = vpack.c.bf16 %v2440_v61, %v2440_v61  ;;  %v2505_v21 = vpack.c.bf16 %v2441_v41, %v2441_v41  ;;  %v2506_v13 = vpack.c.bf16 %v2442_v29, %v2442_v29  ;;  %v2507_v63 = vpack.c.bf16 %v2443_v40, %v2443_v40 }
 0x2ac   : > { %v2628_v31 = vunpack.c.l.b16 %v2496_v4  ;;  %v2629_v1 = vunpack.c.l.b16 %v2497_v0  ;;  %v2630_v53 = vunpack.c.l.b16 %v2498_v14  ;;  %v2631_v17 = vunpack.c.l.b16 %v2499_v23 }
 0x2ad   : > { %v2636_v3 = vunpack.c.l.b16 %v2504_v45  ;;  %v2637_v62 = vunpack.c.l.b16 %v2505_v21  ;;  %v2638_v34 = vunpack.c.l.b16 %v2506_v13  ;;  %v2639_v2 = vunpack.c.l.b16 %v2507_v63  ;;  %v5903_v13 = vld [vmem:[#allocation12_spill] sm:$0xff] }
 0x2ae   : > { %v2691_v44 = vsel %vm2656_vm5, %v2625_v32, %v5189_v7  ;;  %v2698_v30 = vsel %vm2656_vm5, %v5893_v15, %v5892_v55  ;;  %vm2322_vm15 = vcmp.gt.f32.partialorder %v5203_v52, 0.0  ;;  %vm2323_vm8 = vcmp.gt.f32.partialorder %v5226_v35, 0.0  ;;  %v3448_v55 = vld [vmem:[%s5736_s2 + $0x1] ss:$0 sm:$0xff] }
 0x2af   : > { %v2692_v8 = vsel %vm2658_vm10, %v5178_v48, %v2691_v44  ;;  %v2699_v9 = vsel %vm2658_vm10, %v5894_v60, %v2698_v30  ;;  %vm2330_vm9 = vcmp.gt.f32.partialorder %v2260_v37, 0.0  ;;  %vm2331_vm0 = vcmp.gt.f32.partialorder %v2267_v36, 0.0 }
 0x2b0   : > { %v2693_v54 = vsel %vm2660_vm11, %v5215_v27, %v2692_v8  ;;  %v2700_v48 = vsel %vm2660_vm11, %v5895_v24, %v2699_v9  ;;  %v2387_v58 = vmul.f32 0.01, %v5226_v35  ;;  %v2395_v43 = vmul.f32 0.01, %v2267_v36 }
 0x2b1   : > { %v2694_v7 = vsel %vm2662_vm12, %v2628_v31, %v2693_v54  ;;  %v2701_v59 = vsel %vm2662_vm12, %v2636_v3, %v2700_v48  ;;  %v2449_v27 = vsel %vm2321_vm14, %v5042_v39, %v5066_v22  ;;  %v2450_v5 = vsel %vm2322_vm15, %v5203_v52, %v5211_v19 }
 0x2b2   : > { %v2695_v32 = vsel %vm2664_vm13, %v2629_v1, %v2694_v7  ;;  %vm5896_vm2 = vcmask 1046534   ;;  %v2702_v20 = vsel %vm2664_vm13, %v2637_v62, %v2701_v59  ;;  %v2451_v28 = vsel %vm2323_vm8, %v5226_v35, %v2387_v58 }
 0x2b3   : > { %v2696_v11 = vsel %vm5896_vm2, %v2630_v53, %v2695_v32  ;;  %v2457_v57 = vsel %vm2329_vm4, %v5135_v10, %v5143_v12  ;;  %vm5897_vm3 = vcmask 1047559   ;;  %vm5898_vm6 = vmmov %vm5896_vm2  ;;  %v2458_v39 = vsel %vm2330_vm9, %v2260_v37, %v2394_v16 }
 0x2b4   : > { %v2697_v61 = vsel %vm5897_vm3, %v2631_v17, %v2696_v11  ;;  %v2703_v6 = vsel %vm5898_vm6, %v2638_v34, %v2702_v20  ;;  %v2459_v22 = vsel %vm2331_vm0, %v2267_v36, %v2395_v43  ;;  %v2648_v52 = vunpack.c.l.b16 %v2516_v47  ;;  %vm5899_vm14 = vmmov %vm5897_vm3 }
 0x2b5   : > { %v2704_v19 = vsel %vm5899_vm14, %v2639_v2, %v2703_v6  ;;  %v2513_v35 = vpack.c.bf16 %v2449_v27, %v2449_v27  ;;  %v2514_v41 = vpack.c.bf16 %v2450_v5, %v2450_v5  ;;  %v2520_v29 = vpack.c.bf16 %v5116_v25, %v5116_v25  ;;  %vm5905_vm7 = vmmov %vm5896_vm2 }
 0x2b6   : > { %v2721_v10 = vpack.c.b16 %v2704_v19, %v2697_v61  ;;  %v2521_v12 = vpack.c.bf16 %v2457_v57, %v2457_v57  ;;  %v2522_v40 = vpack.c.bf16 %v2458_v39, %v2458_v39  ;;  %v2643_v37 = vunpack.c.l.b16 %v2511_v56  ;;  %vm5907_vm4 = vmmov %vm5897_vm3 }
 0x2b7   : > { %v2649_v16 = vunpack.c.l.b16 %v2517_v18  ;;  %v2515_v38 = vpack.c.bf16 %v2451_v28, %v2451_v28  ;;  %v2523_v47 = vpack.c.bf16 %v2459_v22, %v2459_v22  ;;  %v5900_v4 = vpack.c.bf16 %v4887_v26, %v4887_v26 }
 0x2b8   : > { %v5901_v25 = vpack.c.bf16 %v5025_v49, %v5025_v49  ;;  %3575 = vmatprep.mubr.msk.bf16.mxu1 %vm1819_vm1, %v2721_v10  ;;  %v5902_v46 = vpack.c.bf16 %v4926_v51, %v4926_v51  ;;  %v2645_v14 = vunpack.c.l.b16 %v2513_v35  ;;  %v2646_v23 = vunpack.c.l.b16 %v2514_v41 }
 0x2b9   : > { %v2650_v0 = vunpack.c.l.b16 %v5900_v4  ;;  %v2653_v42 = vunpack.c.l.b16 %v2521_v12  ;;  %v2705_v18 = vsel %vm2656_vm5, %v4905_v50, %v4901_v33  ;;  %v2712_v26 = vsel %vm2656_vm5, %v2649_v16, %v2648_v52  ;;  %vm5904_vm5 = vmmov %vm5896_vm2 }
 0x2ba   : > { %v2651_v36 = vunpack.c.l.b16 %v5901_v25  ;;  %v2644_v56 = vunpack.c.l.b16 %v5902_v46  ;;  %v2652_v45 = vunpack.c.l.b16 %v2520_v29  ;;  %v2654_v21 = vunpack.c.l.b16 %v2522_v40 }
 0x2bb   : > { %v2706_v49 = vsel %vm2658_vm10, %v5903_v13, %v2705_v18  ;;  %v2713_v63 = vsel %vm2658_vm10, %v2650_v0, %v2712_v26  ;;  %v2647_v31 = vunpack.c.l.b16 %v2515_v38  ;;  %v2655_v1 = vunpack.c.l.b16 %v2523_v47  ;;  %vm5906_vm10 = vmmov %vm5897_vm3 }
 0x2bc   : > { %v2707_v51 = vsel %vm2660_vm11, %v2643_v37, %v2706_v49  ;;  %v2714_v53 = vsel %vm2660_vm11, %v2651_v36, %v2713_v63 }
 0x2bd   : > { %v2708_v17 = vsel %vm2662_vm12, %v2644_v56, %v2707_v51  ;;  %v2715_v33 = vsel %vm2662_vm12, %v2652_v45, %v2714_v53 }
 0x2be   : > { %v2709_v50 = vsel %vm2664_vm13, %v2645_v14, %v2708_v17  ;;  %v2716_v3 = vsel %vm2664_vm13, %v2653_v42, %v2715_v33 }
 0x2bf   : > { %v2710_v62 = vsel %vm5904_vm5, %v2646_v23, %v2709_v50  ;;  %v2717_v34 = vsel %vm5905_vm7, %v2654_v21, %v2716_v3 }
 0x2c0   : > { %v2711_v2 = vsel %vm5906_vm10, %v2647_v31, %v2710_v62  ;;  %v2718_v44 = vsel %vm5907_vm4, %v2655_v1, %v2717_v34 }
 0x2c1   : > { %v2722_v8 = vpack.c.b16 %v2718_v44, %v2711_v2 }
 0x2c3   : > { %3576 = vmatmul.mubr.msk.bf16.gmra.mrb[32].mxu1 %vm1819_vm1, %v2722_v8 }
 0x378   : > { %v3573_v15 = vpop.f32.mrb[28].mxu1 }
 0x379   : > { %v2784_v30 = vadd.f32 %v3573_v15, %v3448_v55  ;;  %v2775_v54 = vpop.f32.mrb[29].mxu1 }
 0x37a   : > { %v2776_v60 = vadd.f32 %v3448_v55, %v2775_v54  ;;  %v3574_v9 = vpop.f32.mrb[30].mxu1 }
 0x37b   : > { %2810 = vst [vmem:[%s2807_s11 + $0x10] sm:$0xff] %v2784_v30  ;;  %v2787_v7 = vadd.f32 %v3574_v9, %v3448_v55  ;;  %v2778_v24 = vpop.f32.mrb[31].mxu1 }
 0x37c   : > { %2808 = vst [vmem:[%s2807_s11] sm:$0xff] %v2776_v60  ;;  %v2779_v48 = vadd.f32 %v3448_v55, %v2778_v24 }
 0x37d   : > { %2811 = vst [vmem:[%s2807_s11 + $0x18] sm:$0xff] %v2787_v7 }
 0x37e   : > { %2809 = vst [vmem:[%s2807_s11 + $0x8] sm:$0xff] %v2779_v48 }
 0x396   : > { %v3577_v58 = vpop.f32.mrb[32].mxu1  ;;  %2819 = sbr.rel (%p3455_p4) target bundleno = 1104 (0x450), region = 36 }
 0x397   : > { %v2800_v43 = vadd.f32 %v3577_v58, %v3448_v55  ;;  %v2791_v32 = vpop.f32.mrb[33].mxu1 }
 0x398   : > { %v2792_v59 = vadd.f32 %v3448_v55, %v2791_v32  ;;  %v3578_v27 = vpop.f32.mrb[34].mxu1 }
 0x399   : > { %2814 = vst [vmem:[%s2807_s11 + $0x30] sm:$0xff] %v2800_v43  ;;  %v2803_v5 = vadd.f32 %v3578_v27, %v3448_v55  ;;  %v2794_v11 = vpop.f32.mrb[35].mxu1 }
 0x39a   : > { %2812 = vst [vmem:[%s2807_s11 + $0x20] sm:$0xff] %v2792_v59  ;;  %v2795_v20 = vadd.f32 %v3448_v55, %v2794_v11 }
 0x39b   : > { %2815 = vst [vmem:[%s2807_s11 + $0x38] sm:$0xff] %v2803_v5 }
 0x39c   : > { %2813 = vst [vmem:[%s2807_s11 + $0x28] sm:$0xff] %v2795_v20 }
 0x3a3   : > { %v2820_v28 = vld [vmem:[#allocation2] sm:$0xff]  ;;  %v2821_v57 = vld [vmem:[#allocation2 + $0x8] sm:$0xff]  ;;  %v2822_v61 = vld [vmem:[#allocation2 + $0x10] sm:$0xff] }
 0x3a4   : > { %v3013_v6 = vadd.f32 %v2821_v57, %v2820_v28  ;;  %v2823_v39 = vld [vmem:[#allocation2 + $0x18] sm:$0xff]  ;;  %v2824_v52 = vld [vmem:[#allocation2 + $0x20] sm:$0xff]  ;;  %v2825_v35 = vld [vmem:[#allocation2 + $0x28] sm:$0xff] }
 0x3a5   : > { %v2826_v29 = vld [vmem:[#allocation2 + $0x30] sm:$0xff]  ;;  %v2827_v12 = vld [vmem:[#allocation2 + $0x38] sm:$0xff]  ;;  %v2828_v37 = vld [vmem:[#allocation2 + $0x40] sm:$0xff] }
 0x3a6   : > { %v3014_v22 = vadd.f32 %v3013_v6, %v2822_v61  ;;  %v2829_v38 = vld [vmem:[#allocation2 + $0x48] sm:$0xff]  ;;  %v2830_v4 = vld [vmem:[#allocation2 + $0x50] sm:$0xff]  ;;  %v2831_v25 = vld [vmem:[#allocation2 + $0x58] sm:$0xff] }
 0x3a7   : > { %v5347_v46 = vld [vmem:[#allocation2 + $0x60] sm:$0xff]  ;;  %v5349_v14 = vld [vmem:[#allocation2 + $0x68] sm:$0xff]  ;;  %v5352_v42 = vld [vmem:[#allocation2 + $0x70] sm:$0xff] }
 0x3a8   : > { %v3015_v19 = vadd.f32 %v3014_v22, %v2823_v39  ;;  %v5355_v26 = vld [vmem:[#allocation2 + $0x78] sm:$0xff]  ;;  %v5358_v21 = vld [vmem:[#allocation2 + $0x80] sm:$0xff]  ;;  %v5361_v49 = vld [vmem:[#allocation2 + $0x88] sm:$0xff] }
 0x3a9   : > { %v5364_v31 = vld [vmem:[#allocation2 + $0x90] sm:$0xff]  ;;  %v5367_v51 = vld [vmem:[#allocation2 + $0x98] sm:$0xff]  ;;  %v5370_v17 = vld [vmem:[#allocation2 + $0xa0] sm:$0xff] }
 0x3aa   : > { %v3016_v41 = vadd.f32 %v3015_v19, %v2824_v52  ;;  %v5373_v50 = vld [vmem:[#allocation2 + $0xa8] sm:$0xff]  ;;  %v5376_v62 = vld [vmem:[#allocation2 + $0xb0] sm:$0xff]  ;;  %v5379_v2 = vld [vmem:[#allocation2 + $0xb8] sm:$0xff] }
 0x3ab   : > { %v5382_v8 = vld [vmem:[#allocation2 + $0xc0] sm:$0xff] }
 0x3ac   : > { %v3017_v10 = vadd.f32 %v3016_v41, %v2825_v35 }
 0x3ae   : > { %v3018_v40 = vadd.f32 %v3017_v10, %v2826_v29 }
 0x3b0   : > { %v3019_v16 = vadd.f32 %v3018_v40, %v2827_v12 }
 0x3b2   : > { %v3020_v47 = vadd.f32 %v3019_v16, %v2828_v37 }
 0x3b4   : > { %v3021_v0 = vadd.f32 %v3020_v47, %v2829_v38 }
 0x3b6   : > { %v3022_v36 = vadd.f32 %v3021_v0, %v2830_v4 }
 0x3b8   : > { %v3023_v56 = vadd.f32 %v3022_v36, %v2831_v25 }
 0x3ba   : > { %v3024_v23 = vadd.f32 %v3023_v56, %v5347_v46 }
 0x3bc   : > { %v3025_v18 = vadd.f32 %v3024_v23, %v5349_v14 }
 0x3be   : > { %v3026_v45 = vadd.f32 %v3025_v18, %v5352_v42 }
 0x3c0   : > { %v3027_v13 = vadd.f32 %v3026_v45, %v5355_v26 }
 0x3c2   : > { %v3028_v63 = vadd.f32 %v3027_v13, %v5358_v21 }
 0x3c4   : > { %v3029_v1 = vadd.f32 %v3028_v63, %v5361_v49 }
 0x3c6   : > { %v3030_v53 = vadd.f32 %v3029_v1, %v5364_v31 }
 0x3c8   : > { %v3031_v33 = vadd.f32 %v3030_v53, %v5367_v51 }
 0x3ca   : > { %v3032_v3 = vadd.f32 %v3031_v33, %v5370_v17 }
 0x3cc   : > { %v3033_v34 = vadd.f32 %v3032_v3, %v5373_v50 }
 0x3ce   : > { %v3034_v44 = vadd.f32 %v3033_v34, %v5376_v62 }
 0x3d0   : > { %v3035_v55 = vadd.f32 %v3034_v44, %v5379_v2 }
 0x3d2   : > { %v3036_v15 = vadd.f32 %v3035_v55, %v5382_v8 }
 0x3d4   : > { %v3044_v30 = vrot.slane %v3036_v15, 4 }
 0x3d6   : > { %v3045_v54 = vadd.f32 %v3044_v30, %v3036_v15 }
 0x3d8   : > { %v3046_v60 = vrot.slane %v3045_v54, 2 }
 0x3da   : > { %v3047_v9 = vadd.f32 %v3046_v60, %v3045_v54 }
 0x3dc   : > { %v3048_v7 = vrot.slane %v3047_v9, 1 }
 0x3de   : > { %v3049_v24 = vadd.f32 %v3048_v7, %v3047_v9 }
 0x3e0   : > { %v5386_v48 = vmul.f32 0.005, %v3049_v24 }
 0x3e2   : > { %v5389_v58 = vsub.f32 %v2820_v28, %v5386_v48  ;;  %v5392_v43 = vsub.f32 %v2821_v57, %v5386_v48  ;;  %v5395_v32 = vsub.f32 %v2822_v61, %v5386_v48  ;;  %v5398_v59 = vsub.f32 %v2823_v39, %v5386_v48 }
 0x3e3   : > { %v5405_v11 = vsub.f32 %v2824_v52, %v5386_v48  ;;  %v5410_v28 = vsub.f32 %v2825_v35, %v5386_v48  ;;  %v5415_v6 = vsub.f32 %v2826_v29, %v5386_v48  ;;  %v5420_v52 = vsub.f32 %v2827_v12, %v5386_v48 }
 0x3e4   : > { %v3115_v27 = vmul.f32 %v5389_v58, %v5389_v58  ;;  %v3116_v5 = vmul.f32 %v5392_v43, %v5392_v43  ;;  %v3117_v20 = vmul.f32 %v5395_v32, %v5395_v32  ;;  %v3118_v57 = vmul.f32 %v5398_v59, %v5398_v59 }
 0x3e5   : > { %v3119_v39 = vmul.f32 %v5405_v11, %v5405_v11  ;;  %v3120_v19 = vmul.f32 %v5410_v28, %v5410_v28  ;;  %v5425_v35 = vsub.f32 %v2828_v37, %v5386_v48  ;;  %v3121_v10 = vmul.f32 %v5415_v6, %v5415_v6 }
 0x3e6   : > { %v3147_v61 = vadd.f32 %v3116_v5, %v3115_v27  ;;  %v5430_v29 = vsub.f32 %v2829_v38, %v5386_v48  ;;  %v3122_v16 = vmul.f32 %v5420_v52, %v5420_v52  ;;  %v5435_v12 = vsub.f32 %v2830_v4, %v5386_v48 }
 0x3e7   : > { %v3123_v0 = vmul.f32 %v5425_v35, %v5425_v35  ;;  %v5440_v37 = vsub.f32 %v2831_v25, %v5386_v48  ;;  %v5446_v38 = vsub.f32 %v5347_v46, %v5386_v48  ;;  %v5452_v45 = vsub.f32 %v5349_v14, %v5386_v48 }
 0x3e8   : > { %v3148_v22 = vadd.f32 %v3147_v61, %v3117_v20  ;;  %v3124_v56 = vmul.f32 %v5430_v29, %v5430_v29  ;;  %v3125_v18 = vmul.f32 %v5435_v12, %v5435_v12  ;;  %v5458_v63 = vsub.f32 %v5352_v42, %v5386_v48 }
 0x3e9   : > { %v3126_v25 = vmul.f32 %v5440_v37, %v5440_v37  ;;  %v3127_v46 = vmul.f32 %v5446_v38, %v5446_v38  ;;  %v5464_v53 = vsub.f32 %v5355_v26, %v5386_v48  ;;  %v3128_v14 = vmul.f32 %v5452_v45, %v5452_v45 }
 0x3ea   : > { %v3149_v41 = vadd.f32 %v3148_v22, %v3118_v57  ;;  %v5470_v3 = vsub.f32 %v5358_v21, %v5386_v48  ;;  %v3129_v42 = vmul.f32 %v5458_v63, %v5458_v63  ;;  %v5476_v44 = vsub.f32 %v5361_v49, %v5386_v48 }
 0x3eb   : > { %v3130_v26 = vmul.f32 %v5464_v53, %v5464_v53  ;;  %v5482_v15 = vsub.f32 %v5364_v31, %v5386_v48  ;;  %v5488_v54 = vsub.f32 %v5367_v51, %v5386_v48  ;;  %v5494_v9 = vsub.f32 %v5370_v17, %v5386_v48 }
 0x3ec   : > { %v3150_v40 = vadd.f32 %v3149_v41, %v3119_v39  ;;  %v3131_v21 = vmul.f32 %v5470_v3, %v5470_v3  ;;  %v3132_v49 = vmul.f32 %v5476_v44, %v5476_v44  ;;  %v5500_v24 = vsub.f32 %v5373_v50, %v5386_v48 }
 0x3ed   : > { %v3133_v31 = vmul.f32 %v5482_v15, %v5482_v15  ;;  %v3134_v51 = vmul.f32 %v5488_v54, %v5488_v54  ;;  %v5506_v5 = vsub.f32 %v5376_v62, %v5386_v48  ;;  %v3135_v17 = vmul.f32 %v5494_v9, %v5494_v9 }
 0x3ee   : > { %v3151_v47 = vadd.f32 %v3150_v40, %v3120_v19  ;;  %v5512_v57 = vsub.f32 %v5379_v2, %v5386_v48  ;;  %v3136_v50 = vmul.f32 %v5500_v24, %v5500_v24  ;;  %v5518_v39 = vsub.f32 %v5382_v8, %v5386_v48 }
 0x3ef   : > { %v3137_v62 = vmul.f32 %v5506_v5, %v5506_v5 }
 0x3f0   : > { %v3152_v36 = vadd.f32 %v3151_v47, %v3121_v10  ;;  %v3138_v19 = vmul.f32 %v5512_v57, %v5512_v57  ;;  %v3139_v2 = vmul.f32 %v5518_v39, %v5518_v39 }
 0x3f2   : > { %v3153_v23 = vadd.f32 %v3152_v36, %v3122_v16 }
 0x3f4   : > { %v3154_v4 = vadd.f32 %v3153_v23, %v3123_v0 }
 0x3f6   : > { %v3155_v13 = vadd.f32 %v3154_v4, %v3124_v56 }
 0x3f8   : > { %v3156_v1 = vadd.f32 %v3155_v13, %v3125_v18  ;;  %v5528_v13 = vld [vmem:[#allocation2 + $0xd0] sm:$0xff] }
 0x3fa   : > { %v3157_v33 = vadd.f32 %v3156_v1, %v3126_v25  ;;  %v5526_v25 = vld [vmem:[#allocation2 + $0xc8] sm:$0xff]  ;;  %v5532_v1 = vld [vmem:[#allocation2 + $0xe0] sm:$0xff] }
 0x3fc   : > { %v3158_v34 = vadd.f32 %v3157_v33, %v3127_v46  ;;  %v5530_v46 = vld [vmem:[#allocation2 + $0xd8] sm:$0xff]  ;;  %v5536_v33 = vld [vmem:[#allocation2 + $0xf0] sm:$0xff] }
 0x3fe   : > { %v3159_v55 = vadd.f32 %v3158_v34, %v3128_v14  ;;  %v5534_v14 = vld [vmem:[#allocation2 + $0xe8] sm:$0xff]  ;;  %v3076_v34 = vsub.f32 %v5526_v25, %v5386_v48 }
 0x400   : > { %v3160_v30 = vadd.f32 %v3159_v55, %v3129_v42  ;;  %v5538_v42 = vld [vmem:[#allocation2 + $0xf8] sm:$0xff]  ;;  %v3078_v55 = vsub.f32 %v5530_v46, %v5386_v48 }
 0x402   : > { %v3161_v60 = vadd.f32 %v3160_v30, %v3130_v26  ;;  %v3077_v26 = vsub.f32 %v5528_v13, %v5386_v48  ;;  %v5551_v30 = vld [vmem:[%s5736_s2 + $0x2] ss:$0 sm:$0xff] }
 0x404   : > { %v3162_v7 = vadd.f32 %v3161_v60, %v3131_v21  ;;  %v3080_v60 = vsub.f32 %v5534_v14, %v5386_v48 }
 0x406   : > { %v3163_v27 = vadd.f32 %v3162_v7, %v3132_v49  ;;  %v3079_v49 = vsub.f32 %v5532_v1, %v5386_v48  ;;  %v3082_v7 = vsub.f32 %v5538_v42, %v5386_v48 }
 0x408   : > { %v3164_v20 = vadd.f32 %v3163_v27, %v3133_v31  ;;  %v3081_v31 = vsub.f32 %v5536_v33, %v5386_v48 }
 0x40a   : > { %v3165_v61 = vadd.f32 %v3164_v20, %v3134_v51 }
 0x40c   : > { %v3166_v22 = vadd.f32 %v3165_v61, %v3135_v17 }
 0x40e   : > { %v3167_v41 = vadd.f32 %v3166_v22, %v3136_v50  ;;  %v5572_v50 = vld [vmem:[%s5736_s2 + $0x3] ss:$0 sm:$0xff] }
 0x410   : > { %v3168_v10 = vadd.f32 %v3167_v41, %v3137_v62 }
 0x412   : > { %v3169_v40 = vadd.f32 %v3168_v10, %v3138_v19 }
 0x414   : > { %v3170_v16 = vadd.f32 %v3169_v40, %v3139_v2 }
 0x416   : > { %v3178_v47 = vrot.slane %v3170_v16, 4 }
 0x418   : > { %v3179_v0 = vadd.f32 %v3178_v47, %v3170_v16 }
 0x41a   : > { %v3180_v36 = vrot.slane %v3179_v0, 2 }
 0x41c   : > { %v3181_v56 = vadd.f32 %v3180_v36, %v3179_v0 }
 0x41e   : > { %v3182_v8 = vrot.slane %v3181_v56, 1 }
 0x420   : > { %v3183_v23 = vadd.f32 %v3182_v8, %v3181_v56 }
 0x422   : > { %v3184_v18 = vmul.f32 0.005, %v3183_v23 }
 0x424   : > { %v3187_v4 = vadd.f32 1e-05, %v3184_v18 }
 0x426   : > { %3639 = vrsqrt.f32 %v3187_v4 }
 0x430   : > { %v5546_v21 = vpop.eup %3639 }
 0x431   : > { %v3189_v51 = vmul.f32 %v5546_v21, %v5389_v58  ;;  %v3190_v27 = vmul.f32 %v5546_v21, %v5392_v43  ;;  %v3191_v17 = vmul.f32 %v5546_v21, %v5395_v32  ;;  %v3192_v20 = vmul.f32 %v5546_v21, %v5398_v59 }
 0x432   : > { %v3193_v61 = vmul.f32 %v5546_v21, %v5405_v11  ;;  %v3194_v58 = vmul.f32 %v5546_v21, %v5410_v28  ;;  %v3195_v43 = vmul.f32 %v5546_v21, %v5415_v6  ;;  %v3196_v32 = vmul.f32 %v5546_v21, %v5420_v52 }
 0x433   : > { %v3225_v62 = vmul.f32 %v5551_v30, %v3189_v51  ;;  %v3226_v59 = vmul.f32 %v5551_v30, %v3190_v27  ;;  %v3227_v22 = vmul.f32 %v5551_v30, %v3191_v17  ;;  %v3228_v19 = vmul.f32 %v5551_v30, %v3192_v20 }
 0x434   : > { %v3229_v41 = vmul.f32 %v5551_v30, %v3193_v61  ;;  %v3230_v11 = vmul.f32 %v5551_v30, %v3194_v58  ;;  %v3231_v28 = vmul.f32 %v5551_v30, %v3195_v43  ;;  %v3232_v2 = vmul.f32 %v5551_v30, %v3196_v32 }
 0x435   : > { %v3261_v6 = vadd.f32 %v5572_v50, %v3225_v62  ;;  %v3262_v52 = vadd.f32 %v5572_v50, %v3226_v59  ;;  %v3263_v10 = vadd.f32 %v5572_v50, %v3227_v22  ;;  %v3264_v40 = vadd.f32 %v5572_v50, %v3228_v19 }
 0x436   : > { %v3265_v16 = vadd.f32 %v5572_v50, %v3229_v41  ;;  %v3266_v47 = vadd.f32 %v5572_v50, %v3230_v11  ;;  %v3267_v0 = vadd.f32 %v5572_v50, %v3231_v28  ;;  %v3268_v36 = vadd.f32 %v5572_v50, %v3232_v2 }
 0x437   : > { %3293 = vst [vmem:[#allocation3] sm:$0xff] %v3261_v6  ;;  %3294 = vst [vmem:[#allocation3 + $0x8] sm:$0xff] %v3262_v52  ;;  %v3197_v56 = vmul.f32 %v5546_v21, %v5425_v35  ;;  %v3198_v8 = vmul.f32 %v5546_v21, %v5430_v29  ;;  %v3199_v23 = vmul.f32 %v5546_v21, %v5435_v12 }
 0x438   : > { %3295 = vst [vmem:[#allocation3 + $0x10] sm:$0xff] %v3263_v10  ;;  %3296 = vst [vmem:[#allocation3 + $0x18] sm:$0xff] %v3264_v40  ;;  %v3200_v18 = vmul.f32 %v5546_v21, %v5440_v37  ;;  %v3201_v4 = vmul.f32 %v5546_v21, %v5446_v38  ;;  %v3202_v51 = vmul.f32 %v5546_v21, %v5452_v45 }
 0x439   : > { %3297 = vst [vmem:[#allocation3 + $0x20] sm:$0xff] %v3265_v16  ;;  %3298 = vst [vmem:[#allocation3 + $0x28] sm:$0xff] %v3266_v47  ;;  %v3203_v35 = vmul.f32 %v5546_v21, %v5458_v63  ;;  %v3204_v29 = vmul.f32 %v5546_v21, %v5464_v53  ;;  %v3233_v12 = vmul.f32 %v5551_v30, %v3197_v56 }
 0x43a   : > { %3299 = vst [vmem:[#allocation3 + $0x30] sm:$0xff] %v3267_v0  ;;  %3300 = vst [vmem:[#allocation3 + $0x38] sm:$0xff] %v3268_v36  ;;  %v3234_v37 = vmul.f32 %v5551_v30, %v3198_v8  ;;  %v3235_v27 = vmul.f32 %v5551_v30, %v3199_v23  ;;  %v3236_v17 = vmul.f32 %v5551_v30, %v3200_v18 }
 0x43b   : > { %v3237_v20 = vmul.f32 %v5551_v30, %v3201_v4  ;;  %v3238_v38 = vmul.f32 %v5551_v30, %v3202_v51  ;;  %v3239_v45 = vmul.f32 %v5551_v30, %v3203_v35  ;;  %v3240_v61 = vmul.f32 %v5551_v30, %v3204_v29 }
 0x43c   : > { %v3269_v63 = vadd.f32 %v5572_v50, %v3233_v12  ;;  %v3270_v53 = vadd.f32 %v5572_v50, %v3234_v37  ;;  %v3271_v58 = vadd.f32 %v5572_v50, %v3235_v27  ;;  %v3272_v43 = vadd.f32 %v5572_v50, %v3236_v17 }
 0x43d   : > { %v3273_v32 = vadd.f32 %v5572_v50, %v3237_v20  ;;  %v3274_v62 = vadd.f32 %v5572_v50, %v3238_v38  ;;  %v3275_v59 = vadd.f32 %v5572_v50, %v3239_v45  ;;  %v3276_v22 = vadd.f32 %v5572_v50, %v3240_v61 }
 0x43e   : > { %3301 = vst [vmem:[#allocation3 + $0x40] sm:$0xff] %v3269_v63  ;;  %3302 = vst [vmem:[#allocation3 + $0x48] sm:$0xff] %v3270_v53  ;;  %v3205_v19 = vmul.f32 %v5546_v21, %v5470_v3  ;;  %v3206_v41 = vmul.f32 %v5546_v21, %v5476_v44  ;;  %v3207_v11 = vmul.f32 %v5546_v21, %v5482_v15 }
 0x43f   : > { %3303 = vst [vmem:[#allocation3 + $0x50] sm:$0xff] %v3271_v58  ;;  %3304 = vst [vmem:[#allocation3 + $0x58] sm:$0xff] %v3272_v43  ;;  %v3208_v28 = vmul.f32 %v5546_v21, %v5488_v54  ;;  %v3209_v2 = vmul.f32 %v5546_v21, %v5494_v9  ;;  %v3210_v6 = vmul.f32 %v5546_v21, %v5500_v24 }
 0x440   : > { %3305 = vst [vmem:[#allocation3 + $0x60] sm:$0xff] %v3273_v32  ;;  %3306 = vst [vmem:[#allocation3 + $0x68] sm:$0xff] %v3274_v62  ;;  %v3211_v3 = vmul.f32 %v5546_v21, %v5506_v5  ;;  %v3212_v44 = vmul.f32 %v5546_v21, %v5512_v57  ;;  %v3241_v15 = vmul.f32 %v5551_v30, %v3205_v19 }
 0x441   : > { %3307 = vst [vmem:[#allocation3 + $0x70] sm:$0xff] %v3275_v59  ;;  %3308 = vst [vmem:[#allocation3 + $0x78] sm:$0xff] %v3276_v22  ;;  %v3242_v54 = vmul.f32 %v5551_v30, %v3206_v41  ;;  %v3243_v52 = vmul.f32 %v5551_v30, %v3207_v11  ;;  %v3244_v10 = vmul.f32 %v5551_v30, %v3208_v28 }
 0x442   : > { %v3245_v40 = vmul.f32 %v5551_v30, %v3209_v2  ;;  %v3246_v9 = vmul.f32 %v5551_v30, %v3210_v6  ;;  %v3247_v24 = vmul.f32 %v5551_v30, %v3211_v3  ;;  %v3248_v16 = vmul.f32 %v5551_v30, %v3212_v44 }
 0x443   : > { %v3277_v5 = vadd.f32 %v5572_v50, %v3241_v15  ;;  %v3278_v57 = vadd.f32 %v5572_v50, %v3242_v54  ;;  %v3279_v47 = vadd.f32 %v5572_v50, %v3243_v52  ;;  %v3280_v0 = vadd.f32 %v5572_v50, %v3244_v10 }
 0x444   : > { %v3281_v36 = vadd.f32 %v5572_v50, %v3245_v40  ;;  %v3282_v56 = vadd.f32 %v5572_v50, %v3246_v9  ;;  %v3283_v8 = vadd.f32 %v5572_v50, %v3247_v24  ;;  %v3284_v23 = vadd.f32 %v5572_v50, %v3248_v16 }
 0x445   : > { %3309 = vst [vmem:[#allocation3 + $0x80] sm:$0xff] %v3277_v5  ;;  %3310 = vst [vmem:[#allocation3 + $0x88] sm:$0xff] %v3278_v57  ;;  %v3213_v18 = vmul.f32 %v5546_v21, %v5518_v39  ;;  %v3214_v4 = vmul.f32 %v5546_v21, %v3076_v34  ;;  %v3215_v51 = vmul.f32 %v5546_v21, %v3077_v26 }
 0x446   : > { %3311 = vst [vmem:[#allocation3 + $0x90] sm:$0xff] %v3279_v47  ;;  %3312 = vst [vmem:[#allocation3 + $0x98] sm:$0xff] %v3280_v0  ;;  %v3216_v35 = vmul.f32 %v5546_v21, %v3078_v55  ;;  %v3217_v39 = vmul.f32 %v5546_v21, %v3079_v49  ;;  %v3218_v25 = vmul.f32 %v5546_v21, %v3080_v60 }
 0x447   : > { %3313 = vst [vmem:[#allocation3 + $0xa0] sm:$0xff] %v3281_v36  ;;  %3314 = vst [vmem:[#allocation3 + $0xa8] sm:$0xff] %v3282_v56  ;;  %v3219_v13 = vmul.f32 %v5546_v21, %v3081_v31  ;;  %v3220_v46 = vmul.f32 %v5546_v21, %v3082_v7  ;;  %v3249_v34 = vmul.f32 %v5551_v30, %v3213_v18 }
 0x448   : > { %3315 = vst [vmem:[#allocation3 + $0xb0] sm:$0xff] %v3283_v8  ;;  %3316 = vst [vmem:[#allocation3 + $0xb8] sm:$0xff] %v3284_v23  ;;  %v3250_v1 = vmul.f32 %v5551_v30, %v3214_v4  ;;  %v3251_v26 = vmul.f32 %v5551_v30, %v3215_v51  ;;  %v3252_v14 = vmul.f32 %v5551_v30, %v3216_v35 }
 0x449   : > { %v3253_v55 = vmul.f32 %v5551_v30, %v3217_v39  ;;  %v3254_v49 = vmul.f32 %v5551_v30, %v3218_v25  ;;  %v3255_v33 = vmul.f32 %v5551_v30, %v3219_v13  ;;  %v3256_v60 = vmul.f32 %v5551_v30, %v3220_v46 }
 0x44a   : > { %v3285_v48 = vadd.f32 %v5572_v50, %v3249_v34  ;;  %v3286_v42 = vadd.f32 %v5572_v50, %v3250_v1  ;;  %v3287_v21 = vadd.f32 %v5572_v50, %v3251_v26  ;;  %v3288_v31 = vadd.f32 %v5572_v50, %v3252_v14 }
 0x44b   : > { %v3289_v7 = vadd.f32 %v5572_v50, %v3253_v55  ;;  %v3290_v29 = vadd.f32 %v5572_v50, %v3254_v49  ;;  %v3291_v12 = vadd.f32 %v5572_v50, %v3255_v33  ;;  %v3292_v37 = vadd.f32 %v5572_v50, %v3256_v60 }
 0x44c   : > { %3317 = vst [vmem:[#allocation3 + $0xc0] sm:$0xff] %v3285_v48  ;;  %3318 = vst [vmem:[#allocation3 + $0xc8] sm:$0xff] %v3286_v42 }
 0x44d   : > { %3319 = vst [vmem:[#allocation3 + $0xd0] sm:$0xff] %v3287_v21  ;;  %3320 = vst [vmem:[#allocation3 + $0xd8] sm:$0xff] %v3288_v31 }
 0x44e   : > { %3321 = vst [vmem:[#allocation3 + $0xe0] sm:$0xff] %v3289_v7  ;;  %3322 = vst [vmem:[#allocation3 + $0xe8] sm:$0xff] %v3290_v29 }
 0x44f   : > { %3323 = vst [vmem:[#allocation3 + $0xf0] sm:$0xff] %v3291_v12  ;;  %3324 = vst [vmem:[#allocation3 + $0xf8] sm:$0xff] %v3292_v37 }
 0x450 PF: > { %p3587_p5 = scmp.eq.s32.totalorder %s3710_s13, 3  ;;  %s3681_s18 = smov [#allocation3]  }
 0x451   : > { %s3331_s19 = sshll.u32 %s3681_s18, 4  ;;  %s3332_s19 = int_to_ptr.vmem [resolvable:$true] %s3331_s19 }
 0x452   : > { %s3641_s20 = scalar_lea.vmem %s3332_s19, 4096  ;;  %p3648_p9 = scmp.lt.s32.totalorder %s3332_s19, %s3332_s19 }
 0x453   : > { %p3642_p6 = scmp.ne.s32.totalorder %s3332_s19, %s3641_s20  ;;  %p3649_p10 = scmp.lt.s32.totalorder %s3641_s20, %s3641_s20 }
 0x455   : > { %p3643_p7 = pnand %p3642_p6, %p3587_p5  ;;  %p3650_p11 = por %p3649_p10, %p3648_p9 }
 0x457   : > { %p3644_p8 = pneg %p3643_p7 }
 0x459   : > { %p3651_p12 = pnand %p3650_p11, %p3644_p8 }
 0x45b   : > { %3654 = shalt.err (!%p3651_p12)
}
 0x45c   : > { %s3655_s23 = scalar_lea.hbm %s5737_s3, 4096 }
 0x45d   : > { %p3656_p13 = scmp.ne.s32.totalorder %s5737_s3, %s3655_s23  ;;  %p3661_p2 = scmp.lt.u32.totalorder %s3655_s23, %s5737_s3 }
 0x45f   : > { %p3657_p0 = pnand %p3656_p13, %p3587_p5 }
 0x461   : > { %p3658_p1 = pneg %p3657_p0 }
 0x463   : > { %p3663_p3 = pnand %p3661_p2, %p3658_p1 }
 0x465   : > { %3666 = shalt.err (!%p3663_p3)
}
 0x466   : > { %s3682_s28 = smov 128   ;;  %s3683_s29 = smov 8  }
 0x467   : > { %3584 = dma.vmem_to_hbm [thread:$0]  (%p3587_p5), %s3332_s19, 4096, %s5737_s3, [#allocation4], %s3682_s28, %s3682_s28, %s3683_s29  }
 0x468   : > { %3672 = dma.done.wait (%p3587_p5), [#allocation4], 4096  }
 0x469   : > { %3674 = vsyncadd (%p3587_p5), [#allocation4], 4294963200 }
 0x46a PF: > { %s14_s12 = sadd.s32 1, %s3677_s12  }
 0x46b   : > { %p11_p4 = scmp.ge.s32.totalorder %s14_s12, 6  }
 0x46d   :  { %13 = sbr.rel (!%p11_p4) target bundleno = 1 (0x1), region = 64 }
 0x474   :  { %3347 = vsyncpa [#allocation4], 1 }
 0x475   :  { %3349 = vsyncpa [#allocation4 + $0x1], 1 }

</bundles_post_ra>
